<compile_context>
chip_gen: v7x
topology: tpu7x:2x2x1
jax: 0.10.0
libtpu: 0.0.40
codegen_flags: <defaults>
</compile_context>

<pallas_src>
import functools

import jax
import jax.numpy as jnp
from jax.experimental import pallas as pl
from jax.experimental.pallas import tpu as pltpu

# Set to jnp.bfloat16 on v6e/v7x to halve MXU-input bytes / VMEM pressure.
MXU_DTYPE = jnp.float32


# ---------------------------------------------------------------------------
# Fused forward kernel (one grid step == one image)
# ---------------------------------------------------------------------------
def _cautoencoder_kernel(mask_ref, x_ref, noise_ref,
                         ew1_ref, eb1_ref, ew2_ref, eb2_ref,
                         qw_ref, qb_ref, pqw_ref, pqb_ref,
                         dw1_ref, db1_ref, dw2_ref, db2_ref,
                         dec_ref, mean_ref, logvar_ref,
                         *, width, embed_dim, sample_posterior, mxu_dtype):
    pixels = x_ref.shape[-1]

    def cast(v):
        return v if mxu_dtype == jnp.float32 else v.astype(mxu_dtype)

    def conv3x3(x, w_ref, b_ref):
        # x: (C_in, P) f32; w_ref: (9, C_out, C_in); b_ref: (C_out, 1).
        # 9 shifted taps via lane rotation + border masks, f32 accumulation.
        # Center tap (k=4, offset 0) needs no roll/mask and seeds the acc.
        xc = cast(x)
        acc = jnp.dot(cast(w_ref[4]), xc, preferred_element_type=jnp.float32)
        for k in (0, 1, 2, 3, 5, 6, 7, 8):
            ddy, ddx = k // 3 - 1, k % 3 - 1
            off = ddy * width + ddx
            tap = pltpu.roll(x, shift=(-off) % pixels, axis=1)
            tap = tap * mask_ref[k]                       # zero wrapped lanes
            acc = acc + jnp.dot(cast(w_ref[k]), cast(tap),
                                preferred_element_type=jnp.float32)
        return acc + b_ref[...]

    def silu(v):
        # exp + reciprocal both live on the EUP slot (free vs. VALU).
        return v * pl.reciprocal(1.0 + jnp.exp(-v), approx=True)

    x = x_ref[...].astype(jnp.float32)

    # ---- encoder (MyEncoder stand-in: conv3x3 -> SiLU -> conv3x3) ----
    h1 = silu(conv3x3(x, ew1_ref, eb1_ref))
    henc = conv3x3(h1, ew2_ref, eb2_ref)

    # ---- quant_conv (1x1) -> moments; DiagonalGaussianDistribution ----
    moments = jnp.dot(cast(qw_ref[...]), cast(henc),
                      preferred_element_type=jnp.float32) + qb_ref[...]
    mean = moments[:embed_dim]
    logvar = jnp.clip(moments[embed_dim:], -30.0, 20.0)
    if sample_posterior:
        z = mean + jnp.exp(0.5 * logvar) * noise_ref[...]   # posterior.sample()
    else:
        z = mean                                            # posterior.mode()

    # ---- post_quant_conv (1x1) + decoder (MyDecoder stand-in) ----
    zq = jnp.dot(cast(pqw_ref[...]), cast(z),
                 preferred_element_type=jnp.float32) + pqb_ref[...]
    d1 = silu(conv3x3(zq, dw1_ref, db1_ref))
    dec = conv3x3(d1, dw2_ref, db2_ref)

    # Lane-dense stores: last dim = H*W pixels (multiple of 128).
    dec_ref[...] = dec.astype(dec_ref.dtype)
    mean_ref[...] = mean.astype(mean_ref.dtype)
    logvar_ref[...] = logvar.astype(logvar_ref.dtype)


# ---------------------------------------------------------------------------
# Wrapper (layout plumbing only — pure reshapes, no transposes of activations)
# ---------------------------------------------------------------------------
def _conv_w(w):
    # PyTorch (C_out, C_in, 3, 3) -> (9, C_out, C_in), tap index k = ky*3 + kx.
    c_out, c_in = w.shape[0], w.shape[1]
    return jnp.transpose(w, (2, 3, 0, 1)).reshape(9, c_out, c_in)


def _bias(b):
    return b.reshape(-1, 1)


def _tap_masks(height, width):
    # Per-tap border/wrap masks for the in-kernel shifted 3x3 gather.
    h_idx = jnp.repeat(jnp.arange(height), width)
    w_idx = jnp.tile(jnp.arange(width), height)
    masks = []
    for k in range(9):
        ddy, ddx = k // 3 - 1, k % 3 - 1
        m = ((h_idx + ddy >= 0) & (h_idx + ddy < height) &
             (w_idx + ddx >= 0) & (w_idx + ddx < width))
        masks.append(m)
    return jnp.stack(masks).astype(jnp.float32).reshape(9, 1, height * width)


def _replicated_spec(shape):
    # Constant block index -> Pallas fetches once and reuses across grid steps.
    ndim = len(shape)

    def idx(b):
        return (0,) * ndim

    return pl.BlockSpec(shape, idx)


@functools.partial(jax.jit, static_argnames=("embed_dim", "sample_posterior"))
def cautoencoder_forward(params, x, noise, embed_dim, sample_posterior=True):
    """x: (N, C_in, H, W) NCHW.  Returns (dec, (mean, logvar)), all NCHW."""
    n, c_in, height, width = x.shape
    pixels = height * width

    x_flat = x.reshape(n, c_in, pixels)
    noise_flat = noise.reshape(n, embed_dim, pixels)
    masks = _tap_masks(height, width)

    ew1, eb1 = _conv_w(params["enc_w1"]), _bias(params["enc_b1"])
    ew2, eb2 = _conv_w(params["enc_w2"]), _bias(params["enc_b2"])
    qw = params["quant_w"][:, :, 0, 0]
    qb = _bias(params["quant_b"])
    pqw = params["pq_w"][:, :, 0, 0]
    pqb = _bias(params["pq_b"])
    dw1, db1 = _conv_w(params["dec_w1"]), _bias(params["dec_b1"])
    dw2, db2 = _conv_w(params["dec_w2"]), _bias(params["dec_b2"])
    out_ch = dw2.shape[1]

    weights = (ew1, eb1, ew2, eb2, qw, qb, pqw, pqb, dw1, db1, dw2, db2)

    kernel = functools.partial(
        _cautoencoder_kernel, width=width, embed_dim=embed_dim,
        sample_posterior=sample_posterior, mxu_dtype=MXU_DTYPE)

    grid_spec = pltpu.PrefetchScalarGridSpec(
        num_scalar_prefetch=0,
        grid=(n,),
        in_specs=[
            _replicated_spec(masks.shape),
            pl.BlockSpec((None, c_in, pixels), lambda b: (b, 0, 0)),
            pl.BlockSpec((None, embed_dim, pixels), lambda b: (b, 0, 0)),
        ] + [_replicated_spec(w.shape) for w in weights],
        out_specs=[
            pl.BlockSpec((None, out_ch, pixels), lambda b: (b, 0, 0)),
            pl.BlockSpec((None, embed_dim, pixels), lambda b: (b, 0, 0)),
            pl.BlockSpec((None, embed_dim, pixels), lambda b: (b, 0, 0)),
        ],
    )

    dec, mean, logvar = pl.pallas_call(
        kernel,
        out_shape=(
            jax.ShapeDtypeStruct((n, out_ch, pixels), jnp.float32),
            jax.ShapeDtypeStruct((n, embed_dim, pixels), jnp.float32),
            jax.ShapeDtypeStruct((n, embed_dim, pixels), jnp.float32),
        ),
        grid_spec=grid_spec,
        compiler_params=pltpu.CompilerParams(
            dimension_semantics=("parallel",)),
    )(masks, x_flat, noise_flat, *weights)

    dec = dec.reshape(n, out_ch, height, width)
    mean = mean.reshape(n, embed_dim, height, width)
    logvar = logvar.reshape(n, embed_dim, height, width)
    return dec, (mean, logvar)


# ---------------------------------------------------------------------------
# Parameters (PyTorch layouts: Conv2d weight (C_out, C_in, kH, kW))
# ---------------------------------------------------------------------------
def init_params(key, in_channels, ch, z_channels, embed_dim, out_ch):
    ks = jax.random.split(key, 12)
    p = {}
    scale = 0.05
    # encoder (MyEncoder stand-in)
    p["enc_w1"] = jax.random.normal(ks[0], (ch, in_channels, 3, 3), jnp.float32) * scale
    p["enc_b1"] = jax.random.normal(ks[1], (ch,), jnp.float32) * scale
    p["enc_w2"] = jax.random.normal(ks[2], (2 * z_channels, ch, 3, 3), jnp.float32) * scale
    p["enc_b2"] = jax.random.normal(ks[3], (2 * z_channels,), jnp.float32) * scale
    # quant_conv: Conv2d(2*z_channels, 2*embed_dim, 1)
    p["quant_w"] = jax.random.normal(ks[4], (2 * embed_dim, 2 * z_channels, 1, 1), jnp.float32) * scale
    p["quant_b"] = jax.random.normal(ks[5], (2 * embed_dim,), jnp.float32) * scale
    # post_quant_conv: Conv2d(embed_dim, z_channels, 1)
    p["pq_w"] = jax.random.normal(ks[6], (z_channels, embed_dim, 1, 1), jnp.float32) * scale
    p["pq_b"] = jax.random.normal(ks[7], (z_channels,), jnp.float32) * scale
    # decoder (MyDecoder stand-in)
    p["dec_w1"] = jax.random.normal(ks[8], (ch, z_channels, 3, 3), jnp.float32) * scale
    p["dec_b1"] = jax.random.normal(ks[9], (ch,), jnp.float32) * scale
    p["dec_w2"] = jax.random.normal(ks[10], (out_ch, ch, 3, 3), jnp.float32) * scale
    p["dec_b2"] = jax.random.normal(ks[11], (out_ch,), jnp.float32) * scale
    return p


# ---------------------------------------------------------------------------
# Main
# ---------------------------------------------------------------------------
if __name__ == "__main__":
    batch, in_channels, H, W = 2, 4, 16, 16
    ch, z_channels, embed_dim, out_ch = 32, 4, 4, 4

    key = jax.random.PRNGKey(0)
    k_par, k_x, k_noise = jax.random.split(key, 3)

    params = init_params(k_par, in_channels, ch, z_channels, embed_dim, out_ch)
    x = jax.random.normal(k_x, (batch, in_channels, H, W), jnp.float32)
    noise = jax.random.normal(k_noise, (batch, embed_dim, H, W), jnp.float32)

    dec, (mean, logvar) = cautoencoder_forward(
        params, x, noise, embed_dim=embed_dim, sample_posterior=True)
    jax.block_until_ready(dec)
    jax.block_until_ready(mean)
    jax.block_until_ready(logvar)

    assert dec.shape == (batch, out_ch, H, W)
    assert mean.shape == (batch, embed_dim, H, W)
    assert logvar.shape == (batch, embed_dim, H, W)
    assert bool(jnp.isfinite(dec).all())
    assert bool(jnp.isfinite(mean).all())
    assert bool(jnp.isfinite(logvar).all())
    print("KERNEL_OK")
</pallas_src>

<mosaic_0001>
module attributes {stable_mosaic.version = 11 : i64} {
  func.func @_cautoencoder_kernel(%arg0: i32, %arg1: memref<9x1x256xf32, #tpu.memory_space<vmem>>, %arg2: memref<1x4x256xf32, #tpu.memory_space<vmem>>, %arg3: memref<1x4x256xf32, #tpu.memory_space<vmem>>, %arg4: memref<9x32x4xf32, #tpu.memory_space<vmem>>, %arg5: memref<32x1xf32, #tpu.memory_space<vmem>>, %arg6: memref<9x8x32xf32, #tpu.memory_space<vmem>>, %arg7: memref<8x1xf32, #tpu.memory_space<vmem>>, %arg8: memref<8x8xf32, #tpu.memory_space<vmem>>, %arg9: memref<8x1xf32, #tpu.memory_space<vmem>>, %arg10: memref<4x4xf32, #tpu.memory_space<vmem>>, %arg11: memref<4x1xf32, #tpu.memory_space<vmem>>, %arg12: memref<9x32x4xf32, #tpu.memory_space<vmem>>, %arg13: memref<32x1xf32, #tpu.memory_space<vmem>>, %arg14: memref<9x4x32xf32, #tpu.memory_space<vmem>>, %arg15: memref<4x1xf32, #tpu.memory_space<vmem>>, %arg16: memref<1x4x256xf32, #tpu.memory_space<vmem>>, %arg17: memref<1x4x256xf32, #tpu.memory_space<vmem>>, %arg18: memref<1x4x256xf32, #tpu.memory_space<vmem>>) attributes {dimension_semantics = [#tpu.dimension_semantics<parallel>], iteration_bounds = array<i64: 2>, scalar_prefetch = 0 : i64, scratch_operands = 0 : i64, tpu.core_type = #tpu.core_type<tc>, window_params = [{pipeline_mode = #tpu.pipeline_mode<synchronous>, transform_indices = @transform_0, window_bounds = array<i64: 9, 1, 256>}, {transform_indices = @transform_1, window_bounds = array<i64: 1, 4, 256>}, {transform_indices = @transform_2, window_bounds = array<i64: 1, 4, 256>}, {pipeline_mode = #tpu.pipeline_mode<synchronous>, transform_indices = @transform_3, window_bounds = array<i64: 9, 32, 4>}, {pipeline_mode = #tpu.pipeline_mode<synchronous>, transform_indices = @transform_4, window_bounds = array<i64: 32, 1>}, {pipeline_mode = #tpu.pipeline_mode<synchronous>, transform_indices = @transform_5, window_bounds = array<i64: 9, 8, 32>}, {pipeline_mode = #tpu.pipeline_mode<synchronous>, transform_indices = @transform_6, window_bounds = array<i64: 8, 1>}, {pipeline_mode = #tpu.pipeline_mode<synchronous>, transform_indices = @transform_7, window_bounds = array<i64: 8, 8>}, {pipeline_mode = #tpu.pipeline_mode<synchronous>, transform_indices = @transform_8, window_bounds = array<i64: 8, 1>}, {pipeline_mode = #tpu.pipeline_mode<synchronous>, transform_indices = @transform_9, window_bounds = array<i64: 4, 4>}, {pipeline_mode = #tpu.pipeline_mode<synchronous>, transform_indices = @transform_10, window_bounds = array<i64: 4, 1>}, {pipeline_mode = #tpu.pipeline_mode<synchronous>, transform_indices = @transform_11, window_bounds = array<i64: 9, 32, 4>}, {pipeline_mode = #tpu.pipeline_mode<synchronous>, transform_indices = @transform_12, window_bounds = array<i64: 32, 1>}, {pipeline_mode = #tpu.pipeline_mode<synchronous>, transform_indices = @transform_13, window_bounds = array<i64: 9, 4, 32>}, {pipeline_mode = #tpu.pipeline_mode<synchronous>, transform_indices = @transform_14, window_bounds = array<i64: 4, 1>}, {transform_indices = @transform_15, window_bounds = array<i64: 1, 4, 256>}, {transform_indices = @transform_16, window_bounds = array<i64: 1, 4, 256>}, {transform_indices = @transform_17, window_bounds = array<i64: 1, 4, 256>}]} {
    %c0 = arith.constant 0 : index
    %c0_0 = arith.constant 0 : index
    %c0_1 = arith.constant 0 : index
    %0 = vector.load %arg2[%c0, %c0_0, %c0_1] : memref<1x4x256xf32, #tpu.memory_space<vmem>>, vector<1x4x256xf32>
    %1 = vector.shape_cast %0 : vector<1x4x256xf32> to vector<4x256xf32>
    %c4 = arith.constant 4 : index
    %c0_2 = arith.constant 0 : index
    %c0_3 = arith.constant 0 : index
    %2 = vector.load %arg4[%c4, %c0_2, %c0_3] : memref<9x32x4xf32, #tpu.memory_space<vmem>>, vector<1x32x4xf32>
    %3 = vector.shape_cast %2 : vector<1x32x4xf32> to vector<32x4xf32>
    %cst = arith.constant dense<0.000000e+00> : vector<32x256xf32>
    %4 = tpu.matmul %3, %1, %cst {dimension_numbers = #tpu.dot_dimension_numbers<[1], [0], [0], [1], [0, 0, 1, 1], [], []>} : vector<32x4xf32>, vector<4x256xf32>, vector<32x256xf32> -> vector<32x256xf32>
    %c17_i32 = arith.constant 17 : i32
    %5 = tpu.dynamic_rotate %1 by %c17_i32 dim 1 : vector<4x256xf32>, i32 -> vector<4x256xf32>
    %c0_4 = arith.constant 0 : index
    %c0_5 = arith.constant 0 : index
    %c0_6 = arith.constant 0 : index
    %6 = vector.load %arg1[%c0_4, %c0_5, %c0_6] : memref<9x1x256xf32, #tpu.memory_space<vmem>>, vector<1x1x256xf32>
    %7 = vector.shape_cast %6 : vector<1x1x256xf32> to vector<1x256xf32>
    %8 = vector.broadcast %7 : vector<1x256xf32> to vector<4x256xf32>
    %9 = arith.mulf %5, %8 : vector<4x256xf32>
    %c0_7 = arith.constant 0 : index
    %c0_8 = arith.constant 0 : index
    %c0_9 = arith.constant 0 : index
    %10 = vector.load %arg4[%c0_7, %c0_8, %c0_9] : memref<9x32x4xf32, #tpu.memory_space<vmem>>, vector<1x32x4xf32>
    %11 = vector.shape_cast %10 : vector<1x32x4xf32> to vector<32x4xf32>
    %cst_10 = arith.constant dense<0.000000e+00> : vector<32x256xf32>
    %12 = tpu.matmul %11, %9, %cst_10 {dimension_numbers = #tpu.dot_dimension_numbers<[1], [0], [0], [1], [0, 0, 1, 1], [], []>} : vector<32x4xf32>, vector<4x256xf32>, vector<32x256xf32> -> vector<32x256xf32>
    %13 = arith.addf %4, %12 : vector<32x256xf32>
    %c16_i32 = arith.constant 16 : i32
    %14 = tpu.dynamic_rotate %1 by %c16_i32 dim 1 : vector<4x256xf32>, i32 -> vector<4x256xf32>
    %c1 = arith.constant 1 : index
    %c0_11 = arith.constant 0 : index
    %c0_12 = arith.constant 0 : index
    %15 = vector.load %arg1[%c1, %c0_11, %c0_12] : memref<9x1x256xf32, #tpu.memory_space<vmem>>, vector<1x1x256xf32>
    %16 = vector.shape_cast %15 : vector<1x1x256xf32> to vector<1x256xf32>
    %17 = vector.broadcast %16 : vector<1x256xf32> to vector<4x256xf32>
    %18 = arith.mulf %14, %17 : vector<4x256xf32>
    %c1_13 = arith.constant 1 : index
    %c0_14 = arith.constant 0 : index
    %c0_15 = arith.constant 0 : index
    %19 = vector.load %arg4[%c1_13, %c0_14, %c0_15] : memref<9x32x4xf32, #tpu.memory_space<vmem>>, vector<1x32x4xf32>
    %20 = vector.shape_cast %19 : vector<1x32x4xf32> to vector<32x4xf32>
    %cst_16 = arith.constant dense<0.000000e+00> : vector<32x256xf32>
    %21 = tpu.matmul %20, %18, %cst_16 {dimension_numbers = #tpu.dot_dimension_numbers<[1], [0], [0], [1], [0, 0, 1, 1], [], []>} : vector<32x4xf32>, vector<4x256xf32>, vector<32x256xf32> -> vector<32x256xf32>
    %22 = arith.addf %13, %21 : vector<32x256xf32>
    %c15_i32 = arith.constant 15 : i32
    %23 = tpu.dynamic_rotate %1 by %c15_i32 dim 1 : vector<4x256xf32>, i32 -> vector<4x256xf32>
    %c2 = arith.constant 2 : index
    %c0_17 = arith.constant 0 : index
    %c0_18 = arith.constant 0 : index
    %24 = vector.load %arg1[%c2, %c0_17, %c0_18] : memref<9x1x256xf32, #tpu.memory_space<vmem>>, vector<1x1x256xf32>
    %25 = vector.shape_cast %24 : vector<1x1x256xf32> to vector<1x256xf32>
    %26 = vector.broadcast %25 : vector<1x256xf32> to vector<4x256xf32>
    %27 = arith.mulf %23, %26 : vector<4x256xf32>
    %c2_19 = arith.constant 2 : index
    %c0_20 = arith.constant 0 : index
    %c0_21 = arith.constant 0 : index
    %28 = vector.load %arg4[%c2_19, %c0_20, %c0_21] : memref<9x32x4xf32, #tpu.memory_space<vmem>>, vector<1x32x4xf32>
    %29 = vector.shape_cast %28 : vector<1x32x4xf32> to vector<32x4xf32>
    %cst_22 = arith.constant dense<0.000000e+00> : vector<32x256xf32>
    %30 = tpu.matmul %29, %27, %cst_22 {dimension_numbers = #tpu.dot_dimension_numbers<[1], [0], [0], [1], [0, 0, 1, 1], [], []>} : vector<32x4xf32>, vector<4x256xf32>, vector<32x256xf32> -> vector<32x256xf32>
    %31 = arith.addf %22, %30 : vector<32x256xf32>
    %c1_i32 = arith.constant 1 : i32
    %32 = tpu.dynamic_rotate %1 by %c1_i32 dim 1 : vector<4x256xf32>, i32 -> vector<4x256xf32>
    %c3 = arith.constant 3 : index
    %c0_23 = arith.constant 0 : index
    %c0_24 = arith.constant 0 : index
    %33 = vector.load %arg1[%c3, %c0_23, %c0_24] : memref<9x1x256xf32, #tpu.memory_space<vmem>>, vector<1x1x256xf32>
    %34 = vector.shape_cast %33 : vector<1x1x256xf32> to vector<1x256xf32>
    %35 = vector.broadcast %34 : vector<1x256xf32> to vector<4x256xf32>
    %36 = arith.mulf %32, %35 : vector<4x256xf32>
    %c3_25 = arith.constant 3 : index
    %c0_26 = arith.constant 0 : index
    %c0_27 = arith.constant 0 : index
    %37 = vector.load %arg4[%c3_25, %c0_26, %c0_27] : memref<9x32x4xf32, #tpu.memory_space<vmem>>, vector<1x32x4xf32>
    %38 = vector.shape_cast %37 : vector<1x32x4xf32> to vector<32x4xf32>
    %cst_28 = arith.constant dense<0.000000e+00> : vector<32x256xf32>
    %39 = tpu.matmul %38, %36, %cst_28 {dimension_numbers = #tpu.dot_dimension_numbers<[1], [0], [0], [1], [0, 0, 1, 1], [], []>} : vector<32x4xf32>, vector<4x256xf32>, vector<32x256xf32> -> vector<32x256xf32>
    %40 = arith.addf %31, %39 : vector<32x256xf32>
    %c255_i32 = arith.constant 255 : i32
    %41 = tpu.dynamic_rotate %1 by %c255_i32 dim 1 : vector<4x256xf32>, i32 -> vector<4x256xf32>
    %c5 = arith.constant 5 : index
    %c0_29 = arith.constant 0 : index
    %c0_30 = arith.constant 0 : index
    %42 = vector.load %arg1[%c5, %c0_29, %c0_30] : memref<9x1x256xf32, #tpu.memory_space<vmem>>, vector<1x1x256xf32>
    %43 = vector.shape_cast %42 : vector<1x1x256xf32> to vector<1x256xf32>
    %44 = vector.broadcast %43 : vector<1x256xf32> to vector<4x256xf32>
    %45 = arith.mulf %41, %44 : vector<4x256xf32>
    %c5_31 = arith.constant 5 : index
    %c0_32 = arith.constant 0 : index
    %c0_33 = arith.constant 0 : index
    %46 = vector.load %arg4[%c5_31, %c0_32, %c0_33] : memref<9x32x4xf32, #tpu.memory_space<vmem>>, vector<1x32x4xf32>
    %47 = vector.shape_cast %46 : vector<1x32x4xf32> to vector<32x4xf32>
    %cst_34 = arith.constant dense<0.000000e+00> : vector<32x256xf32>
    %48 = tpu.matmul %47, %45, %cst_34 {dimension_numbers = #tpu.dot_dimension_numbers<[1], [0], [0], [1], [0, 0, 1, 1], [], []>} : vector<32x4xf32>, vector<4x256xf32>, vector<32x256xf32> -> vector<32x256xf32>
    %49 = arith.addf %40, %48 : vector<32x256xf32>
    %c241_i32 = arith.constant 241 : i32
    %50 = tpu.dynamic_rotate %1 by %c241_i32 dim 1 : vector<4x256xf32>, i32 -> vector<4x256xf32>
    %c6 = arith.constant 6 : index
    %c0_35 = arith.constant 0 : index
    %c0_36 = arith.constant 0 : index
    %51 = vector.load %arg1[%c6, %c0_35, %c0_36] : memref<9x1x256xf32, #tpu.memory_space<vmem>>, vector<1x1x256xf32>
    %52 = vector.shape_cast %51 : vector<1x1x256xf32> to vector<1x256xf32>
    %53 = vector.broadcast %52 : vector<1x256xf32> to vector<4x256xf32>
    %54 = arith.mulf %50, %53 : vector<4x256xf32>
    %c6_37 = arith.constant 6 : index
    %c0_38 = arith.constant 0 : index
    %c0_39 = arith.constant 0 : index
    %55 = vector.load %arg4[%c6_37, %c0_38, %c0_39] : memref<9x32x4xf32, #tpu.memory_space<vmem>>, vector<1x32x4xf32>
    %56 = vector.shape_cast %55 : vector<1x32x4xf32> to vector<32x4xf32>
    %cst_40 = arith.constant dense<0.000000e+00> : vector<32x256xf32>
    %57 = tpu.matmul %56, %54, %cst_40 {dimension_numbers = #tpu.dot_dimension_numbers<[1], [0], [0], [1], [0, 0, 1, 1], [], []>} : vector<32x4xf32>, vector<4x256xf32>, vector<32x256xf32> -> vector<32x256xf32>
    %58 = arith.addf %49, %57 : vector<32x256xf32>
    %c240_i32 = arith.constant 240 : i32
    %59 = tpu.dynamic_rotate %1 by %c240_i32 dim 1 : vector<4x256xf32>, i32 -> vector<4x256xf32>
    %c7 = arith.constant 7 : index
    %c0_41 = arith.constant 0 : index
    %c0_42 = arith.constant 0 : index
    %60 = vector.load %arg1[%c7, %c0_41, %c0_42] : memref<9x1x256xf32, #tpu.memory_space<vmem>>, vector<1x1x256xf32>
    %61 = vector.shape_cast %60 : vector<1x1x256xf32> to vector<1x256xf32>
    %62 = vector.broadcast %61 : vector<1x256xf32> to vector<4x256xf32>
    %63 = arith.mulf %59, %62 : vector<4x256xf32>
    %c7_43 = arith.constant 7 : index
    %c0_44 = arith.constant 0 : index
    %c0_45 = arith.constant 0 : index
    %64 = vector.load %arg4[%c7_43, %c0_44, %c0_45] : memref<9x32x4xf32, #tpu.memory_space<vmem>>, vector<1x32x4xf32>
    %65 = vector.shape_cast %64 : vector<1x32x4xf32> to vector<32x4xf32>
    %cst_46 = arith.constant dense<0.000000e+00> : vector<32x256xf32>
    %66 = tpu.matmul %65, %63, %cst_46 {dimension_numbers = #tpu.dot_dimension_numbers<[1], [0], [0], [1], [0, 0, 1, 1], [], []>} : vector<32x4xf32>, vector<4x256xf32>, vector<32x256xf32> -> vector<32x256xf32>
    %67 = arith.addf %58, %66 : vector<32x256xf32>
    %c239_i32 = arith.constant 239 : i32
    %68 = tpu.dynamic_rotate %1 by %c239_i32 dim 1 : vector<4x256xf32>, i32 -> vector<4x256xf32>
    %c8 = arith.constant 8 : index
    %c0_47 = arith.constant 0 : index
    %c0_48 = arith.constant 0 : index
    %69 = vector.load %arg1[%c8, %c0_47, %c0_48] : memref<9x1x256xf32, #tpu.memory_space<vmem>>, vector<1x1x256xf32>
    %70 = vector.shape_cast %69 : vector<1x1x256xf32> to vector<1x256xf32>
    %71 = vector.broadcast %70 : vector<1x256xf32> to vector<4x256xf32>
    %72 = arith.mulf %68, %71 : vector<4x256xf32>
    %c8_49 = arith.constant 8 : index
    %c0_50 = arith.constant 0 : index
    %c0_51 = arith.constant 0 : index
    %73 = vector.load %arg4[%c8_49, %c0_50, %c0_51] : memref<9x32x4xf32, #tpu.memory_space<vmem>>, vector<1x32x4xf32>
    %74 = vector.shape_cast %73 : vector<1x32x4xf32> to vector<32x4xf32>
    %cst_52 = arith.constant dense<0.000000e+00> : vector<32x256xf32>
    %75 = tpu.matmul %74, %72, %cst_52 {dimension_numbers = #tpu.dot_dimension_numbers<[1], [0], [0], [1], [0, 0, 1, 1], [], []>} : vector<32x4xf32>, vector<4x256xf32>, vector<32x256xf32> -> vector<32x256xf32>
    %76 = arith.addf %67, %75 : vector<32x256xf32>
    %c0_53 = arith.constant 0 : index
    %c0_54 = arith.constant 0 : index
    %77 = vector.load %arg5[%c0_53, %c0_54] : memref<32x1xf32, #tpu.memory_space<vmem>>, vector<32x1xf32>
    %78 = vector.broadcast %77 : vector<32x1xf32> to vector<32x256xf32>
    %79 = arith.addf %76, %78 : vector<32x256xf32>
    %cst_55 = arith.constant 0.000000e+00 : f32
    %80 = vector.broadcast %cst_55 : f32 to vector<32x256xf32>
    %81 = arith.subf %80, %79 : vector<32x256xf32>
    %82 = math.exp %81 : vector<32x256xf32>
    %cst_56 = arith.constant 1.000000e+00 : f32
    %83 = vector.broadcast %cst_56 : f32 to vector<32x256xf32>
    %84 = arith.addf %83, %82 : vector<32x256xf32>
    %85 = tpu.reciprocal %84 {approx = true} : vector<32x256xf32> -> vector<32x256xf32>
    %86 = arith.mulf %79, %85 : vector<32x256xf32>
    %c4_57 = arith.constant 4 : index
    %c0_58 = arith.constant 0 : index
    %c0_59 = arith.constant 0 : index
    %87 = vector.load %arg6[%c4_57, %c0_58, %c0_59] : memref<9x8x32xf32, #tpu.memory_space<vmem>>, vector<1x8x32xf32>
    %88 = vector.shape_cast %87 : vector<1x8x32xf32> to vector<8x32xf32>
    %cst_60 = arith.constant dense<0.000000e+00> : vector<8x256xf32>
    %89 = tpu.matmul %88, %86, %cst_60 {dimension_numbers = #tpu.dot_dimension_numbers<[1], [0], [0], [1], [0, 0, 1, 1], [], []>} : vector<8x32xf32>, vector<32x256xf32>, vector<8x256xf32> -> vector<8x256xf32>
    %c17_i32_61 = arith.constant 17 : i32
    %90 = tpu.dynamic_rotate %86 by %c17_i32_61 dim 1 : vector<32x256xf32>, i32 -> vector<32x256xf32>
    %c0_62 = arith.constant 0 : index
    %c0_63 = arith.constant 0 : index
    %c0_64 = arith.constant 0 : index
    %91 = vector.load %arg1[%c0_62, %c0_63, %c0_64] : memref<9x1x256xf32, #tpu.memory_space<vmem>>, vector<1x1x256xf32>
    %92 = vector.shape_cast %91 : vector<1x1x256xf32> to vector<1x256xf32>
    %93 = vector.broadcast %92 : vector<1x256xf32> to vector<32x256xf32>
    %94 = arith.mulf %90, %93 : vector<32x256xf32>
    %c0_65 = arith.constant 0 : index
    %c0_66 = arith.constant 0 : index
    %c0_67 = arith.constant 0 : index
    %95 = vector.load %arg6[%c0_65, %c0_66, %c0_67] : memref<9x8x32xf32, #tpu.memory_space<vmem>>, vector<1x8x32xf32>
    %96 = vector.shape_cast %95 : vector<1x8x32xf32> to vector<8x32xf32>
    %cst_68 = arith.constant dense<0.000000e+00> : vector<8x256xf32>
    %97 = tpu.matmul %96, %94, %cst_68 {dimension_numbers = #tpu.dot_dimension_numbers<[1], [0], [0], [1], [0, 0, 1, 1], [], []>} : vector<8x32xf32>, vector<32x256xf32>, vector<8x256xf32> -> vector<8x256xf32>
    %98 = arith.addf %89, %97 : vector<8x256xf32>
    %c16_i32_69 = arith.constant 16 : i32
    %99 = tpu.dynamic_rotate %86 by %c16_i32_69 dim 1 : vector<32x256xf32>, i32 -> vector<32x256xf32>
    %c1_70 = arith.constant 1 : index
    %c0_71 = arith.constant 0 : index
    %c0_72 = arith.constant 0 : index
    %100 = vector.load %arg1[%c1_70, %c0_71, %c0_72] : memref<9x1x256xf32, #tpu.memory_space<vmem>>, vector<1x1x256xf32>
    %101 = vector.shape_cast %100 : vector<1x1x256xf32> to vector<1x256xf32>
    %102 = vector.broadcast %101 : vector<1x256xf32> to vector<32x256xf32>
    %103 = arith.mulf %99, %102 : vector<32x256xf32>
    %c1_73 = arith.constant 1 : index
    %c0_74 = arith.constant 0 : index
    %c0_75 = arith.constant 0 : index
    %104 = vector.load %arg6[%c1_73, %c0_74, %c0_75] : memref<9x8x32xf32, #tpu.memory_space<vmem>>, vector<1x8x32xf32>
    %105 = vector.shape_cast %104 : vector<1x8x32xf32> to vector<8x32xf32>
    %cst_76 = arith.constant dense<0.000000e+00> : vector<8x256xf32>
    %106 = tpu.matmul %105, %103, %cst_76 {dimension_numbers = #tpu.dot_dimension_numbers<[1], [0], [0], [1], [0, 0, 1, 1], [], []>} : vector<8x32xf32>, vector<32x256xf32>, vector<8x256xf32> -> vector<8x256xf32>
    %107 = arith.addf %98, %106 : vector<8x256xf32>
    %c15_i32_77 = arith.constant 15 : i32
    %108 = tpu.dynamic_rotate %86 by %c15_i32_77 dim 1 : vector<32x256xf32>, i32 -> vector<32x256xf32>
    %c2_78 = arith.constant 2 : index
    %c0_79 = arith.constant 0 : index
    %c0_80 = arith.constant 0 : index
    %109 = vector.load %arg1[%c2_78, %c0_79, %c0_80] : memref<9x1x256xf32, #tpu.memory_space<vmem>>, vector<1x1x256xf32>
    %110 = vector.shape_cast %109 : vector<1x1x256xf32> to vector<1x256xf32>
    %111 = vector.broadcast %110 : vector<1x256xf32> to vector<32x256xf32>
    %112 = arith.mulf %108, %111 : vector<32x256xf32>
    %c2_81 = arith.constant 2 : index
    %c0_82 = arith.constant 0 : index
    %c0_83 = arith.constant 0 : index
    %113 = vector.load %arg6[%c2_81, %c0_82, %c0_83] : memref<9x8x32xf32, #tpu.memory_space<vmem>>, vector<1x8x32xf32>
    %114 = vector.shape_cast %113 : vector<1x8x32xf32> to vector<8x32xf32>
    %cst_84 = arith.constant dense<0.000000e+00> : vector<8x256xf32>
    %115 = tpu.matmul %114, %112, %cst_84 {dimension_numbers = #tpu.dot_dimension_numbers<[1], [0], [0], [1], [0, 0, 1, 1], [], []>} : vector<8x32xf32>, vector<32x256xf32>, vector<8x256xf32> -> vector<8x256xf32>
    %116 = arith.addf %107, %115 : vector<8x256xf32>
    %c1_i32_85 = arith.constant 1 : i32
    %117 = tpu.dynamic_rotate %86 by %c1_i32_85 dim 1 : vector<32x256xf32>, i32 -> vector<32x256xf32>
    %c3_86 = arith.constant 3 : index
    %c0_87 = arith.constant 0 : index
    %c0_88 = arith.constant 0 : index
    %118 = vector.load %arg1[%c3_86, %c0_87, %c0_88] : memref<9x1x256xf32, #tpu.memory_space<vmem>>, vector<1x1x256xf32>
    %119 = vector.shape_cast %118 : vector<1x1x256xf32> to vector<1x256xf32>
    %120 = vector.broadcast %119 : vector<1x256xf32> to vector<32x256xf32>
    %121 = arith.mulf %117, %120 : vector<32x256xf32>
    %c3_89 = arith.constant 3 : index
    %c0_90 = arith.constant 0 : index
    %c0_91 = arith.constant 0 : index
    %122 = vector.load %arg6[%c3_89, %c0_90, %c0_91] : memref<9x8x32xf32, #tpu.memory_space<vmem>>, vector<1x8x32xf32>
    %123 = vector.shape_cast %122 : vector<1x8x32xf32> to vector<8x32xf32>
    %cst_92 = arith.constant dense<0.000000e+00> : vector<8x256xf32>
    %124 = tpu.matmul %123, %121, %cst_92 {dimension_numbers = #tpu.dot_dimension_numbers<[1], [0], [0], [1], [0, 0, 1, 1], [], []>} : vector<8x32xf32>, vector<32x256xf32>, vector<8x256xf32> -> vector<8x256xf32>
    %125 = arith.addf %116, %124 : vector<8x256xf32>
    %c255_i32_93 = arith.constant 255 : i32
    %126 = tpu.dynamic_rotate %86 by %c255_i32_93 dim 1 : vector<32x256xf32>, i32 -> vector<32x256xf32>
    %c5_94 = arith.constant 5 : index
    %c0_95 = arith.constant 0 : index
    %c0_96 = arith.constant 0 : index
    %127 = vector.load %arg1[%c5_94, %c0_95, %c0_96] : memref<9x1x256xf32, #tpu.memory_space<vmem>>, vector<1x1x256xf32>
    %128 = vector.shape_cast %127 : vector<1x1x256xf32> to vector<1x256xf32>
    %129 = vector.broadcast %128 : vector<1x256xf32> to vector<32x256xf32>
    %130 = arith.mulf %126, %129 : vector<32x256xf32>
    %c5_97 = arith.constant 5 : index
    %c0_98 = arith.constant 0 : index
    %c0_99 = arith.constant 0 : index
    %131 = vector.load %arg6[%c5_97, %c0_98, %c0_99] : memref<9x8x32xf32, #tpu.memory_space<vmem>>, vector<1x8x32xf32>
    %132 = vector.shape_cast %131 : vector<1x8x32xf32> to vector<8x32xf32>
    %cst_100 = arith.constant dense<0.000000e+00> : vector<8x256xf32>
    %133 = tpu.matmul %132, %130, %cst_100 {dimension_numbers = #tpu.dot_dimension_numbers<[1], [0], [0], [1], [0, 0, 1, 1], [], []>} : vector<8x32xf32>, vector<32x256xf32>, vector<8x256xf32> -> vector<8x256xf32>
    %134 = arith.addf %125, %133 : vector<8x256xf32>
    %c241_i32_101 = arith.constant 241 : i32
    %135 = tpu.dynamic_rotate %86 by %c241_i32_101 dim 1 : vector<32x256xf32>, i32 -> vector<32x256xf32>
    %c6_102 = arith.constant 6 : index
    %c0_103 = arith.constant 0 : index
    %c0_104 = arith.constant 0 : index
    %136 = vector.load %arg1[%c6_102, %c0_103, %c0_104] : memref<9x1x256xf32, #tpu.memory_space<vmem>>, vector<1x1x256xf32>
    %137 = vector.shape_cast %136 : vector<1x1x256xf32> to vector<1x256xf32>
    %138 = vector.broadcast %137 : vector<1x256xf32> to vector<32x256xf32>
    %139 = arith.mulf %135, %138 : vector<32x256xf32>
    %c6_105 = arith.constant 6 : index
    %c0_106 = arith.constant 0 : index
    %c0_107 = arith.constant 0 : index
    %140 = vector.load %arg6[%c6_105, %c0_106, %c0_107] : memref<9x8x32xf32, #tpu.memory_space<vmem>>, vector<1x8x32xf32>
    %141 = vector.shape_cast %140 : vector<1x8x32xf32> to vector<8x32xf32>
    %cst_108 = arith.constant dense<0.000000e+00> : vector<8x256xf32>
    %142 = tpu.matmul %141, %139, %cst_108 {dimension_numbers = #tpu.dot_dimension_numbers<[1], [0], [0], [1], [0, 0, 1, 1], [], []>} : vector<8x32xf32>, vector<32x256xf32>, vector<8x256xf32> -> vector<8x256xf32>
    %143 = arith.addf %134, %142 : vector<8x256xf32>
    %c240_i32_109 = arith.constant 240 : i32
    %144 = tpu.dynamic_rotate %86 by %c240_i32_109 dim 1 : vector<32x256xf32>, i32 -> vector<32x256xf32>
    %c7_110 = arith.constant 7 : index
    %c0_111 = arith.constant 0 : index
    %c0_112 = arith.constant 0 : index
    %145 = vector.load %arg1[%c7_110, %c0_111, %c0_112] : memref<9x1x256xf32, #tpu.memory_space<vmem>>, vector<1x1x256xf32>
    %146 = vector.shape_cast %145 : vector<1x1x256xf32> to vector<1x256xf32>
    %147 = vector.broadcast %146 : vector<1x256xf32> to vector<32x256xf32>
    %148 = arith.mulf %144, %147 : vector<32x256xf32>
    %c7_113 = arith.constant 7 : index
    %c0_114 = arith.constant 0 : index
    %c0_115 = arith.constant 0 : index
    %149 = vector.load %arg6[%c7_113, %c0_114, %c0_115] : memref<9x8x32xf32, #tpu.memory_space<vmem>>, vector<1x8x32xf32>
    %150 = vector.shape_cast %149 : vector<1x8x32xf32> to vector<8x32xf32>
    %cst_116 = arith.constant dense<0.000000e+00> : vector<8x256xf32>
    %151 = tpu.matmul %150, %148, %cst_116 {dimension_numbers = #tpu.dot_dimension_numbers<[1], [0], [0], [1], [0, 0, 1, 1], [], []>} : vector<8x32xf32>, vector<32x256xf32>, vector<8x256xf32> -> vector<8x256xf32>
    %152 = arith.addf %143, %151 : vector<8x256xf32>
    %c239_i32_117 = arith.constant 239 : i32
    %153 = tpu.dynamic_rotate %86 by %c239_i32_117 dim 1 : vector<32x256xf32>, i32 -> vector<32x256xf32>
    %c8_118 = arith.constant 8 : index
    %c0_119 = arith.constant 0 : index
    %c0_120 = arith.constant 0 : index
    %154 = vector.load %arg1[%c8_118, %c0_119, %c0_120] : memref<9x1x256xf32, #tpu.memory_space<vmem>>, vector<1x1x256xf32>
    %155 = vector.shape_cast %154 : vector<1x1x256xf32> to vector<1x256xf32>
    %156 = vector.broadcast %155 : vector<1x256xf32> to vector<32x256xf32>
    %157 = arith.mulf %153, %156 : vector<32x256xf32>
    %c8_121 = arith.constant 8 : index
    %c0_122 = arith.constant 0 : index
    %c0_123 = arith.constant 0 : index
    %158 = vector.load %arg6[%c8_121, %c0_122, %c0_123] : memref<9x8x32xf32, #tpu.memory_space<vmem>>, vector<1x8x32xf32>
    %159 = vector.shape_cast %158 : vector<1x8x32xf32> to vector<8x32xf32>
    %cst_124 = arith.constant dense<0.000000e+00> : vector<8x256xf32>
    %160 = tpu.matmul %159, %157, %cst_124 {dimension_numbers = #tpu.dot_dimension_numbers<[1], [0], [0], [1], [0, 0, 1, 1], [], []>} : vector<8x32xf32>, vector<32x256xf32>, vector<8x256xf32> -> vector<8x256xf32>
    %161 = arith.addf %152, %160 : vector<8x256xf32>
    %c0_125 = arith.constant 0 : index
    %c0_126 = arith.constant 0 : index
    %162 = vector.load %arg7[%c0_125, %c0_126] : memref<8x1xf32, #tpu.memory_space<vmem>>, vector<8x1xf32>
    %163 = vector.broadcast %162 : vector<8x1xf32> to vector<8x256xf32>
    %164 = arith.addf %161, %163 : vector<8x256xf32>
    %c0_127 = arith.constant 0 : index
    %c0_128 = arith.constant 0 : index
    %165 = vector.load %arg8[%c0_127, %c0_128] : memref<8x8xf32, #tpu.memory_space<vmem>>, vector<8x8xf32>
    %cst_129 = arith.constant dense<0.000000e+00> : vector<8x256xf32>
    %166 = tpu.matmul %165, %164, %cst_129 {dimension_numbers = #tpu.dot_dimension_numbers<[1], [0], [0], [1], [0, 0, 1, 1], [], []>} : vector<8x8xf32>, vector<8x256xf32>, vector<8x256xf32> -> vector<8x256xf32>
    %c0_130 = arith.constant 0 : index
    %c0_131 = arith.constant 0 : index
    %167 = vector.load %arg9[%c0_130, %c0_131] : memref<8x1xf32, #tpu.memory_space<vmem>>, vector<8x1xf32>
    %168 = vector.broadcast %167 : vector<8x1xf32> to vector<8x256xf32>
    %169 = arith.addf %166, %168 : vector<8x256xf32>
    %170 = vector.extract_strided_slice %169 {offsets = [0, 0], sizes = [4, 256], strides = [1, 1]} : vector<8x256xf32> to vector<4x256xf32>
    %171 = vector.extract_strided_slice %169 {offsets = [4, 0], sizes = [4, 256], strides = [1, 1]} : vector<8x256xf32> to vector<4x256xf32>
    %cst_132 = arith.constant -3.000000e+01 : f32
    %cst_133 = arith.constant 2.000000e+01 : f32
    %172 = vector.broadcast %cst_132 : f32 to vector<4x256xf32>
    %173 = arith.maximumf %172, %171 : vector<4x256xf32>
    %174 = vector.broadcast %cst_133 : f32 to vector<4x256xf32>
    %175 = arith.minimumf %174, %173 : vector<4x256xf32>
    %cst_134 = arith.constant 5.000000e-01 : f32
    %176 = vector.broadcast %cst_134 : f32 to vector<4x256xf32>
    %177 = arith.mulf %176, %175 : vector<4x256xf32>
    %178 = math.exp %177 : vector<4x256xf32>
    %c0_135 = arith.constant 0 : index
    %c0_136 = arith.constant 0 : index
    %c0_137 = arith.constant 0 : index
    %179 = vector.load %arg3[%c0_135, %c0_136, %c0_137] : memref<1x4x256xf32, #tpu.memory_space<vmem>>, vector<1x4x256xf32>
    %180 = vector.shape_cast %179 : vector<1x4x256xf32> to vector<4x256xf32>
    %181 = arith.mulf %178, %180 : vector<4x256xf32>
    %182 = arith.addf %170, %181 : vector<4x256xf32>
    %c0_138 = arith.constant 0 : index
    %c0_139 = arith.constant 0 : index
    %183 = vector.load %arg10[%c0_138, %c0_139] : memref<4x4xf32, #tpu.memory_space<vmem>>, vector<4x4xf32>
    %cst_140 = arith.constant dense<0.000000e+00> : vector<4x256xf32>
    %184 = tpu.matmul %183, %182, %cst_140 {dimension_numbers = #tpu.dot_dimension_numbers<[1], [0], [0], [1], [0, 0, 1, 1], [], []>} : vector<4x4xf32>, vector<4x256xf32>, vector<4x256xf32> -> vector<4x256xf32>
    %c0_141 = arith.constant 0 : index
    %c0_142 = arith.constant 0 : index
    %185 = vector.load %arg11[%c0_141, %c0_142] : memref<4x1xf32, #tpu.memory_space<vmem>>, vector<4x1xf32>
    %186 = vector.broadcast %185 : vector<4x1xf32> to vector<4x256xf32>
    %187 = arith.addf %184, %186 : vector<4x256xf32>
    %c4_143 = arith.constant 4 : index
    %c0_144 = arith.constant 0 : index
    %c0_145 = arith.constant 0 : index
    %188 = vector.load %arg12[%c4_143, %c0_144, %c0_145] : memref<9x32x4xf32, #tpu.memory_space<vmem>>, vector<1x32x4xf32>
    %189 = vector.shape_cast %188 : vector<1x32x4xf32> to vector<32x4xf32>
    %cst_146 = arith.constant dense<0.000000e+00> : vector<32x256xf32>
    %190 = tpu.matmul %189, %187, %cst_146 {dimension_numbers = #tpu.dot_dimension_numbers<[1], [0], [0], [1], [0, 0, 1, 1], [], []>} : vector<32x4xf32>, vector<4x256xf32>, vector<32x256xf32> -> vector<32x256xf32>
    %c17_i32_147 = arith.constant 17 : i32
    %191 = tpu.dynamic_rotate %187 by %c17_i32_147 dim 1 : vector<4x256xf32>, i32 -> vector<4x256xf32>
    %c0_148 = arith.constant 0 : index
    %c0_149 = arith.constant 0 : index
    %c0_150 = arith.constant 0 : index
    %192 = vector.load %arg1[%c0_148, %c0_149, %c0_150] : memref<9x1x256xf32, #tpu.memory_space<vmem>>, vector<1x1x256xf32>
    %193 = vector.shape_cast %192 : vector<1x1x256xf32> to vector<1x256xf32>
    %194 = vector.broadcast %193 : vector<1x256xf32> to vector<4x256xf32>
    %195 = arith.mulf %191, %194 : vector<4x256xf32>
    %c0_151 = arith.constant 0 : index
    %c0_152 = arith.constant 0 : index
    %c0_153 = arith.constant 0 : index
    %196 = vector.load %arg12[%c0_151, %c0_152, %c0_153] : memref<9x32x4xf32, #tpu.memory_space<vmem>>, vector<1x32x4xf32>
    %197 = vector.shape_cast %196 : vector<1x32x4xf32> to vector<32x4xf32>
    %cst_154 = arith.constant dense<0.000000e+00> : vector<32x256xf32>
    %198 = tpu.matmul %197, %195, %cst_154 {dimension_numbers = #tpu.dot_dimension_numbers<[1], [0], [0], [1], [0, 0, 1, 1], [], []>} : vector<32x4xf32>, vector<4x256xf32>, vector<32x256xf32> -> vector<32x256xf32>
    %199 = arith.addf %190, %198 : vector<32x256xf32>
    %c16_i32_155 = arith.constant 16 : i32
    %200 = tpu.dynamic_rotate %187 by %c16_i32_155 dim 1 : vector<4x256xf32>, i32 -> vector<4x256xf32>
    %c1_156 = arith.constant 1 : index
    %c0_157 = arith.constant 0 : index
    %c0_158 = arith.constant 0 : index
    %201 = vector.load %arg1[%c1_156, %c0_157, %c0_158] : memref<9x1x256xf32, #tpu.memory_space<vmem>>, vector<1x1x256xf32>
    %202 = vector.shape_cast %201 : vector<1x1x256xf32> to vector<1x256xf32>
    %203 = vector.broadcast %202 : vector<1x256xf32> to vector<4x256xf32>
    %204 = arith.mulf %200, %203 : vector<4x256xf32>
    %c1_159 = arith.constant 1 : index
    %c0_160 = arith.constant 0 : index
    %c0_161 = arith.constant 0 : index
    %205 = vector.load %arg12[%c1_159, %c0_160, %c0_161] : memref<9x32x4xf32, #tpu.memory_space<vmem>>, vector<1x32x4xf32>
    %206 = vector.shape_cast %205 : vector<1x32x4xf32> to vector<32x4xf32>
    %cst_162 = arith.constant dense<0.000000e+00> : vector<32x256xf32>
    %207 = tpu.matmul %206, %204, %cst_162 {dimension_numbers = #tpu.dot_dimension_numbers<[1], [0], [0], [1], [0, 0, 1, 1], [], []>} : vector<32x4xf32>, vector<4x256xf32>, vector<32x256xf32> -> vector<32x256xf32>
    %208 = arith.addf %199, %207 : vector<32x256xf32>
    %c15_i32_163 = arith.constant 15 : i32
    %209 = tpu.dynamic_rotate %187 by %c15_i32_163 dim 1 : vector<4x256xf32>, i32 -> vector<4x256xf32>
    %c2_164 = arith.constant 2 : index
    %c0_165 = arith.constant 0 : index
    %c0_166 = arith.constant 0 : index
    %210 = vector.load %arg1[%c2_164, %c0_165, %c0_166] : memref<9x1x256xf32, #tpu.memory_space<vmem>>, vector<1x1x256xf32>
    %211 = vector.shape_cast %210 : vector<1x1x256xf32> to vector<1x256xf32>
    %212 = vector.broadcast %211 : vector<1x256xf32> to vector<4x256xf32>
    %213 = arith.mulf %209, %212 : vector<4x256xf32>
    %c2_167 = arith.constant 2 : index
    %c0_168 = arith.constant 0 : index
    %c0_169 = arith.constant 0 : index
    %214 = vector.load %arg12[%c2_167, %c0_168, %c0_169] : memref<9x32x4xf32, #tpu.memory_space<vmem>>, vector<1x32x4xf32>
    %215 = vector.shape_cast %214 : vector<1x32x4xf32> to vector<32x4xf32>
    %cst_170 = arith.constant dense<0.000000e+00> : vector<32x256xf32>
    %216 = tpu.matmul %215, %213, %cst_170 {dimension_numbers = #tpu.dot_dimension_numbers<[1], [0], [0], [1], [0, 0, 1, 1], [], []>} : vector<32x4xf32>, vector<4x256xf32>, vector<32x256xf32> -> vector<32x256xf32>
    %217 = arith.addf %208, %216 : vector<32x256xf32>
    %c1_i32_171 = arith.constant 1 : i32
    %218 = tpu.dynamic_rotate %187 by %c1_i32_171 dim 1 : vector<4x256xf32>, i32 -> vector<4x256xf32>
    %c3_172 = arith.constant 3 : index
    %c0_173 = arith.constant 0 : index
    %c0_174 = arith.constant 0 : index
    %219 = vector.load %arg1[%c3_172, %c0_173, %c0_174] : memref<9x1x256xf32, #tpu.memory_space<vmem>>, vector<1x1x256xf32>
    %220 = vector.shape_cast %219 : vector<1x1x256xf32> to vector<1x256xf32>
    %221 = vector.broadcast %220 : vector<1x256xf32> to vector<4x256xf32>
    %222 = arith.mulf %218, %221 : vector<4x256xf32>
    %c3_175 = arith.constant 3 : index
    %c0_176 = arith.constant 0 : index
    %c0_177 = arith.constant 0 : index
    %223 = vector.load %arg12[%c3_175, %c0_176, %c0_177] : memref<9x32x4xf32, #tpu.memory_space<vmem>>, vector<1x32x4xf32>
    %224 = vector.shape_cast %223 : vector<1x32x4xf32> to vector<32x4xf32>
    %cst_178 = arith.constant dense<0.000000e+00> : vector<32x256xf32>
    %225 = tpu.matmul %224, %222, %cst_178 {dimension_numbers = #tpu.dot_dimension_numbers<[1], [0], [0], [1], [0, 0, 1, 1], [], []>} : vector<32x4xf32>, vector<4x256xf32>, vector<32x256xf32> -> vector<32x256xf32>
    %226 = arith.addf %217, %225 : vector<32x256xf32>
    %c255_i32_179 = arith.constant 255 : i32
    %227 = tpu.dynamic_rotate %187 by %c255_i32_179 dim 1 : vector<4x256xf32>, i32 -> vector<4x256xf32>
    %c5_180 = arith.constant 5 : index
    %c0_181 = arith.constant 0 : index
    %c0_182 = arith.constant 0 : index
    %228 = vector.load %arg1[%c5_180, %c0_181, %c0_182] : memref<9x1x256xf32, #tpu.memory_space<vmem>>, vector<1x1x256xf32>
    %229 = vector.shape_cast %228 : vector<1x1x256xf32> to vector<1x256xf32>
    %230 = vector.broadcast %229 : vector<1x256xf32> to vector<4x256xf32>
    %231 = arith.mulf %227, %230 : vector<4x256xf32>
    %c5_183 = arith.constant 5 : index
    %c0_184 = arith.constant 0 : index
    %c0_185 = arith.constant 0 : index
    %232 = vector.load %arg12[%c5_183, %c0_184, %c0_185] : memref<9x32x4xf32, #tpu.memory_space<vmem>>, vector<1x32x4xf32>
    %233 = vector.shape_cast %232 : vector<1x32x4xf32> to vector<32x4xf32>
    %cst_186 = arith.constant dense<0.000000e+00> : vector<32x256xf32>
    %234 = tpu.matmul %233, %231, %cst_186 {dimension_numbers = #tpu.dot_dimension_numbers<[1], [0], [0], [1], [0, 0, 1, 1], [], []>} : vector<32x4xf32>, vector<4x256xf32>, vector<32x256xf32> -> vector<32x256xf32>
    %235 = arith.addf %226, %234 : vector<32x256xf32>
    %c241_i32_187 = arith.constant 241 : i32
    %236 = tpu.dynamic_rotate %187 by %c241_i32_187 dim 1 : vector<4x256xf32>, i32 -> vector<4x256xf32>
    %c6_188 = arith.constant 6 : index
    %c0_189 = arith.constant 0 : index
    %c0_190 = arith.constant 0 : index
    %237 = vector.load %arg1[%c6_188, %c0_189, %c0_190] : memref<9x1x256xf32, #tpu.memory_space<vmem>>, vector<1x1x256xf32>
    %238 = vector.shape_cast %237 : vector<1x1x256xf32> to vector<1x256xf32>
    %239 = vector.broadcast %238 : vector<1x256xf32> to vector<4x256xf32>
    %240 = arith.mulf %236, %239 : vector<4x256xf32>
    %c6_191 = arith.constant 6 : index
    %c0_192 = arith.constant 0 : index
    %c0_193 = arith.constant 0 : index
    %241 = vector.load %arg12[%c6_191, %c0_192, %c0_193] : memref<9x32x4xf32, #tpu.memory_space<vmem>>, vector<1x32x4xf32>
    %242 = vector.shape_cast %241 : vector<1x32x4xf32> to vector<32x4xf32>
    %cst_194 = arith.constant dense<0.000000e+00> : vector<32x256xf32>
    %243 = tpu.matmul %242, %240, %cst_194 {dimension_numbers = #tpu.dot_dimension_numbers<[1], [0], [0], [1], [0, 0, 1, 1], [], []>} : vector<32x4xf32>, vector<4x256xf32>, vector<32x256xf32> -> vector<32x256xf32>
    %244 = arith.addf %235, %243 : vector<32x256xf32>
    %c240_i32_195 = arith.constant 240 : i32
    %245 = tpu.dynamic_rotate %187 by %c240_i32_195 dim 1 : vector<4x256xf32>, i32 -> vector<4x256xf32>
    %c7_196 = arith.constant 7 : index
    %c0_197 = arith.constant 0 : index
    %c0_198 = arith.constant 0 : index
    %246 = vector.load %arg1[%c7_196, %c0_197, %c0_198] : memref<9x1x256xf32, #tpu.memory_space<vmem>>, vector<1x1x256xf32>
    %247 = vector.shape_cast %246 : vector<1x1x256xf32> to vector<1x256xf32>
    %248 = vector.broadcast %247 : vector<1x256xf32> to vector<4x256xf32>
    %249 = arith.mulf %245, %248 : vector<4x256xf32>
    %c7_199 = arith.constant 7 : index
    %c0_200 = arith.constant 0 : index
    %c0_201 = arith.constant 0 : index
    %250 = vector.load %arg12[%c7_199, %c0_200, %c0_201] : memref<9x32x4xf32, #tpu.memory_space<vmem>>, vector<1x32x4xf32>
    %251 = vector.shape_cast %250 : vector<1x32x4xf32> to vector<32x4xf32>
    %cst_202 = arith.constant dense<0.000000e+00> : vector<32x256xf32>
    %252 = tpu.matmul %251, %249, %cst_202 {dimension_numbers = #tpu.dot_dimension_numbers<[1], [0], [0], [1], [0, 0, 1, 1], [], []>} : vector<32x4xf32>, vector<4x256xf32>, vector<32x256xf32> -> vector<32x256xf32>
    %253 = arith.addf %244, %252 : vector<32x256xf32>
    %c239_i32_203 = arith.constant 239 : i32
    %254 = tpu.dynamic_rotate %187 by %c239_i32_203 dim 1 : vector<4x256xf32>, i32 -> vector<4x256xf32>
    %c8_204 = arith.constant 8 : index
    %c0_205 = arith.constant 0 : index
    %c0_206 = arith.constant 0 : index
    %255 = vector.load %arg1[%c8_204, %c0_205, %c0_206] : memref<9x1x256xf32, #tpu.memory_space<vmem>>, vector<1x1x256xf32>
    %256 = vector.shape_cast %255 : vector<1x1x256xf32> to vector<1x256xf32>
    %257 = vector.broadcast %256 : vector<1x256xf32> to vector<4x256xf32>
    %258 = arith.mulf %254, %257 : vector<4x256xf32>
    %c8_207 = arith.constant 8 : index
    %c0_208 = arith.constant 0 : index
    %c0_209 = arith.constant 0 : index
    %259 = vector.load %arg12[%c8_207, %c0_208, %c0_209] : memref<9x32x4xf32, #tpu.memory_space<vmem>>, vector<1x32x4xf32>
    %260 = vector.shape_cast %259 : vector<1x32x4xf32> to vector<32x4xf32>
    %cst_210 = arith.constant dense<0.000000e+00> : vector<32x256xf32>
    %261 = tpu.matmul %260, %258, %cst_210 {dimension_numbers = #tpu.dot_dimension_numbers<[1], [0], [0], [1], [0, 0, 1, 1], [], []>} : vector<32x4xf32>, vector<4x256xf32>, vector<32x256xf32> -> vector<32x256xf32>
    %262 = arith.addf %253, %261 : vector<32x256xf32>
    %c0_211 = arith.constant 0 : index
    %c0_212 = arith.constant 0 : index
    %263 = vector.load %arg13[%c0_211, %c0_212] : memref<32x1xf32, #tpu.memory_space<vmem>>, vector<32x1xf32>
    %264 = vector.broadcast %263 : vector<32x1xf32> to vector<32x256xf32>
    %265 = arith.addf %262, %264 : vector<32x256xf32>
    %cst_213 = arith.constant 0.000000e+00 : f32
    %266 = vector.broadcast %cst_213 : f32 to vector<32x256xf32>
    %267 = arith.subf %266, %265 : vector<32x256xf32>
    %268 = math.exp %267 : vector<32x256xf32>
    %cst_214 = arith.constant 1.000000e+00 : f32
    %269 = vector.broadcast %cst_214 : f32 to vector<32x256xf32>
    %270 = arith.addf %269, %268 : vector<32x256xf32>
    %271 = tpu.reciprocal %270 {approx = true} : vector<32x256xf32> -> vector<32x256xf32>
    %272 = arith.mulf %265, %271 : vector<32x256xf32>
    %c4_215 = arith.constant 4 : index
    %c0_216 = arith.constant 0 : index
    %c0_217 = arith.constant 0 : index
    %273 = vector.load %arg14[%c4_215, %c0_216, %c0_217] : memref<9x4x32xf32, #tpu.memory_space<vmem>>, vector<1x4x32xf32>
    %274 = vector.shape_cast %273 : vector<1x4x32xf32> to vector<4x32xf32>
    %cst_218 = arith.constant dense<0.000000e+00> : vector<4x256xf32>
    %275 = tpu.matmul %274, %272, %cst_218 {dimension_numbers = #tpu.dot_dimension_numbers<[1], [0], [0], [1], [0, 0, 1, 1], [], []>} : vector<4x32xf32>, vector<32x256xf32>, vector<4x256xf32> -> vector<4x256xf32>
    %c17_i32_219 = arith.constant 17 : i32
    %276 = tpu.dynamic_rotate %272 by %c17_i32_219 dim 1 : vector<32x256xf32>, i32 -> vector<32x256xf32>
    %c0_220 = arith.constant 0 : index
    %c0_221 = arith.constant 0 : index
    %c0_222 = arith.constant 0 : index
    %277 = vector.load %arg1[%c0_220, %c0_221, %c0_222] : memref<9x1x256xf32, #tpu.memory_space<vmem>>, vector<1x1x256xf32>
    %278 = vector.shape_cast %277 : vector<1x1x256xf32> to vector<1x256xf32>
    %279 = vector.broadcast %278 : vector<1x256xf32> to vector<32x256xf32>
    %280 = arith.mulf %276, %279 : vector<32x256xf32>
    %c0_223 = arith.constant 0 : index
    %c0_224 = arith.constant 0 : index
    %c0_225 = arith.constant 0 : index
    %281 = vector.load %arg14[%c0_223, %c0_224, %c0_225] : memref<9x4x32xf32, #tpu.memory_space<vmem>>, vector<1x4x32xf32>
    %282 = vector.shape_cast %281 : vector<1x4x32xf32> to vector<4x32xf32>
    %cst_226 = arith.constant dense<0.000000e+00> : vector<4x256xf32>
    %283 = tpu.matmul %282, %280, %cst_226 {dimension_numbers = #tpu.dot_dimension_numbers<[1], [0], [0], [1], [0, 0, 1, 1], [], []>} : vector<4x32xf32>, vector<32x256xf32>, vector<4x256xf32> -> vector<4x256xf32>
    %284 = arith.addf %275, %283 : vector<4x256xf32>
    %c16_i32_227 = arith.constant 16 : i32
    %285 = tpu.dynamic_rotate %272 by %c16_i32_227 dim 1 : vector<32x256xf32>, i32 -> vector<32x256xf32>
    %c1_228 = arith.constant 1 : index
    %c0_229 = arith.constant 0 : index
    %c0_230 = arith.constant 0 : index
    %286 = vector.load %arg1[%c1_228, %c0_229, %c0_230] : memref<9x1x256xf32, #tpu.memory_space<vmem>>, vector<1x1x256xf32>
    %287 = vector.shape_cast %286 : vector<1x1x256xf32> to vector<1x256xf32>
    %288 = vector.broadcast %287 : vector<1x256xf32> to vector<32x256xf32>
    %289 = arith.mulf %285, %288 : vector<32x256xf32>
    %c1_231 = arith.constant 1 : index
    %c0_232 = arith.constant 0 : index
    %c0_233 = arith.constant 0 : index
    %290 = vector.load %arg14[%c1_231, %c0_232, %c0_233] : memref<9x4x32xf32, #tpu.memory_space<vmem>>, vector<1x4x32xf32>
    %291 = vector.shape_cast %290 : vector<1x4x32xf32> to vector<4x32xf32>
    %cst_234 = arith.constant dense<0.000000e+00> : vector<4x256xf32>
    %292 = tpu.matmul %291, %289, %cst_234 {dimension_numbers = #tpu.dot_dimension_numbers<[1], [0], [0], [1], [0, 0, 1, 1], [], []>} : vector<4x32xf32>, vector<32x256xf32>, vector<4x256xf32> -> vector<4x256xf32>
    %293 = arith.addf %284, %292 : vector<4x256xf32>
    %c15_i32_235 = arith.constant 15 : i32
    %294 = tpu.dynamic_rotate %272 by %c15_i32_235 dim 1 : vector<32x256xf32>, i32 -> vector<32x256xf32>
    %c2_236 = arith.constant 2 : index
    %c0_237 = arith.constant 0 : index
    %c0_238 = arith.constant 0 : index
    %295 = vector.load %arg1[%c2_236, %c0_237, %c0_238] : memref<9x1x256xf32, #tpu.memory_space<vmem>>, vector<1x1x256xf32>
    %296 = vector.shape_cast %295 : vector<1x1x256xf32> to vector<1x256xf32>
    %297 = vector.broadcast %296 : vector<1x256xf32> to vector<32x256xf32>
    %298 = arith.mulf %294, %297 : vector<32x256xf32>
    %c2_239 = arith.constant 2 : index
    %c0_240 = arith.constant 0 : index
    %c0_241 = arith.constant 0 : index
    %299 = vector.load %arg14[%c2_239, %c0_240, %c0_241] : memref<9x4x32xf32, #tpu.memory_space<vmem>>, vector<1x4x32xf32>
    %300 = vector.shape_cast %299 : vector<1x4x32xf32> to vector<4x32xf32>
    %cst_242 = arith.constant dense<0.000000e+00> : vector<4x256xf32>
    %301 = tpu.matmul %300, %298, %cst_242 {dimension_numbers = #tpu.dot_dimension_numbers<[1], [0], [0], [1], [0, 0, 1, 1], [], []>} : vector<4x32xf32>, vector<32x256xf32>, vector<4x256xf32> -> vector<4x256xf32>
    %302 = arith.addf %293, %301 : vector<4x256xf32>
    %c1_i32_243 = arith.constant 1 : i32
    %303 = tpu.dynamic_rotate %272 by %c1_i32_243 dim 1 : vector<32x256xf32>, i32 -> vector<32x256xf32>
    %c3_244 = arith.constant 3 : index
    %c0_245 = arith.constant 0 : index
    %c0_246 = arith.constant 0 : index
    %304 = vector.load %arg1[%c3_244, %c0_245, %c0_246] : memref<9x1x256xf32, #tpu.memory_space<vmem>>, vector<1x1x256xf32>
    %305 = vector.shape_cast %304 : vector<1x1x256xf32> to vector<1x256xf32>
    %306 = vector.broadcast %305 : vector<1x256xf32> to vector<32x256xf32>
    %307 = arith.mulf %303, %306 : vector<32x256xf32>
    %c3_247 = arith.constant 3 : index
    %c0_248 = arith.constant 0 : index
    %c0_249 = arith.constant 0 : index
    %308 = vector.load %arg14[%c3_247, %c0_248, %c0_249] : memref<9x4x32xf32, #tpu.memory_space<vmem>>, vector<1x4x32xf32>
    %309 = vector.shape_cast %308 : vector<1x4x32xf32> to vector<4x32xf32>
    %cst_250 = arith.constant dense<0.000000e+00> : vector<4x256xf32>
    %310 = tpu.matmul %309, %307, %cst_250 {dimension_numbers = #tpu.dot_dimension_numbers<[1], [0], [0], [1], [0, 0, 1, 1], [], []>} : vector<4x32xf32>, vector<32x256xf32>, vector<4x256xf32> -> vector<4x256xf32>
    %311 = arith.addf %302, %310 : vector<4x256xf32>
    %c255_i32_251 = arith.constant 255 : i32
    %312 = tpu.dynamic_rotate %272 by %c255_i32_251 dim 1 : vector<32x256xf32>, i32 -> vector<32x256xf32>
    %c5_252 = arith.constant 5 : index
    %c0_253 = arith.constant 0 : index
    %c0_254 = arith.constant 0 : index
    %313 = vector.load %arg1[%c5_252, %c0_253, %c0_254] : memref<9x1x256xf32, #tpu.memory_space<vmem>>, vector<1x1x256xf32>
    %314 = vector.shape_cast %313 : vector<1x1x256xf32> to vector<1x256xf32>
    %315 = vector.broadcast %314 : vector<1x256xf32> to vector<32x256xf32>
    %316 = arith.mulf %312, %315 : vector<32x256xf32>
    %c5_255 = arith.constant 5 : index
    %c0_256 = arith.constant 0 : index
    %c0_257 = arith.constant 0 : index
    %317 = vector.load %arg14[%c5_255, %c0_256, %c0_257] : memref<9x4x32xf32, #tpu.memory_space<vmem>>, vector<1x4x32xf32>
    %318 = vector.shape_cast %317 : vector<1x4x32xf32> to vector<4x32xf32>
    %cst_258 = arith.constant dense<0.000000e+00> : vector<4x256xf32>
    %319 = tpu.matmul %318, %316, %cst_258 {dimension_numbers = #tpu.dot_dimension_numbers<[1], [0], [0], [1], [0, 0, 1, 1], [], []>} : vector<4x32xf32>, vector<32x256xf32>, vector<4x256xf32> -> vector<4x256xf32>
    %320 = arith.addf %311, %319 : vector<4x256xf32>
    %c241_i32_259 = arith.constant 241 : i32
    %321 = tpu.dynamic_rotate %272 by %c241_i32_259 dim 1 : vector<32x256xf32>, i32 -> vector<32x256xf32>
    %c6_260 = arith.constant 6 : index
    %c0_261 = arith.constant 0 : index
    %c0_262 = arith.constant 0 : index
    %322 = vector.load %arg1[%c6_260, %c0_261, %c0_262] : memref<9x1x256xf32, #tpu.memory_space<vmem>>, vector<1x1x256xf32>
    %323 = vector.shape_cast %322 : vector<1x1x256xf32> to vector<1x256xf32>
    %324 = vector.broadcast %323 : vector<1x256xf32> to vector<32x256xf32>
    %325 = arith.mulf %321, %324 : vector<32x256xf32>
    %c6_263 = arith.constant 6 : index
    %c0_264 = arith.constant 0 : index
    %c0_265 = arith.constant 0 : index
    %326 = vector.load %arg14[%c6_263, %c0_264, %c0_265] : memref<9x4x32xf32, #tpu.memory_space<vmem>>, vector<1x4x32xf32>
    %327 = vector.shape_cast %326 : vector<1x4x32xf32> to vector<4x32xf32>
    %cst_266 = arith.constant dense<0.000000e+00> : vector<4x256xf32>
    %328 = tpu.matmul %327, %325, %cst_266 {dimension_numbers = #tpu.dot_dimension_numbers<[1], [0], [0], [1], [0, 0, 1, 1], [], []>} : vector<4x32xf32>, vector<32x256xf32>, vector<4x256xf32> -> vector<4x256xf32>
    %329 = arith.addf %320, %328 : vector<4x256xf32>
    %c240_i32_267 = arith.constant 240 : i32
    %330 = tpu.dynamic_rotate %272 by %c240_i32_267 dim 1 : vector<32x256xf32>, i32 -> vector<32x256xf32>
    %c7_268 = arith.constant 7 : index
    %c0_269 = arith.constant 0 : index
    %c0_270 = arith.constant 0 : index
    %331 = vector.load %arg1[%c7_268, %c0_269, %c0_270] : memref<9x1x256xf32, #tpu.memory_space<vmem>>, vector<1x1x256xf32>
    %332 = vector.shape_cast %331 : vector<1x1x256xf32> to vector<1x256xf32>
    %333 = vector.broadcast %332 : vector<1x256xf32> to vector<32x256xf32>
    %334 = arith.mulf %330, %333 : vector<32x256xf32>
    %c7_271 = arith.constant 7 : index
    %c0_272 = arith.constant 0 : index
    %c0_273 = arith.constant 0 : index
    %335 = vector.load %arg14[%c7_271, %c0_272, %c0_273] : memref<9x4x32xf32, #tpu.memory_space<vmem>>, vector<1x4x32xf32>
    %336 = vector.shape_cast %335 : vector<1x4x32xf32> to vector<4x32xf32>
    %cst_274 = arith.constant dense<0.000000e+00> : vector<4x256xf32>
    %337 = tpu.matmul %336, %334, %cst_274 {dimension_numbers = #tpu.dot_dimension_numbers<[1], [0], [0], [1], [0, 0, 1, 1], [], []>} : vector<4x32xf32>, vector<32x256xf32>, vector<4x256xf32> -> vector<4x256xf32>
    %338 = arith.addf %329, %337 : vector<4x256xf32>
    %c239_i32_275 = arith.constant 239 : i32
    %339 = tpu.dynamic_rotate %272 by %c239_i32_275 dim 1 : vector<32x256xf32>, i32 -> vector<32x256xf32>
    %c8_276 = arith.constant 8 : index
    %c0_277 = arith.constant 0 : index
    %c0_278 = arith.constant 0 : index
    %340 = vector.load %arg1[%c8_276, %c0_277, %c0_278] : memref<9x1x256xf32, #tpu.memory_space<vmem>>, vector<1x1x256xf32>
    %341 = vector.shape_cast %340 : vector<1x1x256xf32> to vector<1x256xf32>
    %342 = vector.broadcast %341 : vector<1x256xf32> to vector<32x256xf32>
    %343 = arith.mulf %339, %342 : vector<32x256xf32>
    %c8_279 = arith.constant 8 : index
    %c0_280 = arith.constant 0 : index
    %c0_281 = arith.constant 0 : index
    %344 = vector.load %arg14[%c8_279, %c0_280, %c0_281] : memref<9x4x32xf32, #tpu.memory_space<vmem>>, vector<1x4x32xf32>
    %345 = vector.shape_cast %344 : vector<1x4x32xf32> to vector<4x32xf32>
    %cst_282 = arith.constant dense<0.000000e+00> : vector<4x256xf32>
    %346 = tpu.matmul %345, %343, %cst_282 {dimension_numbers = #tpu.dot_dimension_numbers<[1], [0], [0], [1], [0, 0, 1, 1], [], []>} : vector<4x32xf32>, vector<32x256xf32>, vector<4x256xf32> -> vector<4x256xf32>
    %347 = arith.addf %338, %346 : vector<4x256xf32>
    %c0_283 = arith.constant 0 : index
    %c0_284 = arith.constant 0 : index
    %348 = vector.load %arg15[%c0_283, %c0_284] : memref<4x1xf32, #tpu.memory_space<vmem>>, vector<4x1xf32>
    %349 = vector.broadcast %348 : vector<4x1xf32> to vector<4x256xf32>
    %350 = arith.addf %347, %349 : vector<4x256xf32>
    %c0_285 = arith.constant 0 : index
    %c0_286 = arith.constant 0 : index
    %c0_287 = arith.constant 0 : index
    %351 = vector.load %arg16[%c0_285, %c0_286, %c0_287] : memref<1x4x256xf32, #tpu.memory_space<vmem>>, vector<1x4x256xf32>
    %352 = vector.shape_cast %351 : vector<1x4x256xf32> to vector<4x256xf32>
    %353 = vector.shape_cast %350 : vector<4x256xf32> to vector<1x4x256xf32>
    tpu.vector_store %arg16[%c0_285, %c0_286, %c0_287], %353 {strides = array<i32>} : memref<1x4x256xf32, #tpu.memory_space<vmem>>, vector<1x4x256xf32>,
    %c0_288 = arith.constant 0 : index
    %c0_289 = arith.constant 0 : index
    %c0_290 = arith.constant 0 : index
    %354 = vector.load %arg17[%c0_288, %c0_289, %c0_290] : memref<1x4x256xf32, #tpu.memory_space<vmem>>, vector<1x4x256xf32>
    %355 = vector.shape_cast %354 : vector<1x4x256xf32> to vector<4x256xf32>
    %356 = vector.shape_cast %170 : vector<4x256xf32> to vector<1x4x256xf32>
    tpu.vector_store %arg17[%c0_288, %c0_289, %c0_290], %356 {strides = array<i32>} : memref<1x4x256xf32, #tpu.memory_space<vmem>>, vector<1x4x256xf32>,
    %c0_291 = arith.constant 0 : index
    %c0_292 = arith.constant 0 : index
    %c0_293 = arith.constant 0 : index
    %357 = vector.load %arg18[%c0_291, %c0_292, %c0_293] : memref<1x4x256xf32, #tpu.memory_space<vmem>>, vector<1x4x256xf32>
    %358 = vector.shape_cast %357 : vector<1x4x256xf32> to vector<4x256xf32>
    %359 = vector.shape_cast %175 : vector<4x256xf32> to vector<1x4x256xf32>
    tpu.vector_store %arg18[%c0_291, %c0_292, %c0_293], %359 {strides = array<i32>} : memref<1x4x256xf32, #tpu.memory_space<vmem>>, vector<1x4x256xf32>,
    return
  }
  func.func @transform_0(%arg0: i32) -> (i32, i32, i32) {
    %c0_i32 = arith.constant 0 : i32
    %c0_i32_0 = arith.constant 0 : i32
    %c0_i32_1 = arith.constant 0 : i32
    %c0_i32_2 = arith.constant 0 : i32
    return %c0_i32, %c0_i32_0, %c0_i32_1 : i32, i32, i32
  }
  func.func @transform_1(%arg0: i32) -> (i32, i32, i32) {
    %c0_i32 = arith.constant 0 : i32
    %c0_i32_0 = arith.constant 0 : i32
    %c0_i32_1 = arith.constant 0 : i32
    return %arg0, %c0_i32, %c0_i32_0 : i32, i32, i32
  }
  func.func @transform_2(%arg0: i32) -> (i32, i32, i32) {
    %c0_i32 = arith.constant 0 : i32
    %c0_i32_0 = arith.constant 0 : i32
    %c0_i32_1 = arith.constant 0 : i32
    return %arg0, %c0_i32, %c0_i32_0 : i32, i32, i32
  }
  func.func @transform_3(%arg0: i32) -> (i32, i32, i32) {
    %c0_i32 = arith.constant 0 : i32
    %c0_i32_0 = arith.constant 0 : i32
    %c0_i32_1 = arith.constant 0 : i32
    %c0_i32_2 = arith.constant 0 : i32
    return %c0_i32, %c0_i32_0, %c0_i32_1 : i32, i32, i32
  }
  func.func @transform_4(%arg0: i32) -> (i32, i32) {
    %c0_i32 = arith.constant 0 : i32
    %c0_i32_0 = arith.constant 0 : i32
    %c0_i32_1 = arith.constant 0 : i32
    return %c0_i32, %c0_i32_0 : i32, i32
  }
  func.func @transform_5(%arg0: i32) -> (i32, i32, i32) {
    %c0_i32 = arith.constant 0 : i32
    %c0_i32_0 = arith.constant 0 : i32
    %c0_i32_1 = arith.constant 0 : i32
    %c0_i32_2 = arith.constant 0 : i32
    return %c0_i32, %c0_i32_0, %c0_i32_1 : i32, i32, i32
  }
  func.func @transform_6(%arg0: i32) -> (i32, i32) {
    %c0_i32 = arith.constant 0 : i32
    %c0_i32_0 = arith.constant 0 : i32
    %c0_i32_1 = arith.constant 0 : i32
    return %c0_i32, %c0_i32_0 : i32, i32
  }
  func.func @transform_7(%arg0: i32) -> (i32, i32) {
    %c0_i32 = arith.constant 0 : i32
    %c0_i32_0 = arith.constant 0 : i32
    %c0_i32_1 = arith.constant 0 : i32
    return %c0_i32, %c0_i32_0 : i32, i32
  }
  func.func @transform_8(%arg0: i32) -> (i32, i32) {
    %c0_i32 = arith.constant 0 : i32
    %c0_i32_0 = arith.constant 0 : i32
    %c0_i32_1 = arith.constant 0 : i32
    return %c0_i32, %c0_i32_0 : i32, i32
  }
  func.func @transform_9(%arg0: i32) -> (i32, i32) {
    %c0_i32 = arith.constant 0 : i32
    %c0_i32_0 = arith.constant 0 : i32
    %c0_i32_1 = arith.constant 0 : i32
    return %c0_i32, %c0_i32_0 : i32, i32
  }
  func.func @transform_10(%arg0: i32) -> (i32, i32) {
    %c0_i32 = arith.constant 0 : i32
    %c0_i32_0 = arith.constant 0 : i32
    %c0_i32_1 = arith.constant 0 : i32
    return %c0_i32, %c0_i32_0 : i32, i32
  }
  func.func @transform_11(%arg0: i32) -> (i32, i32, i32) {
    %c0_i32 = arith.constant 0 : i32
    %c0_i32_0 = arith.constant 0 : i32
    %c0_i32_1 = arith.constant 0 : i32
    %c0_i32_2 = arith.constant 0 : i32
    return %c0_i32, %c0_i32_0, %c0_i32_1 : i32, i32, i32
  }
  func.func @transform_12(%arg0: i32) -> (i32, i32) {
    %c0_i32 = arith.constant 0 : i32
    %c0_i32_0 = arith.constant 0 : i32
    %c0_i32_1 = arith.constant 0 : i32
    return %c0_i32, %c0_i32_0 : i32, i32
  }
  func.func @transform_13(%arg0: i32) -> (i32, i32, i32) {
    %c0_i32 = arith.constant 0 : i32
    %c0_i32_0 = arith.constant 0 : i32
    %c0_i32_1 = arith.constant 0 : i32
    %c0_i32_2 = arith.constant 0 : i32
    return %c0_i32, %c0_i32_0, %c0_i32_1 : i32, i32, i32
  }
  func.func @transform_14(%arg0: i32) -> (i32, i32) {
    %c0_i32 = arith.constant 0 : i32
    %c0_i32_0 = arith.constant 0 : i32
    %c0_i32_1 = arith.constant 0 : i32
    return %c0_i32, %c0_i32_0 : i32, i32
  }
  func.func @transform_15(%arg0: i32) -> (i32, i32, i32) {
    %c0_i32 = arith.constant 0 : i32
    %c0_i32_0 = arith.constant 0 : i32
    %c0_i32_1 = arith.constant 0 : i32
    return %arg0, %c0_i32, %c0_i32_0 : i32, i32, i32
  }
  func.func @transform_16(%arg0: i32) -> (i32, i32, i32) {
    %c0_i32 = arith.constant 0 : i32
    %c0_i32_0 = arith.constant 0 : i32
    %c0_i32_1 = arith.constant 0 : i32
    return %arg0, %c0_i32, %c0_i32_0 : i32, i32, i32
  }
  func.func @transform_17(%arg0: i32) -> (i32, i32, i32) {
    %c0_i32 = arith.constant 0 : i32
    %c0_i32_0 = arith.constant 0 : i32
    %c0_i32_1 = arith.constant 0 : i32
    return %arg0, %c0_i32, %c0_i32_0 : i32, i32, i32
  }
}

</mosaic_0001>

<bundles_post_ra>
// kernel: cautoencoder_forward.1
= control target key start
LH: loop header
LB: loop body
LE: loop exit
PB: predicated region body
PF: predicated region fallthrough
CT: control target
= control target key end

     0   :  { %s6130_s24 = smov 0   ;;  %s7866_s0 = inlined_call_operand.vmem [shape: f32[9,1,256], index: 0, kind: input, shape index: {}]   ;;  %s7867_s1 = inlined_call_operand.vmem [shape: f32[2,4,256], index: 1, kind: input, shape index: {}]   ;;  %s7868_s2 = inlined_call_operand.vmem [shape: f32[2,4,256], index: 2, kind: input, shape index: {}]   ;;  %s7869_s3 = inlined_call_operand.vmem [shape: f32[9,32,4], index: 3, kind: input, shape index: {}]   ;;  %s7870_s4 = inlined_call_operand.vmem [shape: f32[32,1], index: 4, kind: input, shape index: {}]   ;;  %s7871_s5 = inlined_call_operand.vmem [shape: f32[9,8,32], index: 5, kind: input, shape index: {}]   ;;  %s7872_s6 = inlined_call_operand.vmem [shape: f32[8,1], index: 6, kind: input, shape index: {}]   ;;  %s7873_s7 = inlined_call_operand.vmem [shape: f32[8,8], index: 7, kind: input, shape index: {}]   ;;  %s7874_s8 = inlined_call_operand.vmem [shape: f32[8,1], index: 8, kind: input, shape index: {}]   ;;  %s7875_s9 = inlined_call_operand.vmem [shape: f32[4,4], index: 9, kind: input, shape index: {}]   ;;  %s7876_s10 = inlined_call_operand.vmem [shape: f32[4,1], index: 10, kind: input, shape index: {}]   ;;  %s7877_s11 = inlined_call_operand.vmem [shape: f32[9,32,4], index: 11, kind: input, shape index: {}]   ;;  %s7878_s12 = inlined_call_operand.vmem [shape: f32[32,1], index: 12, kind: input, shape index: {}]   ;;  %s7879_s13 = inlined_call_operand.vmem [shape: f32[9,4,32], index: 13, kind: input, shape index: {}]   ;;  %s7880_s14 = inlined_call_operand.vmem [shape: f32[4,1], index: 14, kind: input, shape index: {}]   ;;  %s7881_s15 = inlined_call_operand.vmem [shape: f32[2,4,256], index: 15, kind: output, shape index: {0}]   ;;  %s7882_s16 = inlined_call_operand.vmem [shape: f32[2,4,256], index: 16, kind: output, shape index: {1}]   ;;  %s7883_s17 = inlined_call_operand.vmem [shape: f32[2,4,256], index: 17, kind: output, shape index: {2}]  }
   0x1   :  { %7912 = sst [smem:[#allocation6_spill]] %s7866_s0 }
   0x2   :  { %7913 = sst [smem:[#allocation7_spill]] %s7867_s1 }
   0x3   :  { %7914 = sst [smem:[#allocation8_spill]] %s7868_s2 }
   0x4   :  { %7915 = sst [smem:[#allocation9_spill]] %s7869_s3 }
   0x5 LB: > { %s5389_s25 = sadd.s32 4294967295, %s6028_s24   ;;  %p5393_p0 = scmp.ge.s32.totalorder %s6028_s24, 1  ;;  %s6028_s24 = sphi %s6130_s24, %s28_s24  }
   0x6   : > { %p502_p1 = scmp.lt.s32.totalorder %s6028_s24, 3 }
   0x8   : > { %p503_p2 = pnand %p5393_p0, %p502_p1 }
   0xa   : > { %506 = sbr.rel (%p503_p2) target bundleno = 2411 (0x96b), region = 80 }
  0x11   : > { %p569_p3 = scmp.lt.s32.totalorder %s5389_s25, 1  ;;  %v7893_v0 = vmov 0.0   ;;  %s7916_s29 = sld [smem:[#allocation7_spill]]  ;;  %v607_v3 = vlaneseq  ;;  %vm643_vm2 = vcmask 1043456   ;;  %vm630_vm3 = vcmask 31744   ;;  %v1839_v34 = vld [vmem:[%s7870_s4 + $0x8] sm:$0xff] }
  0x12   : > { %714 = vmatprep.mubr.f32.mxu0 %v7893_v0  ;;  %2095 = vmatprep.mubr.f32.mxu1 %v7893_v0  ;;  %s7887_s30 = smov 17   ;;  %s7907_s18 = smov 16   ;;  %v1838_v35 = vld [vmem:[%s7870_s4] sm:$0xff]  ;;  %v6039_v38 = vmov 0   ;;  %v1840_v40 = vld [vmem:[%s7870_s4 + $0x10] sm:$0xff]  ;;  %v1841_v41 = vld [vmem:[%s7870_s4 + $0x18] sm:$0xff] }
  0x13   : > { %s7947_s25 = smov (!%p569_p3, %s5389_s25), 1  ;;  %s7905_s19 = smov 15   ;;  %v615_v4 = vshrl.u32 %v607_v3, 7  ;;  %v6162_v5 = vand.u32 127, %v607_v3  ;;  %5951 = vset.pattern.permute.xlu1 %v6039_v38  ;;  %5950 = vset.pattern.permute.xlu0 %v6039_v38  ;;  %vm1953_vm10 = vcmask 261120   ;;  %vm2887_vm11 = vcmask 64512  }
  0x14   : > { %s6140_s26 = sshll.u32 %s7947_s25, 3  ;;  %s7903_s1 = smov 1  }
  0x15   : > { %s7901_s20 = smov 127   ;;  %s7891_s21 = smov 113   ;;  %v6164_v6 = vsub.s32 0, %v615_v4  ;;  %v6166_v7 = vsub.s32 1, %v615_v4  ;;  %vm609_vm0 = vcmp.lt.s32.totalorder %v6162_v5, 17  ;;  %vm848_vm1 = vcmp.lt.s32.totalorder %v6162_v5, 16 }
  0x16   : > { %s7889_s22 = smov 112   ;;  %s7885_s23 = smov 111   ;;  %vm990_vm4 = vcmp.lt.s32.totalorder %v6162_v5, 15  ;;  %vm1132_vm5 = vcmp.lt.s32.totalorder %v6162_v5, 1  ;;  %vm1274_vm6 = vcmp.lt.s32.totalorder %v6162_v5, 127  ;;  %vm1416_vm7 = vcmp.lt.s32.totalorder %v6162_v5, 113 }
  0x17   : > { %s573_s0 = scalar_lea.vmem %s7916_s29, %s6140_s26  ;;  %s7917_s28 = sld [smem:[#allocation6_spill]]  ;;  %vm1558_vm8 = vcmp.lt.s32.totalorder %v6162_v5, 112  ;;  %vm1700_vm9 = vcmp.lt.s32.totalorder %v6162_v5, 111  ;;  %v5619_v5 = vld [vmem:[%s7879_s13 + $0x20] sm:$0xf] }
  0x18   : > { %v594_v1 = vld [vmem:[%s573_s0] sm:$0xff]  ;;  %s7919_s3 = sld [smem:[#allocation9_spill]]  ;;  %s7923_s29 = smov 17  }
  0x19   : > { %603 = vrot.lane.b32.xlu0 %v594_v1, %s7887_s30  ;;  %v601_v2 = vcombine.high %v594_v1, %v594_v1  ;;  %844 = vrot.lane.b32.xlu1 %v594_v1, %s7907_s18  ;;  %s588_s25 = scalar_lea.vmem %s7882_s16, %s6140_s26  ;;  %s7927_s2 = sld [smem:[#allocation8_spill]] }
  0x1a   : > { %s7930_s27 = smov 113   ;;  %s7931_s0 = smov 112  }
  0x1d   : > { %605 = vrot.lane.b32.xlu0 %v601_v2, %s7887_s30  ;;  %846 = vrot.lane.b32.xlu1 %v601_v2, %s7907_s18  ;;  %v612_v8 = vld [vmem:[%s7917_s28] sm:$0x3]  ;;  %v5420_v11 = vld [vmem:[%s7917_s28 + $0x2] sm:$0x3]  ;;  %s593_s30 = scalar_lea.vmem %s7883_s17, %s6140_s26 }
  0x1e   : > { %v6176_v12 = vrot.slane %v612_v8, %v6164_v6  ;;  %v6179_v13 = vrot.slane %v612_v8, %v6166_v7  ;;  %v6183_v15 = vrot.slane %v5420_v11, %v6166_v7  ;;  %v626_v22 = vld [vmem:[%s7919_s3] sm:$0xff]  ;;  %v627_v24 = vld [vmem:[%s7919_s3 + $0x8] sm:$0xff]  ;;  %v628_v25 = vld [vmem:[%s7919_s3 + $0x10] sm:$0xff]  ;;  %v6218_v29 = vrot.slane %v5420_v11, %v6164_v6 }
  0x1f   : > { %v5431_v26 = vld [vmem:[%s7917_s28 + $0x4] sm:$0x3]  ;;  %v629_v30 = vld [vmem:[%s7919_s3 + $0x18] sm:$0xff]  ;;  %v5405_v42 = vld [vmem:[%s7919_s3 + $0x88] sm:$0xff] }
  0x20   : > { %7918 = vst [vmem:[#allocation2_spill] sm:$0xff] %v6183_v15  ;;  %7920 = vst [vmem:[#allocation3_spill] sm:$0xff] %v6218_v29  ;;  %v6227_v32 = vrot.slane %v5431_v26, %v6166_v7  ;;  %v5404_v37 = vld [vmem:[%s7919_s3 + $0x80] sm:$0xff]  ;;  %v5406_v43 = vld [vmem:[%s7919_s3 + $0x90] sm:$0xff]  ;;  %v6272_v48 = vrot.slane %v5431_v26, %v6164_v6 }
  0x21   : > { %988 = vrot.lane.b32.xlu1 %v601_v2, %s7905_s19  ;;  %986 = vrot.lane.b32.xlu0 %v594_v1, %s7905_s19  ;;  %v5442_v44 = vld [vmem:[%s7917_s28 + $0x6] sm:$0x3]  ;;  %v5407_v47 = vld [vmem:[%s7919_s3 + $0x98] sm:$0xff] }
  0x22   : > { %v6277_v50 = vrot.slane %v5442_v44, %v6166_v7  ;;  %v5421_v53 = vld [vmem:[%s7919_s3 + $0x20] sm:$0xff]  ;;  %v5422_v55 = vld [vmem:[%s7919_s3 + $0x28] sm:$0xff]  ;;  %v5423_v56 = vld [vmem:[%s7919_s3 + $0x30] sm:$0xff]  ;;  %v6310_v61 = vrot.slane %v5442_v44, %v6164_v6 }
  0x23   : > { %v5453_v57 = vld [vmem:[%s7917_s28 + $0xa] sm:$0x3]  ;;  %v5424_v60 = vld [vmem:[%s7919_s3 + $0x38] sm:$0xff]  ;;  %v5432_v3 = vld [vmem:[%s7919_s3 + $0x40] sm:$0xff] }
  0x24   : > { %v6315_v63 = vrot.slane %v5453_v57, %v6166_v7  ;;  %v5433_v8 = vld [vmem:[%s7919_s3 + $0x48] sm:$0xff]  ;;  %v5457_v44 = vld [vmem:[%s7919_s3 + $0xb8] sm:$0xff] }
  0x25   : > { %1130 = vrot.lane.b32.xlu1 %v601_v2, %s7903_s1  ;;  %1128 = vrot.lane.b32.xlu0 %v594_v1, %s7903_s1  ;;  %v5475_v26 = vld [vmem:[%s7917_s28 + $0xe] sm:$0x3] }
  0x29   : > { %1272 = vrot.lane.b32.xlu1 %v601_v2, %s7901_s20  ;;  %1270 = vrot.lane.b32.xlu0 %v594_v1, %s7901_s20 }
  0x2d   : > { %1414 = vrot.lane.b32.xlu1 %v601_v2, %s7891_s21  ;;  %1412 = vrot.lane.b32.xlu0 %v594_v1, %s7891_s21 }
  0x31   : > { %1556 = vrot.lane.b32.xlu1 %v601_v2, %s7889_s22  ;;  %1554 = vrot.lane.b32.xlu0 %v594_v1, %s7889_s22 }
  0x35   : > { %1698 = vrot.lane.b32.xlu1 %v601_v2, %s7885_s23  ;;  %1696 = vrot.lane.b32.xlu0 %v594_v1, %s7885_s23  ;;  %s7924_s23 = smov 111  }
  0x39   : > { %1849 = vperm.xlu1 %5951, %v1839_v34   ;;  %1844 = vperm.xlu0 %5950, %v1838_v35   ;;  %v6391_v34 = vrot.slane %v5475_v26, %v6166_v7 }
  0x3d   : > { %1854 = vperm.xlu1 %5951, %v1840_v40   ;;  %1859 = vperm.xlu0 %5950, %v1841_v41   ;;  %v5456_v40 = vld [vmem:[%s7919_s3 + $0xb0] sm:$0xff] }
  0x3e   : > { %v5486_v41 = vld [vmem:[%s7917_s28 + $0x10] sm:$0x3] }
  0x8b   : > { %v604_v9 = vpop.permute.xlu0 %603  ;;  %v845_v10 = vpop.permute.xlu1 %844 }
  0x8f   : > { %v606_v14 = vpop.permute.xlu0 %605  ;;  %v847_v16 = vpop.permute.xlu1 %846 }
  0x90   : > { %v611_v17 = vsel %vm609_vm0, %v606_v14, %v604_v9  ;;  %v610_v18 = vsel %vm609_vm0, %v604_v9, %v606_v14  ;;  %v849_v19 = vsel %vm848_vm1, %v845_v10, %v847_v16  ;;  %v850_v31 = vsel %vm848_vm1, %v847_v16, %v845_v10  ;;  %v5434_v9 = vld [vmem:[%s7919_s3 + $0x50] sm:$0xff]  ;;  %v5464_v10 = vld [vmem:[%s7917_s28 + $0xc] sm:$0x3]  ;;  %v5435_v16 = vld [vmem:[%s7919_s3 + $0x58] sm:$0xff] }
  0x91   : > { %v625_v20 = vmul.f32 %v6179_v13, %v610_v18  ;;  %v624_v21 = vmul.f32 %v6176_v12, %v611_v17  ;;  %v865_v23 = vmul.f32 %v6183_v15, %v849_v19  ;;  %v864_v36 = vmul.f32 %v6218_v29, %v850_v31 }
  0x92   : > { %v6348_v17 = vrot.slane %v5453_v57, %v6164_v6  ;;  %v6353_v19 = vrot.slane %v5464_v10, %v6166_v7  ;;  %v6386_v31 = vrot.slane %v5464_v10, %v6164_v6 }
  0x93   : > { %5408 = vmatprep.subr.msk.mxu0 %vm643_vm2, %v625_v20  ;;  %v989_v27 = vpop.permute.xlu1 %988  ;;  %v987_v28 = vpop.permute.xlu0 %986 }
  0x94   : > { %5409 = vmatpush1.msk.msra.mxu0 %vm643_vm2, %v624_v21  ;;  %v991_v33 = vsel %vm990_vm4, %v987_v28, %v989_v27  ;;  %v992_v49 = vsel %vm990_vm4, %v989_v27, %v987_v28 }
  0x95   : > { %5410 = vmatmul.mubr.msk.f32.vlgmr.msra.gmra.mrb[0].mxu0 %vm630_vm3, %v626_v22  ;;  %5414 = vmatprep.subr.msk.mxu0 %vm643_vm2, %v601_v2  ;;  %v1007_v39 = vmul.f32 %v6227_v32, %v991_v33  ;;  %v1006_v52 = vmul.f32 %v6272_v48, %v992_v49  ;;  %v5443_v22 = vld [vmem:[%s7919_s3 + $0x60] sm:$0xff] }
  0x96   : > { %720 = vmatprep.mubr.f32.mxu0 %v7893_v0  ;;  %5415 = vmatpush1.msk.msra.mxu0 %vm643_vm2, %v594_v1 }
  0x97   : > { %5425 = vmatprep.subr.msk.mxu0 %vm643_vm2, %v865_v23  ;;  %v1131_v45 = vpop.permute.xlu1 %1130  ;;  %v1129_v46 = vpop.permute.xlu0 %1128 }
  0x98   : > { %v1133_v51 = vsel %vm1132_vm5, %v1129_v46, %v1131_v45  ;;  %v1134_v62 = vsel %vm1132_vm5, %v1131_v45, %v1129_v46  ;;  %v6424_v45 = vrot.slane %v5475_v26, %v6164_v6 }
  0x99   : > { %5411 = vmatmul.mubr.msk.f32.gmra.mrb[2].mxu0 %vm630_vm3, %v627_v24  ;;  %v1149_v54 = vmul.f32 %v6277_v50, %v1133_v51  ;;  %v1148_v2 = vmul.f32 %v6310_v61, %v1134_v62  ;;  %v5444_v24 = vld [vmem:[%s7919_s3 + $0x68] sm:$0xff]  ;;  %v5479_v62 = vld [vmem:[%s7919_s3 + $0xf8] sm:$0xff] }
  0x9a   : > { %726 = vmatprep.mubr.f32.mxu0 %v7893_v0 }
  0x9b   : > { %v1273_v58 = vpop.permute.xlu1 %1272  ;;  %v1271_v59 = vpop.permute.xlu0 %1270 }
  0x9c   : > { %v1276_v1 = vsel %vm1274_vm6, %v1273_v58, %v1271_v59  ;;  %v1275_v18 = vsel %vm1274_vm6, %v1271_v59, %v1273_v58  ;;  %v5476_v59 = vld [vmem:[%s7919_s3 + $0xe0] sm:$0xff] }
  0x9d   : > { %5412 = vmatmul.mubr.msk.f32.gmra.mrb[4].mxu0 %vm630_vm3, %v628_v25  ;;  %v1291_v4 = vmul.f32 %v6315_v63, %v1276_v1  ;;  %v1290_v21 = vmul.f32 %v6348_v17, %v1275_v18  ;;  %v5445_v25 = vld [vmem:[%s7919_s3 + $0x70] sm:$0xff]  ;;  %v5487_v1 = vld [vmem:[%s7919_s3 + $0x100] sm:$0xff] }
  0x9e   : > { %732 = vmatprep.mubr.f32.mxu0 %v7893_v0 }
  0x9f   : > { %v1415_v11 = vpop.permute.xlu1 %1414  ;;  %v1413_v14 = vpop.permute.xlu0 %1412 }
  0xa0   : > { %v1418_v20 = vsel %vm1416_vm7, %v1415_v11, %v1413_v14  ;;  %v1417_v33 = vsel %vm1416_vm7, %v1413_v14, %v1415_v11 }
  0xa1   : > { %5413 = vmatmul.mubr.msk.f32.gmra.mrb[6].mxu0 %vm630_vm3, %v629_v30  ;;  %v1433_v23 = vmul.f32 %v6353_v19, %v1418_v20  ;;  %v5446_v30 = vld [vmem:[%s7919_s3 + $0x78] sm:$0xff] }
  0xa2   : > { %819 = vmatprep.mubr.f32.mxu0 %v7893_v0 }
  0xa3   : > { %v1557_v27 = vpop.permute.xlu1 %1556  ;;  %v1555_v28 = vpop.permute.xlu0 %1554 }
  0xa4   : > { %v1560_v35 = vsel %vm1558_vm8, %v1557_v27, %v1555_v28  ;;  %v1559_v46 = vsel %vm1558_vm8, %v1555_v28, %v1557_v27 }
  0xa5   : > { %5416 = vmatmul.mubr.msk.f32.vlgmr.msra.gmra.mrb[0].mxu0 %vm630_vm3, %v5404_v37  ;;  %v5454_v37 = vld [vmem:[%s7919_s3 + $0xa0] sm:$0xff]  ;;  %v1575_v38 = vmul.f32 %v6391_v34, %v1560_v35  ;;  %v1574_v51 = vmul.f32 %v6424_v45, %v1559_v46 }
  0xa6   : > { %5426 = vmatpush1.msk.msra.mxu0 %vm643_vm2, %v864_v36  ;;  %825 = vmatprep.mubr.f32.mxu0 %v7893_v0  ;;  %v1432_v36 = vmul.f32 %v6386_v31, %v1417_v33 }
  0xa7   : > { %5436 = vmatprep.subr.msk.mxu0 %vm643_vm2, %v1007_v39  ;;  %v5455_v39 = vld [vmem:[%s7919_s3 + $0xa8] sm:$0xff] }
  0xa9   : > { %5417 = vmatmul.mubr.msk.f32.gmra.mrb[2].mxu0 %vm630_vm3, %v5405_v42  ;;  %v1699_v42 = vpop.permute.xlu1 %1698 }
  0xaa   : > { %831 = vmatprep.mubr.f32.mxu0 %v7893_v0 }
  0xad   : > { %5418 = vmatmul.mubr.msk.f32.gmra.mrb[4].mxu0 %vm630_vm3, %v5406_v43  ;;  %v1697_v43 = vpop.permute.xlu0 %1696 }
  0xae   : > { %837 = vmatprep.mubr.f32.mxu0 %v7893_v0  ;;  %v1702_v49 = vsel %vm1700_vm9, %v1699_v42, %v1697_v43  ;;  %v1701_v57 = vsel %vm1700_vm9, %v1697_v43, %v1699_v42 }
  0xb1   : > { %5419 = vmatmul.mubr.msk.f32.gmra.mrb[6].mxu0 %vm630_vm3, %v5407_v47  ;;  %v6429_v47 = vrot.slane %v5486_v41, %v6166_v7  ;;  %v5466_v7 = vld [vmem:[%s7919_s3 + $0xc8] sm:$0xff] }
  0xb2   : > { %953 = vmatprep.mubr.f32.mxu0 %v7893_v0 }
  0xb3   : > { %7921 = vst [vmem:[#allocation4_spill] sm:$0xff] %v6429_v47 }
  0xb5   : > { %5427 = vmatmul.mubr.msk.f32.vlgmr.msra.gmra.mrb[0].mxu0 %vm630_vm3, %v5421_v53  ;;  %v1717_v53 = vmul.f32 %v6429_v47, %v1702_v49 }
  0xb6   : > { %5437 = vmatpush1.msk.msra.mxu0 %vm643_vm2, %v1006_v52  ;;  %959 = vmatprep.mubr.f32.mxu0 %v7893_v0  ;;  %v5465_v52 = vld [vmem:[%s7919_s3 + $0xc0] sm:$0xff] }
  0xb7   : > { %5447 = vmatprep.subr.msk.mxu0 %vm643_vm2, %v1149_v54  ;;  %v5467_v54 = vld [vmem:[%s7919_s3 + $0xd0] sm:$0xff] }
  0xb8   : > { %v1850_v14 = vpop.permute.xlu1 %1849 }
  0xb9   : > { %5428 = vmatmul.mubr.msk.f32.gmra.mrb[2].mxu0 %vm630_vm3, %v5422_v55  ;;  %v5468_v55 = vld [vmem:[%s7919_s3 + $0xd8] sm:$0xff] }
  0xba   : > { %965 = vmatprep.mubr.f32.mxu0 %v7893_v0 }
  0xbc   : > { %v1855_v28 = vpop.permute.xlu1 %1854 }
  0xbd   : > { %5429 = vmatmul.mubr.msk.f32.gmra.mrb[4].mxu0 %vm630_vm3, %v5423_v56  ;;  %v6458_v56 = vrot.slane %v5486_v41, %v6164_v6  ;;  %v5477_v6 = vld [vmem:[%s7919_s3 + $0xe8] sm:$0xff] }
  0xbe   : > { %971 = vmatprep.mubr.f32.mxu0 %v7893_v0 }
  0xbf   : > { %7922 = vst [vmem:[#allocation5_spill] sm:$0xff] %v6458_v56  ;;  %v1716_v58 = vmul.f32 %v6458_v56, %v1701_v57 }
  0xc1   : > { %5430 = vmatmul.mubr.msk.f32.gmra.mrb[6].mxu0 %vm630_vm3, %v5424_v60  ;;  %v5478_v60 = vld [vmem:[%s7919_s3 + $0xf0] sm:$0xff] }
  0xc2   : > { %1095 = vmatprep.mubr.f32.mxu0 %v7893_v0 }
  0xc5   : > { %5438 = vmatmul.mubr.msk.f32.vlgmr.msra.gmra.mrb[0].mxu0 %vm630_vm3, %v5432_v3  ;;  %v5489_v3 = vld [vmem:[%s7919_s3 + $0x110] sm:$0xff] }
  0xc6   : > { %5448 = vmatpush1.msk.msra.mxu0 %vm643_vm2, %v1148_v2  ;;  %1101 = vmatprep.mubr.f32.mxu0 %v7893_v0  ;;  %v5488_v2 = vld [vmem:[%s7919_s3 + $0x108] sm:$0xff] }
  0xc7   : > { %5458 = vmatprep.subr.msk.mxu0 %vm643_vm2, %v1291_v4  ;;  %v5490_v4 = vld [vmem:[%s7919_s3 + $0x118] sm:$0xff] }
  0xc9   : > { %5439 = vmatmul.mubr.msk.f32.gmra.mrb[2].mxu0 %vm630_vm3, %v5433_v8  ;;  %v1845_v8 = vpop.permute.xlu0 %1844 }
  0xca   : > { %1107 = vmatprep.mubr.f32.mxu0 %v7893_v0 }
  0xcd   : > { %5440 = vmatmul.mubr.msk.f32.gmra.mrb[4].mxu0 %vm630_vm3, %v5434_v9  ;;  %v1860_v41 = vpop.permute.xlu0 %1859 }
  0xce   : > { %1113 = vmatprep.mubr.f32.mxu0 %v7893_v0 }
  0xd1   : > { %5441 = vmatmul.mubr.msk.f32.gmra.mrb[6].mxu0 %vm630_vm3, %v5435_v16 }
  0xd2   : > { %1237 = vmatprep.mubr.f32.mxu0 %v7893_v0 }
  0xd5   : > { %5449 = vmatmul.mubr.msk.f32.vlgmr.msra.gmra.mrb[0].mxu0 %vm630_vm3, %v5443_v22 }
  0xd6   : > { %5459 = vmatpush1.msk.msra.mxu0 %vm643_vm2, %v1290_v21  ;;  %1243 = vmatprep.mubr.f32.mxu0 %v7893_v0 }
  0xd7   : > { %5469 = vmatprep.subr.msk.mxu0 %vm643_vm2, %v1433_v23 }
  0xd9   : > { %5450 = vmatmul.mubr.msk.f32.gmra.mrb[2].mxu0 %vm630_vm3, %v5444_v24 }
  0xda   : > { %1249 = vmatprep.mubr.f32.mxu0 %v7893_v0 }
  0xdd   : > { %5451 = vmatmul.mubr.msk.f32.gmra.mrb[4].mxu0 %vm630_vm3, %v5445_v25 }
  0xde   : > { %1255 = vmatprep.mubr.f32.mxu0 %v7893_v0 }
  0xe1   : > { %5452 = vmatmul.mubr.msk.f32.gmra.mrb[6].mxu0 %vm630_vm3, %v5446_v30 }
  0xe2   : > { %1379 = vmatprep.mubr.f32.mxu0 %v7893_v0 }
  0xe5   : > { %5460 = vmatmul.mubr.msk.f32.vlgmr.msra.gmra.mrb[0].mxu0 %vm630_vm3, %v5454_v37 }
  0xe6   : > { %5470 = vmatpush1.msk.msra.mxu0 %vm643_vm2, %v1432_v36  ;;  %1385 = vmatprep.mubr.f32.mxu0 %v7893_v0 }
  0xe7   : > { %5480 = vmatprep.subr.msk.mxu0 %vm643_vm2, %v1575_v38 }
  0xe9   : > { %5461 = vmatmul.mubr.msk.f32.gmra.mrb[2].mxu0 %vm630_vm3, %v5455_v39 }
  0xea   : > { %1391 = vmatprep.mubr.f32.mxu0 %v7893_v0 }
  0xed   : > { %5462 = vmatmul.mubr.msk.f32.gmra.mrb[4].mxu0 %vm630_vm3, %v5456_v40 }
  0xee   : > { %1397 = vmatprep.mubr.f32.mxu0 %v7893_v0 }
  0xf1   : > { %5463 = vmatmul.mubr.msk.f32.gmra.mrb[6].mxu0 %vm630_vm3, %v5457_v44 }
  0xf2   : > { %1521 = vmatprep.mubr.f32.mxu0 %v7893_v0 }
  0xf5   : > { %5471 = vmatmul.mubr.msk.f32.vlgmr.msra.gmra.mrb[0].mxu0 %vm630_vm3, %v5465_v52 }
  0xf6   : > { %5481 = vmatpush1.msk.msra.mxu0 %vm643_vm2, %v1574_v51  ;;  %1527 = vmatprep.mubr.f32.mxu0 %v7893_v0 }
  0xf7   : > { %5491 = vmatprep.subr.msk.mxu0 %vm643_vm2, %v1717_v53 }
  0xf9   : > { %5472 = vmatmul.mubr.msk.f32.gmra.mrb[2].mxu0 %vm630_vm3, %v5466_v7 }
  0xfa   : > { %1533 = vmatprep.mubr.f32.mxu0 %v7893_v0 }
  0xfd   : > { %5473 = vmatmul.mubr.msk.f32.gmra.mrb[4].mxu0 %vm630_vm3, %v5467_v54 }
  0xfe   : > { %1539 = vmatprep.mubr.f32.mxu0 %v7893_v0 }
 0x101   : > { %5474 = vmatmul.mubr.msk.f32.gmra.mrb[6].mxu0 %vm630_vm3, %v5468_v55 }
 0x102   : > { %1663 = vmatprep.mubr.f32.mxu0 %v7893_v0 }
 0x105   : > { %5482 = vmatmul.mubr.msk.f32.vlgmr.msra.gmra.mrb[0].mxu0 %vm630_vm3, %v5476_v59 }
 0x106   : > { %5492 = vmatpush1.msk.msra.mxu0 %vm643_vm2, %v1716_v58  ;;  %1669 = vmatprep.mubr.f32.mxu0 %v7893_v0 }
 0x109   : > { %5483 = vmatmul.mubr.msk.f32.gmra.mrb[2].mxu0 %vm630_vm3, %v5477_v6 }
 0x10a   : > { %1675 = vmatprep.mubr.f32.mxu0 %v7893_v0 }
 0x10d   : > { %5484 = vmatmul.mubr.msk.f32.gmra.mrb[4].mxu0 %vm630_vm3, %v5478_v60 }
 0x10e   : > { %1681 = vmatprep.mubr.f32.mxu0 %v7893_v0 }
 0x111   : > { %5485 = vmatmul.mubr.msk.f32.gmra.mrb[6].mxu0 %vm630_vm3, %v5479_v62 }
 0x112   : > { %1805 = vmatprep.mubr.f32.mxu0 %v7893_v0 }
 0x115   : > { %5493 = vmatmul.mubr.msk.f32.vlgmr.msra.gmra.mrb[0].mxu0 %vm630_vm3, %v5487_v1 }
 0x116   : > { %1811 = vmatprep.mubr.f32.mxu0 %v7893_v0 }
 0x119   : > { %5494 = vmatmul.mubr.msk.f32.gmra.mrb[2].mxu0 %vm630_vm3, %v5488_v2 }
 0x11a   : > { %1817 = vmatprep.mubr.f32.mxu0 %v7893_v0 }
 0x11d   : > { %5495 = vmatmul.mubr.msk.f32.gmra.mrb[4].mxu0 %vm630_vm3, %v5489_v3 }
 0x11e   : > { %1823 = vmatprep.mubr.f32.mxu0 %v7893_v0 }
 0x121   : > { %5496 = vmatmul.mubr.msk.f32.gmra.mrb[6].mxu0 %vm630_vm3, %v5490_v4 }
 0x122   : > { %2021 = vmatprep.mubr.f32.mxu0 %v7893_v0 }
 0x1e8   : > { %v1807_v9 = vpop.f32.mrb[0].mxu0 }
 0x1e9   : > { %v1862_v10 = vadd.f32 %v1845_v8, %v1807_v9  ;;  %v1809_v11 = vpop.f32.mrb[1].mxu0 }
 0x1ea   : > { %v6506_v16 = vadd.f32 %v1845_v8, %v1809_v11 }
 0x1eb   : > { %v1870_v18 = vsub.f32 0.0, %v1862_v10 }
 0x1ec   : > { %v1871_v20 = vsub.f32 0.0, %v6506_v16  ;;  %v1813_v21 = vpop.f32.mrb[2].mxu0 }
 0x1ed   : > { %v1878_v22 = vmul.f32 1.442695, %v1870_v18  ;;  %v6509_v23 = vadd.f32 %v1850_v14, %v1813_v21  ;;  %v1815_v24 = vpop.f32.mrb[3].mxu0 }
 0x1ee   : > { %v1880_v25 = vmul.f32 1.442695, %v1871_v20  ;;  %v6511_v26 = vadd.f32 %v1850_v14, %v1815_v24 }
 0x1ef   : > { %5954 = vpow2.f32 %v1878_v22  ;;  %v1872_v27 = vsub.f32 0.0, %v6509_v23 }
 0x1f0   : > { %5956 = vpow2.f32 %v1880_v25  ;;  %v1873_v30 = vsub.f32 0.0, %v6511_v26  ;;  %v1819_v33 = vpop.f32.mrb[4].mxu0 }
 0x1f1   : > { %v1882_v35 = vmul.f32 1.442695, %v1872_v27  ;;  %v6515_v36 = vadd.f32 %v1855_v28, %v1819_v33  ;;  %v1821_v37 = vpop.f32.mrb[5].mxu0 }
 0x1f2   : > { %v1884_v38 = vmul.f32 1.442695, %v1873_v30  ;;  %v6517_v39 = vadd.f32 %v1855_v28, %v1821_v37 }
 0x1f3   : > { %5958 = vpow2.f32 %v1882_v35  ;;  %v1874_v40 = vsub.f32 0.0, %v6515_v36 }
 0x1f4   : > { %5960 = vpow2.f32 %v1884_v38  ;;  %v1875_v42 = vsub.f32 0.0, %v6517_v39  ;;  %v1825_v43 = vpop.f32.mrb[6].mxu0 }
 0x1f5   : > { %v1886_v44 = vmul.f32 1.442695, %v1874_v40  ;;  %v1868_v46 = vadd.f32 %v1860_v41, %v1825_v43  ;;  %v1827_v49 = vpop.f32.mrb[7].mxu0 }
 0x1f6   : > { %v1888_v51 = vmul.f32 1.442695, %v1875_v42  ;;  %v1869_v52 = vadd.f32 %v1860_v41, %v1827_v49 }
 0x1f7   : > { %v1876_v53 = vsub.f32 0.0, %v1868_v46 }
 0x1f8   : > { %5962 = vpow2.f32 %v1888_v51  ;;  %v1877_v7 = vsub.f32 0.0, %v1869_v52 }
 0x1f9   : > { %v5955_v54 = vpop.eup %5954  ;;  %5964 = vpow2.f32 %v1886_v44  ;;  %v1890_v55 = vmul.f32 1.442695, %v1876_v53  ;;  %v2872_v53 = vld [vmem:[%s7872_s6] sm:$0xff] }
 0x1fa   : > { %v5957_v57 = vpop.eup %5956  ;;  %v1894_v58 = vadd.f32 1.0, %v5955_v54  ;;  %v1892_v59 = vmul.f32 1.442695, %v1877_v7 }
 0x1fb   : > { %v1895_v6 = vadd.f32 1.0, %v5957_v57  ;;  %5966 = vpow2.f32 %v1890_v55  ;;  %v2987_v55 = vld [vmem:[%s7876_s10] sm:$0xf] }
 0x1fc   : > { %5968 = vrcp.f32 %v1894_v58  ;;  %v2881_v57 = vld [vmem:[%s7874_s8] sm:$0xff] }
 0x1fd   : > { %v5959_v60 = vpop.eup %5958  ;;  %5970 = vpow2.f32 %v1892_v59 }
 0x1fe   : > { %v5961_v62 = vpop.eup %5960  ;;  %v1896_v1 = vadd.f32 1.0, %v5959_v60  ;;  %5972 = vrcp.f32 %v1895_v6 }
 0x1ff   : > { %v1897_v2 = vadd.f32 1.0, %v5961_v62 }
 0x200   : > { %5974 = vrcp.f32 %v1896_v1 }
 0x201   : > { %5976 = vrcp.f32 %v1897_v2 }
 0x202   : > { %v5963_v3 = vpop.eup %5962 }
 0x203   : > { %v5965_v4 = vpop.eup %5964  ;;  %v1899_v9 = vadd.f32 1.0, %v5963_v3 }
 0x204   : > { %v1898_v14 = vadd.f32 1.0, %v5965_v4 }
 0x205   : > { %v5967_v8 = vpop.eup %5966 }
 0x206   : > { %v5969_v11 = vpop.eup %5968  ;;  %v1900_v18 = vadd.f32 1.0, %v5967_v8 }
 0x207   : > { %v6521_v20 = vmul.f32 %v5969_v11, %v1862_v10  ;;  %v5971_v21 = vpop.eup %5970 }
 0x208   : > { %5978 = vrcp.f32 %v1900_v18  ;;  %v5973_v22 = vpop.eup %5972  ;;  %v1901_v24 = vadd.f32 1.0, %v5971_v21 }
 0x209   : > { %5980 = vrcp.f32 %v1899_v9  ;;  %2102 = vrot.lane.b32.xlu1 %v6521_v20, %s7907_s18  ;;  %v6529_v30 = vmul.f32 %v5973_v22, %v6506_v16 }
 0x20a   : > { %v5975_v25 = vpop.eup %5974  ;;  %5982 = vrcp.f32 %v1898_v14 }
 0x20b   : > { %v5977_v27 = vpop.eup %5976  ;;  %v6526_v28 = vmul.f32 %v5975_v25, %v6509_v23  ;;  %5984 = vrcp.f32 %v1901_v24 }
 0x20c   : > { %v6532_v10 = vmul.f32 %v5977_v27, %v6511_v26 }
 0x20d   : > { %2104 = vrot.lane.b32.xlu0 %v6526_v28, %s7907_s18  ;;  %2212 = vrot.lane.b32.xlu1 %v6521_v20, %s7905_s19  ;;  %v5638_v23 = vpack.c.bf16 %v6526_v28, %v6521_v20 }
 0x20e   : > { %v5636_v33 = vpack.c.bf16 %v6532_v10, %v6529_v30 }
 0x210   : > { %5637 = vmatprep.subr.bf16.mxu1 %v5636_v33 }
 0x211   : > { %2214 = vrot.lane.b32.xlu0 %v6526_v28, %s7905_s19  ;;  %2322 = vrot.lane.b32.xlu1 %v6521_v20, %s7903_s1 }
 0x212   : > { %v5979_v16 = vpop.eup %5978  ;;  %5639 = vmatpush1.bf16.msra.mxu1 %v5638_v23 }
 0x213   : > { %v5981_v26 = vpop.eup %5980  ;;  %v6546_v38 = vmul.f32 %v5979_v16, %v1868_v46 }
 0x214   : > { %v5983_v35 = vpop.eup %5982  ;;  %v6553_v40 = vmul.f32 %v5981_v26, %v6517_v39 }
 0x215   : > { %v5985_v37 = vpop.eup %5984  ;;  %2324 = vrot.lane.b32.xlu0 %v6526_v28, %s7903_s1  ;;  %2432 = vrot.lane.b32.xlu1 %v6521_v20, %s7901_s20  ;;  %v6558_v42 = vmul.f32 %v5983_v35, %v6515_v36  ;;  %v5497_v36 = vld [vmem:[%s7871_s5 + $0x20] sm:$0xff] }
 0x216   : > { %v6555_v41 = vmul.f32 %v5985_v37, %v1869_v52 }
 0x217   : > { %v5642_v44 = vpack.c.bf16 %v6546_v38, %v6558_v42 }
 0x218   : > { %v5640_v43 = vpack.c.bf16 %v6555_v41, %v6553_v40 }
 0x219   : > { %2434 = vrot.lane.b32.xlu0 %v6526_v28, %s7901_s20  ;;  %2542 = vrot.lane.b32.xlu1 %v6521_v20, %s7891_s21 }
 0x21a   : > { %5641 = vmatprep.subr.bf16.mxu1 %v5640_v43 }
 0x21b   : > { %5643 = vmatpush1.bf16.msra.mxu1 %v5642_v44 }
 0x21d   : > { %2544 = vrot.lane.b32.xlu0 %v6526_v28, %s7891_s21  ;;  %2652 = vrot.lane.b32.xlu1 %v6521_v20, %s7889_s22 }
 0x21e   : > { %5499 = vmatmul.mubr.msk.f32.vlgmr.msra.gmra.mrb[0].mxu1 %vm1953_vm10, %v5497_v36 }
 0x21f   : > { %2203 = vmatprep.mubr.f32.mxu1 %v7893_v0 }
 0x221   : > { %2654 = vrot.lane.b32.xlu0 %v6526_v28, %s7889_s22  ;;  %1920 = vrot.lane.b32.xlu1 %v6521_v20, %s7923_s29 }
 0x225   : > { %1922 = vrot.lane.b32.xlu0 %v6526_v28, %s7923_s29  ;;  %2110 = vrot.lane.b32.xlu1 %v6529_v30, %s7907_s18 }
 0x229   : > { %2112 = vrot.lane.b32.xlu0 %v6532_v10, %s7907_s18  ;;  %2220 = vrot.lane.b32.xlu1 %v6529_v30, %s7905_s19 }
 0x22d   : > { %2222 = vrot.lane.b32.xlu0 %v6532_v10, %s7905_s19  ;;  %2330 = vrot.lane.b32.xlu1 %v6529_v30, %s7903_s1 }
 0x231   : > { %2332 = vrot.lane.b32.xlu0 %v6532_v10, %s7903_s1  ;;  %2440 = vrot.lane.b32.xlu1 %v6529_v30, %s7901_s20 }
 0x235   : > { %2442 = vrot.lane.b32.xlu0 %v6532_v10, %s7901_s20  ;;  %2550 = vrot.lane.b32.xlu1 %v6529_v30, %s7891_s21 }
 0x239   : > { %2552 = vrot.lane.b32.xlu0 %v6532_v10, %s7891_s21  ;;  %2660 = vrot.lane.b32.xlu1 %v6529_v30, %s7889_s22 }
 0x23d   : > { %2662 = vrot.lane.b32.xlu0 %v6532_v10, %s7889_s22  ;;  %2106 = vrot.lane.b32.xlu1 %v6558_v42, %s7907_s18 }
 0x241   : > { %2216 = vrot.lane.b32.xlu1 %v6558_v42, %s7905_s19  ;;  %2108 = vrot.lane.b32.xlu0 %v6546_v38, %s7907_s18 }
 0x245   : > { %2326 = vrot.lane.b32.xlu1 %v6558_v42, %s7903_s1  ;;  %2218 = vrot.lane.b32.xlu0 %v6546_v38, %s7905_s19 }
 0x249   : > { %2436 = vrot.lane.b32.xlu1 %v6558_v42, %s7901_s20  ;;  %2328 = vrot.lane.b32.xlu0 %v6546_v38, %s7903_s1 }
 0x24d   : > { %2546 = vrot.lane.b32.xlu1 %v6558_v42, %s7891_s21  ;;  %2438 = vrot.lane.b32.xlu0 %v6546_v38, %s7901_s20 }
 0x251   : > { %2656 = vrot.lane.b32.xlu1 %v6558_v42, %s7889_s22  ;;  %2548 = vrot.lane.b32.xlu0 %v6546_v38, %s7891_s21 }
 0x255   : > { %2114 = vrot.lane.b32.xlu1 %v6553_v40, %s7907_s18  ;;  %2658 = vrot.lane.b32.xlu0 %v6546_v38, %s7889_s22 }
 0x259   : > { %1928 = vrot.lane.b32.xlu1 %v6529_v30, %s7923_s29  ;;  %2116 = vrot.lane.b32.xlu0 %v6555_v41, %s7907_s18 }
 0x25d   : > { %2224 = vrot.lane.b32.xlu1 %v6553_v40, %s7905_s19  ;;  %1930 = vrot.lane.b32.xlu0 %v6532_v10, %s7923_s29 }
 0x261   : > { %2334 = vrot.lane.b32.xlu1 %v6553_v40, %s7903_s1  ;;  %2226 = vrot.lane.b32.xlu0 %v6555_v41, %s7905_s19 }
 0x265   : > { %2444 = vrot.lane.b32.xlu1 %v6553_v40, %s7901_s20  ;;  %2764 = vrot.lane.b32.xlu0 %v6526_v28, %s7924_s23 }
 0x269   : > { %2554 = vrot.lane.b32.xlu1 %v6553_v40, %s7891_s21  ;;  %2336 = vrot.lane.b32.xlu0 %v6555_v41, %s7903_s1  ;;  %s7928_s1 = smov 1  }
 0x26d   : > { %2664 = vrot.lane.b32.xlu1 %v6553_v40, %s7889_s22  ;;  %2772 = vrot.lane.b32.xlu0 %v6532_v10, %s7924_s23 }
 0x271   : > { %2762 = vrot.lane.b32.xlu1 %v6521_v20, %s7924_s23  ;;  %2446 = vrot.lane.b32.xlu0 %v6555_v41, %s7901_s20  ;;  %s7929_s20 = smov 127  }
 0x275   : > { %2770 = vrot.lane.b32.xlu1 %v6529_v30, %s7924_s23  ;;  %1926 = vrot.lane.b32.xlu0 %v6546_v38, %s7923_s29 }
 0x279   : > { %1924 = vrot.lane.b32.xlu1 %v6558_v42, %s7923_s29  ;;  %2556 = vrot.lane.b32.xlu0 %v6555_v41, %s7891_s21  ;;  %s578_s21 = scalar_lea.vmem %s7927_s2, %s6140_s26 }
 0x27b   : > { %v2103_v39 = vpop.permute.xlu1 %2102 }
 0x27d   : > { %1932 = vrot.lane.b32.xlu1 %v6553_v40, %s7923_s29  ;;  %2768 = vrot.lane.b32.xlu0 %v6546_v38, %s7924_s23 }
 0x27f   : > { %v6673_v46 = vpop.permute.xlu1 %2212  ;;  %v2105_v49 = vpop.permute.xlu0 %2104 }
 0x281   : > { %2766 = vrot.lane.b32.xlu1 %v6558_v42, %s7924_s23  ;;  %2666 = vrot.lane.b32.xlu0 %v6555_v41, %s7889_s22 }
 0x283   : > { %v6679_v51 = vpop.permute.xlu1 %2322  ;;  %v6681_v52 = vpop.permute.xlu0 %2214 }
 0x285   : > { %2774 = vrot.lane.b32.xlu1 %v6553_v40, %s7924_s23  ;;  %1934 = vrot.lane.b32.xlu0 %v6555_v41, %s7923_s29 }
 0x287   : > { %v6690_v7 = vpop.permute.xlu1 %2432  ;;  %v6692_v54 = vpop.permute.xlu0 %2324 }
 0x289   : > { %2875 = vperm.xlu1 %5951, %v2872_v53   ;;  %2776 = vrot.lane.b32.xlu0 %v6555_v41, %s7924_s23 }
 0x28b   : > { %v6702_v58 = vpop.permute.xlu1 %2542  ;;  %v6704_v59 = vpop.permute.xlu0 %2434 }
 0x28d   : > { %2990 = vperm.xlu1 %5951, %v2987_v55   ;;  %2884 = vperm.xlu0 %5950, %v2881_v57  }
 0x28f   : > { %v6706_v6 = vpop.permute.xlu1 %2652  ;;  %v6708_v60 = vpop.permute.xlu0 %2544 }
 0x293   : > { %v1921_v62 = vpop.permute.xlu1 %1920  ;;  %v6710_v1 = vpop.permute.xlu0 %2654 }
 0x297   : > { %v2111_v2 = vpop.permute.xlu1 %2110  ;;  %v1923_v3 = vpop.permute.xlu0 %1922 }
 0x298   : > { %v2118_v4 = vsel %vm848_vm1, %v2103_v39, %v2111_v2  ;;  %v2122_v8 = vsel %vm848_vm1, %v2111_v2, %v2103_v39 }
 0x299   : > { %v2126_v20 = vmul.f32 %v2122_v8, %v6218_v29  ;;  %v2127_v21 = vmul.f32 %v2118_v4, %v6183_v15 }
 0x29b   : > { %v2221_v9 = vpop.permute.xlu1 %2220  ;;  %v2113_v11 = vpop.permute.xlu0 %2112 }
 0x29c   : > { %v2119_v14 = vsel %vm848_vm1, %v2105_v49, %v2113_v11  ;;  %v2123_v18 = vsel %vm848_vm1, %v2113_v11, %v2105_v49 }
 0x29d   : > { %v2128_v22 = vmul.f32 %v2123_v18, %v6218_v29  ;;  %v2129_v24 = vmul.f32 %v2119_v14, %v6183_v15  ;;  %v2228_v14 = vsel %vm990_vm4, %v6673_v46, %v2221_v9 }
 0x29e   : > { %v2237_v56 = vmul.f32 %v2228_v14, %v6227_v32 }
 0x29f   : > { %v5646_v25 = vpack.c.bf16 %v2128_v22, %v2126_v20  ;;  %v6724_v27 = vpop.permute.xlu1 %2330  ;;  %v2223_v28 = vpop.permute.xlu0 %2222  ;;  %v5644_v30 = vpack.c.bf16 %v2129_v24, %v2127_v21 }
 0x2a0   : > { %v2229_v4 = vsel %vm990_vm4, %v6681_v52, %v2223_v28  ;;  %v2233_v21 = vsel %vm990_vm4, %v2223_v28, %v6681_v52 }
 0x2a1   : > { %5645 = vmatprep.subr.bf16.mxu1 %v5644_v30  ;;  %v2239_v22 = vmul.f32 %v2229_v4, %v6227_v32 }
 0x2a2   : > { %5647 = vmatpush1.bf16.msra.mxu1 %v5646_v25 }
 0x2a3   : > { %v6726_v10 = vpop.permute.xlu1 %2440  ;;  %v6728_v33 = vpop.permute.xlu0 %2332 }
 0x2a7   : > { %v6730_v23 = vpop.permute.xlu1 %2550  ;;  %v6732_v16 = vpop.permute.xlu0 %2442 }
 0x2ab   : > { %v6734_v26 = vpop.permute.xlu1 %2660  ;;  %v6736_v35 = vpop.permute.xlu0 %2552 }
 0x2af   : > { %v2107_v37 = vpop.permute.xlu1 %2106  ;;  %v6738_v38 = vpop.permute.xlu0 %2662 }
 0x2b3   : > { %v2217_v40 = vpop.permute.xlu1 %2216  ;;  %v2109_v41 = vpop.permute.xlu0 %2108 }
 0x2b7   : > { %v6740_v42 = vpop.permute.xlu1 %2326  ;;  %v2219_v43 = vpop.permute.xlu0 %2218 }
 0x2bb   : > { %v6742_v44 = vpop.permute.xlu1 %2436  ;;  %v6744_v36 = vpop.permute.xlu0 %2328 }
 0x2bf   : > { %v6746_v39 = vpop.permute.xlu1 %2546  ;;  %v6748_v49 = vpop.permute.xlu0 %2438 }
 0x2c3   : > { %v6750_v53 = vpop.permute.xlu1 %2656  ;;  %v6752_v55 = vpop.permute.xlu0 %2548 }
 0x2c7   : > { %v2115_v57 = vpop.permute.xlu1 %2114  ;;  %v6754_v2 = vpop.permute.xlu0 %2658 }
 0x2c8   : > { %v2120_v8 = vsel %vm848_vm1, %v2107_v37, %v2115_v57  ;;  %v2124_v11 = vsel %vm848_vm1, %v2115_v57, %v2107_v37 }
 0x2c9   : > { %v2130_v30 = vmul.f32 %v2124_v11, %v6218_v29  ;;  %v2131_v37 = vmul.f32 %v2120_v8, %v6183_v15 }
 0x2cb   : > { %v1929_v18 = vpop.permute.xlu1 %1928  ;;  %v2117_v20 = vpop.permute.xlu0 %2116 }
 0x2cc   : > { %v2121_v24 = vsel %vm848_vm1, %v2109_v41, %v2117_v20  ;;  %v2125_v25 = vsel %vm848_vm1, %v2117_v20, %v2109_v41  ;;  %v1936_v52 = vsel %vm609_vm0, %v1921_v62, %v1929_v18  ;;  %v1940_v28 = vsel %vm609_vm0, %v1929_v18, %v1921_v62 }
 0x2cd   : > { %v2132_v57 = vmul.f32 %v2125_v25, %v6218_v29  ;;  %v2133_v0 = vmul.f32 %v2121_v24, %v6183_v15  ;;  %v2232_v41 = vsel %vm990_vm4, %v2221_v9, %v6673_v46  ;;  %v2238_v25 = vmul.f32 %v2233_v21, %v6272_v48 }
 0x2ce   : > { %v5652_v29 = vpack.c.bf16 %v2239_v22, %v2237_v56  ;;  %v1944_v15 = vmul.f32 %v1940_v28, %v6176_v12  ;;  %v1945_v62 = vmul.f32 %v1936_v52, %v6179_v13  ;;  %v2338_v56 = vsel %vm1132_vm5, %v6679_v51, %v6724_v27 }
 0x2cf   : > { %v5650_v4 = vpack.c.bf16 %v2132_v57, %v2130_v30  ;;  %v2225_v11 = vpop.permute.xlu1 %2224  ;;  %v1931_v20 = vpop.permute.xlu0 %1930  ;;  %v5648_v8 = vpack.c.bf16 %v2133_v0, %v2131_v37  ;;  %v2236_v0 = vmul.f32 %v2232_v41, %v6272_v48  ;;  %v2343_v28 = vsel %vm1132_vm5, %v6728_v33, %v6692_v54 }
 0x2d0   : > { %v1937_v24 = vsel %vm609_vm0, %v1923_v3, %v1931_v20  ;;  %v1941_v14 = vsel %vm609_vm0, %v1931_v20, %v1923_v3  ;;  %v2230_v9 = vsel %vm990_vm4, %v2217_v40, %v2225_v11  ;;  %v2234_v21 = vsel %vm990_vm4, %v2225_v11, %v2217_v40  ;;  %v5500_v40 = vld [vmem:[%s7871_s5 + $0x8] sm:$0xff] }
 0x2d1   : > { %v1946_v18 = vmul.f32 %v1941_v14, %v6176_v12  ;;  %v1947_v46 = vmul.f32 %v1937_v24, %v6179_v13  ;;  %5649 = vmatprep.subr.bf16.mxu1 %v5648_v8  ;;  %v2339_v3 = vsel %vm1132_vm5, %v6692_v54, %v6728_v33  ;;  %v5654_v52 = vpack.c.bf16 %v2238_v25, %v2236_v0 }
 0x2d2   : > { %5651 = vmatpush1.bf16.msra.mxu1 %v5650_v4  ;;  %v2241_v4 = vmul.f32 %v2230_v9, %v6227_v32  ;;  %v2349_v8 = vmul.f32 %v2339_v3, %v6277_v50  ;;  %v2342_v54 = vsel %vm1132_vm5, %v6724_v27, %v6679_v51  ;;  %v7925_v14 = vmov 0.0  }
 0x2d3   : > { %v5630_v22 = vpack.c.bf16 %v1946_v18, %v1944_v15  ;;  %v2335_v30 = vpop.permute.xlu1 %2334  ;;  %5653 = vmatprep.subr.bf16.mxu1 %v5652_v29  ;;  %v2227_v37 = vpop.permute.xlu0 %2226  ;;  %v5628_v57 = vpack.c.bf16 %v1947_v46, %v1945_v62  ;;  %v2240_v29 = vmul.f32 %v2234_v21, %v6272_v48  ;;  %v2347_v62 = vmul.f32 %v2338_v56, %v6277_v50 }
 0x2d4   : > { %v2231_v41 = vsel %vm990_vm4, %v2219_v43, %v2227_v37  ;;  %v2235_v15 = vsel %vm990_vm4, %v2227_v37, %v2219_v43  ;;  %v2348_v18 = vmul.f32 %v2343_v28, %v6310_v61  ;;  %v2346_v46 = vmul.f32 %v2342_v54, %v6310_v61 }
 0x2d5   : > { %v2242_v11 = vmul.f32 %v2235_v15, %v6272_v48  ;;  %v2243_v20 = vmul.f32 %v2231_v41, %v6227_v32  ;;  %5629 = vmatprep.subr.bf16.mxu0 %v5628_v57  ;;  %5501 = vmatmul.mubr.msk.f32.vlgmr.msra.gmra.mrb[0].mxu1 %vm1953_vm10, %v5500_v40  ;;  %v2340_v0 = vsel %vm1132_vm5, %v6740_v42, %v2335_v30 }
 0x2d6   : > { %5631 = vmatpush1.bf16.msra.mxu0 %v5630_v22  ;;  %5655 = vmatpush1.bf16.msra.mxu1 %v5654_v52  ;;  %v2344_v51 = vsel %vm1132_vm5, %v2335_v30, %v6740_v42  ;;  %v5660_v27 = vpack.c.bf16 %v2349_v8, %v2347_v62  ;;  %v2452_v9 = vsel %vm1274_vm6, %v6726_v10, %v6690_v7  ;;  %v5502_v22 = vld [vmem:[%s7871_s5 + $0x10] sm:$0xff] }
 0x2d7   : > { %v5658_v33 = vpack.c.bf16 %v2242_v11, %v2240_v29  ;;  %v2445_v43 = vpop.permute.xlu1 %2444  ;;  %v6829_v25 = vpop.permute.xlu0 %2764  ;;  %v5656_v24 = vpack.c.bf16 %v2243_v20, %v2241_v4  ;;  %2313 = vmatprep.mubr.f32.mxu1 %v7925_v14  ;;  %v2453_v21 = vsel %vm1274_vm6, %v6732_v16, %v6704_v59  ;;  %v5662_v37 = vpack.c.bf16 %v2348_v18, %v2346_v46  ;;  %v5504_v46 = vld [vmem:[%s7871_s5 + $0x18] sm:$0xff] }
 0x2d8   : > { %v2449_v42 = vsel %vm1274_vm6, %v6704_v59, %v6732_v16  ;;  %v2350_v40 = vmul.f32 %v2344_v51, %v6310_v61  ;;  %v2351_v52 = vmul.f32 %v2340_v0, %v6277_v50  ;;  %v2459_v15 = vmul.f32 %v2453_v21, %v6315_v63 }
 0x2d9   : > { %5657 = vmatprep.subr.bf16.mxu1 %v5656_v24  ;;  %v2448_v59 = vsel %vm1274_vm6, %v6690_v7, %v6726_v10  ;;  %v2457_v11 = vmul.f32 %v2452_v9, %v6315_v63  ;;  %v2458_v20 = vmul.f32 %v2449_v42, %v6348_v17  ;;  %v2450_v7 = vsel %vm1274_vm6, %v6742_v44, %v2445_v43 }
 0x2da   : > { %5659 = vmatpush1.bf16.msra.mxu1 %v5658_v33  ;;  %v2456_v8 = vmul.f32 %v2448_v59, %v6348_v17  ;;  %v2454_v10 = vsel %vm1274_vm6, %v2445_v43, %v6742_v44  ;;  %v2562_v33 = vsel %vm1416_vm7, %v6730_v23, %v6702_v58  ;;  %v2563_v24 = vsel %vm1416_vm7, %v6736_v35, %v6708_v60 }
 0x2db   : > { %v2555_v56 = vpop.permute.xlu1 %2554  ;;  %v2337_v3 = vpop.permute.xlu0 %2336  ;;  %5661 = vmatprep.subr.bf16.mxu1 %v5660_v27  ;;  %v5668_v54 = vpack.c.bf16 %v2459_v15, %v2457_v11  ;;  %v2559_v43 = vsel %vm1416_vm7, %v6708_v60, %v6736_v35  ;;  %v2460_v27 = vmul.f32 %v2450_v7, %v6348_v17  ;;  %v2461_v9 = vmul.f32 %v2454_v10, %v6315_v63 }
 0x2dc   : > { %v2341_v30 = vsel %vm1132_vm5, %v6744_v36, %v2337_v3  ;;  %v2345_v57 = vsel %vm1132_vm5, %v2337_v3, %v6744_v36  ;;  %v5670_v44 = vpack.c.bf16 %v2458_v20, %v2456_v8  ;;  %v2558_v60 = vsel %vm1416_vm7, %v6702_v58, %v6730_v23 }
 0x2dd   : > { %v2352_v28 = vmul.f32 %v2345_v57, %v6310_v61  ;;  %v2353_v41 = vmul.f32 %v2341_v30, %v6277_v50  ;;  %5503 = vmatmul.mubr.msk.f32.vlgmr.msra.gmra.mrb[0].mxu1 %vm1953_vm10, %v5502_v22  ;;  %v2569_v22 = vmul.f32 %v2563_v24, %v6353_v19  ;;  %v2567_v30 = vmul.f32 %v2562_v33, %v6353_v19 }
 0x2de   : > { %5663 = vmatpush1.bf16.msra.mxu1 %v5662_v37  ;;  %2423 = vmatprep.mubr.f32.mxu1 %v7925_v14  ;;  %v2568_v57 = vmul.f32 %v2559_v43, %v6386_v31  ;;  %v2564_v58 = vsel %vm1416_vm7, %v2555_v56, %v6746_v39 }
 0x2df   : > { %v5666_v16 = vpack.c.bf16 %v2352_v28, %v2350_v40  ;;  %v6872_v36 = vpop.permute.xlu1 %2664  ;;  %v6874_v29 = vpop.permute.xlu0 %2772  ;;  %v5664_v4 = vpack.c.bf16 %v2353_v41, %v2351_v52  ;;  %v2566_v40 = vmul.f32 %v2558_v60, %v6386_v31  ;;  %v2560_v52 = vsel %vm1416_vm7, %v6746_v39, %v2555_v56 }
 0x2e0   : > { %v5676_v23 = vpack.c.bf16 %v2569_v22, %v2567_v30  ;;  %v2672_v28 = vsel %vm1558_vm8, %v6734_v26, %v6706_v6  ;;  %v2673_v41 = vsel %vm1558_vm8, %v6738_v38, %v6710_v1  ;;  %v2669_v39 = vsel %vm1558_vm8, %v6710_v1, %v6738_v38 }
 0x2e1   : > { %5665 = vmatprep.subr.bf16.mxu1 %v5664_v4  ;;  %v5678_v4 = vpack.c.bf16 %v2568_v57, %v2566_v40  ;;  %v2570_v20 = vmul.f32 %v2560_v52, %v6386_v31  ;;  %v2571_v8 = vmul.f32 %v2564_v58, %v6353_v19  ;;  %v2668_v1 = vsel %vm1558_vm8, %v6706_v6, %v6734_v26 }
 0x2e2   : > { %5667 = vmatpush1.bf16.msra.mxu1 %v5666_v16  ;;  %v5506_v16 = vld [vmem:[%s7871_s5 + $0x28] sm:$0xff]  ;;  %v2679_v38 = vmul.f32 %v2673_v41, %v6391_v34  ;;  %v2670_v6 = vsel %vm1558_vm8, %v6750_v53, %v6872_v36  ;;  %v2674_v26 = vsel %vm1558_vm8, %v6872_v36, %v6750_v53  ;;  %v2783_v53 = vsel %vm1700_vm9, %v6874_v29, %v6829_v25  ;;  %v7926_v41 = vld [vmem:[#allocation5_spill] sm:$0xff] }
 0x2e3   : > { %v6894_v62 = vpop.permute.xlu1 %2762  ;;  %v2447_v18 = vpop.permute.xlu0 %2446  ;;  %5669 = vmatprep.subr.bf16.mxu1 %v5668_v54  ;;  %v2678_v54 = vmul.f32 %v2669_v39, %v6424_v45  ;;  %v2681_v60 = vmul.f32 %v2674_v26, %v6391_v34 }
 0x2e4   : > { %v2451_v0 = vsel %vm1274_vm6, %v6748_v49, %v2447_v18  ;;  %v2455_v51 = vsel %vm1274_vm6, %v2447_v18, %v6748_v49 }
 0x2e5   : > { %v2462_v21 = vmul.f32 %v2451_v0, %v6348_v17  ;;  %v2463_v3 = vmul.f32 %v2455_v51, %v6315_v63  ;;  %5505 = vmatmul.mubr.msk.f32.vlgmr.msra.gmra.mrb[0].mxu1 %vm1953_vm10, %v5504_v46  ;;  %v2677_v46 = vmul.f32 %v2672_v28, %v6391_v34  ;;  %v2789_v28 = vmul.f32 %v2783_v53, %v6429_v47 }
 0x2e6   : > { %5671 = vmatpush1.bf16.msra.mxu1 %v5670_v44  ;;  %2533 = vmatprep.mubr.f32.mxu1 %v7925_v14  ;;  %v2676_v44 = vmul.f32 %v2668_v1, %v6424_v45  ;;  %v5510_v1 = vld [vmem:[%s7871_s5 + $0x38] sm:$0xff] }
 0x2e7   : > { %v5674_v35 = vpack.c.bf16 %v2462_v21, %v2460_v27  ;;  %v2771_v49 = vpop.permute.xlu1 %2770  ;;  %v6919_v37 = vpop.permute.xlu0 %1926  ;;  %v5672_v42 = vpack.c.bf16 %v2463_v3, %v2461_v9  ;;  %v5684_v43 = vpack.c.bf16 %v2679_v38, %v2677_v46  ;;  %v5508_v21 = vld [vmem:[%s7871_s5 + $0x30] sm:$0xff]  ;;  %v2680_v3 = vmul.f32 %v2670_v6, %v6424_v45  ;;  %v1952_v6 = vld [vmem:[%s7871_s5] sm:$0xff] }
 0x2e8   : > { %v5686_v0 = vpack.c.bf16 %v2678_v54, %v2676_v44  ;;  %v2782_v51 = vsel %vm1700_vm9, %v2771_v49, %v6894_v62 }
 0x2e9   : > { %5673 = vmatprep.subr.bf16.mxu1 %v5672_v42  ;;  %v2787_v57 = vmul.f32 %v2782_v51, %v6429_v47 }
 0x2ea   : > { %5675 = vmatpush1.bf16.msra.mxu1 %v5674_v35  ;;  %v2778_v35 = vsel %vm1700_vm9, %v6894_v62, %v2771_v49 }
 0x2eb   : > { %v1925_v15 = vpop.permute.xlu1 %1924  ;;  %v2557_v59 = vpop.permute.xlu0 %2556  ;;  %5677 = vmatprep.subr.bf16.mxu1 %v5676_v23 }
 0x2ec   : > { %v2561_v56 = vsel %vm1416_vm7, %v6752_v55, %v2557_v59  ;;  %v2565_v11 = vsel %vm1416_vm7, %v2557_v59, %v6752_v55  ;;  %v2786_v59 = vmul.f32 %v2778_v35, %v7926_v41 }
 0x2ed   : > { %v2572_v7 = vmul.f32 %v2561_v56, %v6386_v31  ;;  %v2573_v10 = vmul.f32 %v2565_v11, %v6353_v19  ;;  %5507 = vmatmul.mubr.msk.f32.vlgmr.msra.gmra.mrb[0].mxu1 %vm1953_vm10, %v5506_v16 }
 0x2ee   : > { %5679 = vmatpush1.bf16.msra.mxu1 %v5678_v4  ;;  %2643 = vmatprep.mubr.f32.mxu1 %v7925_v14 }
 0x2ef   : > { %v5682_v55 = vpack.c.bf16 %v2572_v7, %v2570_v20  ;;  %v1933_v33 = vpop.permute.xlu1 %1932  ;;  %v2769_v24 = vpop.permute.xlu0 %2768  ;;  %v5680_v18 = vpack.c.bf16 %v2573_v10, %v2571_v8  ;;  %v5692_v8 = vpack.c.bf16 %v2789_v28, %v2787_v57 }
 0x2f0   : > { %v1938_v40 = vsel %vm609_vm0, %v1925_v15, %v1933_v33  ;;  %v1942_v52 = vsel %vm609_vm0, %v1933_v33, %v1925_v15 }
 0x2f1   : > { %5681 = vmatprep.subr.bf16.mxu1 %v5680_v18 }
 0x2f2   : > { %5683 = vmatpush1.bf16.msra.mxu1 %v5682_v55 }
 0x2f3   : > { %v2767_v27 = vpop.permute.xlu1 %2766  ;;  %v2667_v9 = vpop.permute.xlu0 %2666  ;;  %5685 = vmatprep.subr.bf16.mxu1 %v5684_v43 }
 0x2f4   : > { %v2671_v36 = vsel %vm1558_vm8, %v6754_v2, %v2667_v9  ;;  %v2675_v22 = vsel %vm1558_vm8, %v2667_v9, %v6754_v2  ;;  %v2779_v2 = vsel %vm1700_vm9, %v6829_v25, %v6874_v29  ;;  %v1948_v25 = vmul.f32 %v1942_v52, %v6176_v12 }
 0x2f5   : > { %v2682_v42 = vmul.f32 %v2671_v36, %v6424_v45  ;;  %v2683_v30 = vmul.f32 %v2675_v22, %v6391_v34  ;;  %5509 = vmatmul.mubr.msk.f32.vlgmr.msra.gmra.mrb[0].mxu1 %vm1953_vm10, %v5508_v21  ;;  %v1949_v29 = vmul.f32 %v1938_v40, %v6179_v13  ;;  %v2788_v56 = vmul.f32 %v2779_v2, %v7926_v41 }
 0x2f6   : > { %5687 = vmatpush1.bf16.msra.mxu1 %v5686_v0  ;;  %2753 = vmatprep.mubr.f32.mxu1 %v7925_v14 }
 0x2f7   : > { %v5690_v62 = vpack.c.bf16 %v2682_v42, %v2680_v3  ;;  %v2775_v49 = vpop.permute.xlu1 %2774  ;;  %v1935_v58 = vpop.permute.xlu0 %1934  ;;  %v5688_v23 = vpack.c.bf16 %v2683_v30, %v2681_v60  ;;  %v5694_v38 = vpack.c.bf16 %v2788_v56, %v2786_v59  ;;  %v2880_v60 = vld [vmem:[%s7873_s7] sm:$0xff] }
 0x2f8   : > { %v1939_v15 = vsel %vm609_vm0, %v6919_v37, %v1935_v58  ;;  %v1943_v16 = vsel %vm609_vm0, %v1935_v58, %v6919_v37  ;;  %v2780_v11 = vsel %vm1700_vm9, %v2767_v27, %v2775_v49  ;;  %v2784_v20 = vsel %vm1700_vm9, %v2775_v49, %v2767_v27 }
 0x2f9   : > { %v1950_v4 = vmul.f32 %v1943_v16, %v6176_v12  ;;  %v1951_v39 = vmul.f32 %v1939_v15, %v6179_v13  ;;  %5689 = vmatprep.subr.bf16.mxu1 %v5688_v23  ;;  %v2790_v33 = vmul.f32 %v2780_v11, %v7926_v41  ;;  %v2791_v18 = vmul.f32 %v2784_v20, %v6429_v47 }
 0x2fa   : > { %5691 = vmatpush1.bf16.msra.mxu1 %v5690_v62 }
 0x2fb   : > { %v5634_v7 = vpack.c.bf16 %v1950_v4, %v1948_v25  ;;  %v2777_v37 = vpop.permute.xlu0 %2776  ;;  %v5632_v10 = vpack.c.bf16 %v1951_v39, %v1949_v29  ;;  %5693 = vmatprep.subr.bf16.mxu1 %v5692_v8  ;;  %v2972_v25 = vld [vmem:[%s578_s21] sm:$0xff] }
 0x2fc   : > { %v2781_v54 = vsel %vm1700_vm9, %v2769_v24, %v2777_v37  ;;  %v2785_v55 = vsel %vm1700_vm9, %v2777_v37, %v2769_v24  ;;  %v5512_v24 = vld [vmem:[%s7871_s5 + $0x40] sm:$0xff]  ;;  %v2974_v29 = vcombine.low %v2972_v25, %v2972_v25 }
 0x2fd   : > { %v2792_v46 = vmul.f32 %v2781_v54, %v7926_v41  ;;  %v2793_v44 = vmul.f32 %v2785_v55, %v6429_v47  ;;  %5633 = vmatprep.subr.bf16.mxu0 %v5632_v10  ;;  %5511 = vmatmul.mubr.msk.f32.vlgmr.msra.gmra.mrb[0].mxu1 %vm1953_vm10, %v5510_v1  ;;  %v2986_v10 = vld [vmem:[%s7875_s9] sm:$0xf] }
 0x2fe   : > { %5635 = vmatpush1.bf16.msra.mxu0 %v5634_v7  ;;  %5695 = vmatpush1.bf16.msra.mxu1 %v5694_v38 }
 0x2ff   : > { %v5698_v26 = vpack.c.bf16 %v2792_v46, %v2790_v33  ;;  %v5696_v43 = vpack.c.bf16 %v2793_v44, %v2791_v18  ;;  %2863 = vmatprep.mubr.f32.mxu1 %v7925_v14  ;;  %v4200_v18 = vld [vmem:[%s7878_s12] sm:$0xff]  ;;  %v4201_v46 = vld [vmem:[%s7878_s12 + $0x8] sm:$0xff]  ;;  %v4202_v44 = vld [vmem:[%s7878_s12 + $0x10] sm:$0xff] }
 0x301   : > { %5697 = vmatprep.subr.bf16.mxu1 %v5696_v43  ;;  %5498 = vmatmul.mubr.msk.f32.vlgmr.msra.gmra.mrb[8].mxu0 %vm1953_vm10, %v1952_v6  ;;  %v4203_v6 = vld [vmem:[%s7878_s12 + $0x18] sm:$0xff] }
 0x302   : > { %4382 = vmatprep.mubr.f32.mxu0 %v7925_v14  ;;  %5699 = vmatpush1.bf16.msra.mxu1 %v5698_v26 }
 0x305   : > { %5513 = vmatmul.mubr.msk.f32.vlgmr.msra.gmra.mrb[0].mxu1 %vm1953_vm10, %v5512_v24 }
 0x306   : > { %2955 = vmatprep.mubr.f32.mxu1 %v7925_v14 }
 0x308   : > { %v2876_v53 = vpop.permute.xlu1 %2875 }
 0x30c   : > { %v2885_v35 = vpop.permute.xlu0 %2884  ;;  %v2991_v1 = vpop.permute.xlu1 %2990 }
 0x3d4   : > { %v2023_v0 = vpop.f32.mrb[8].mxu0 }
 0x3d5   : > { %v2025_v51 = vpop.f32.mrb[9].mxu0 }
 0x3d8   : > { %v2865_v27 = vpop.f32.mrb[0].mxu1 }
 0x3d9   : > { %v5772_v9 = vadd.f32 %v2865_v27, %v2023_v0  ;;  %v2867_v21 = vpop.f32.mrb[1].mxu1 }
 0x3da   : > { %v5773_v3 = vadd.f32 %v2867_v21, %v2025_v51  ;;  %v3086_v21 = vld [vmem:[%s7877_s11] sm:$0xff] }
 0x3db   : > { %v2878_v22 = vadd.f32 %v5772_v9, %v2876_v53 }
 0x3dc   : > { %v2879_v36 = vadd.f32 %v5773_v3, %v2876_v53 }
 0x3de   : > { %2891 = vmatprep.subr.mxu1 %v2879_v36  ;;  %v7932_v36 = vld [vmem:[#allocation2_spill] sm:$0xff] }
 0x3df   : > { %2892 = vmatpush1.msra.mxu1 %v2878_v22 }
 0x3e0   : > { %5514 = vmatmul.mubr.msk.f32.vlgmr.msra.gmra.mrb[2].mxu1 %vm2887_vm11, %v2880_v60  ;;  %v3087_v60 = vld [vmem:[%s7877_s11 + $0x8] sm:$0xff] }
 0x3e1   : > { %3066 = vmatprep.mubr.f32.mxu1 %v7925_v14 }
 0x4b3   : > { %v2957_v42 = vpop.f32.mrb[2].mxu1 }
 0x4b4   : > { %v2958_v30 = vadd.f32 %v2957_v42, %v2885_v35  ;;  %v2959_v57 = vpop.f32.mrb[3].mxu1  ;;  %v3089_v42 = vld [vmem:[%s7877_s11 + $0x18] sm:$0xff] }
 0x4b5   : > { %v2960_v40 = vadd.f32 %v2959_v57, %v2885_v35  ;;  %v3088_v35 = vld [vmem:[%s7877_s11 + $0x10] sm:$0xff] }
 0x4b6   : > { %v2962_v52 = vmax.f32 %v2958_v30, -30.0 }
 0x4b7   : > { %v2963_v2 = vmax.f32 %v2960_v40, -30.0  ;;  %v5248_v62 = vcombine.low %v2958_v30, %v2960_v40 }
 0x4b8   : > { %v2964_v49 = vmin.f32 %v2962_v52, 20.0 }
 0x4b9   : > { %v2965_v58 = vmin.f32 %v2963_v2, 20.0  ;;  %5250 = vst [vmem:[%s588_s25] sm:$0xff] %v5248_v62  ;;  %v5518_v2 = vld [vmem:[%s7877_s11 + $0x80] sm:$0xff]  ;;  %v7933_v62 = vld [vmem:[#allocation3_spill] sm:$0xff] }
 0x4ba   : > { %v2966_v23 = vmul.f32 0.5, %v2964_v49 }
 0x4bb   : > { %v2967_v28 = vmul.f32 0.5, %v2965_v58  ;;  %v5253_v59 = vcombine.high %v2964_v49, %v2965_v58 }
 0x4bc   : > { %v2968_v15 = vmul.f32 1.442695, %v2966_v23  ;;  %v5519_v23 = vld [vmem:[%s7877_s11 + $0x88] sm:$0xff] }
 0x4bd   : > { %v2970_v16 = vmul.f32 1.442695, %v2967_v28  ;;  %5255 = vst [vmem:[%s593_s30] sm:$0xff] %v5253_v59  ;;  %v5520_v28 = vld [vmem:[%s7877_s11 + $0x90] sm:$0xff]  ;;  %v5521_v59 = vld [vmem:[%s7877_s11 + $0x98] sm:$0xff]  ;;  %s583_s30 = scalar_lea.vmem %s7881_s15, %s6140_s26 }
 0x4be   : > { %5986 = vpow2.f32 %v2968_v15 }
 0x4bf   : > { %5988 = vpow2.f32 %v2970_v16 }
 0x4c8   : > { %v5987_v4 = vpop.eup %5986 }
 0x4c9   : > { %v5989_v39 = vpop.eup %5988  ;;  %v2976_v56 = vmul.f32 %v5987_v4, %v2974_v29  ;;  %v5534_v4 = vld [vmem:[%s7877_s11 + $0x20] sm:$0xff] }
 0x4ca   : > { %v2977_v11 = vmul.f32 %v5989_v39, %v2972_v25 }
 0x4cb   : > { %v2980_v20 = vrot.slane %v2976_v56, 4 }
 0x4cc   : > { %v2981_v8 = vrot.slane %v2977_v11, 4  ;;  %v5535_v11 = vld [vmem:[%s7877_s11 + $0x28] sm:$0xff] }
 0x4cd   : > { %v2984_v37 = vadd.f32 %v2980_v20, %v2958_v30  ;;  %v5536_v20 = vld [vmem:[%s7877_s11 + $0x30] sm:$0xff] }
 0x4ce   : > { %v2985_v7 = vadd.f32 %v2981_v8, %v2960_v40  ;;  %v5537_v8 = vld [vmem:[%s7877_s11 + $0x38] sm:$0xff] }
 0x4d0   : > { %5515 = vmatprep.subr.msk.mxu1 %vm643_vm2, %v2985_v7 }
 0x4d1   : > { %5516 = vmatpush1.msk.msra.mxu1 %vm643_vm2, %v2984_v37 }
 0x4d2   : > { %5517 = vmatmul.mubr.msk.f32.vlgmr.msra.gmra.mrb[4].mxu1 %vm630_vm3, %v2986_v10 }
 0x4d3   : > { %3172 = vmatprep.mubr.f32.mxu1 %v7925_v14 }
 0x5a5   : > { %v3068_v38 = vpop.f32.mrb[4].mxu1 }
 0x5a6   : > { %v3069_v54 = vadd.f32 %v3068_v38, %v2991_v1  ;;  %v3070_v55 = vpop.f32.mrb[5].mxu1  ;;  %v5544_v38 = vld [vmem:[%s7877_s11 + $0x40] sm:$0xff] }
 0x5a7   : > { %v3071_v33 = vadd.f32 %v3070_v55, %v2991_v1 }
 0x5a8   : > { %3078 = vrot.lane.b32.xlu0 %v3069_v54, %s7923_s29 }
 0x5a9   : > { %3080 = vrot.lane.b32.xlu1 %v3071_v33, %s7923_s29 }
 0x5ac   : > { %3304 = vrot.lane.b32.xlu0 %v3069_v54, %s7907_s18 }
 0x5ad   : > { %3306 = vrot.lane.b32.xlu1 %v3071_v33, %s7907_s18  ;;  %s7934_s18 = smov 16  }
 0x5b0   : > { %3432 = vrot.lane.b32.xlu0 %v3069_v54, %s7905_s19 }
 0x5b1   : > { %3434 = vrot.lane.b32.xlu1 %v3071_v33, %s7905_s19  ;;  %s7935_s19 = smov 15  }
 0x5b4   : > { %3560 = vrot.lane.b32.xlu0 %v3069_v54, %s7928_s1 }
 0x5b5   : > { %3562 = vrot.lane.b32.xlu1 %v3071_v33, %s7928_s1 }
 0x5b8   : > { %3688 = vrot.lane.b32.xlu0 %v3069_v54, %s7929_s20 }
 0x5b9   : > { %3690 = vrot.lane.b32.xlu1 %v3071_v33, %s7929_s20 }
 0x5bc   : > { %3816 = vrot.lane.b32.xlu0 %v3069_v54, %s7930_s27 }
 0x5bd   : > { %3818 = vrot.lane.b32.xlu1 %v3071_v33, %s7930_s27 }
 0x5c0   : > { %3944 = vrot.lane.b32.xlu0 %v3069_v54, %s7931_s0 }
 0x5c1   : > { %3946 = vrot.lane.b32.xlu1 %v3071_v33, %s7931_s0 }
 0x5c4   : > { %4072 = vrot.lane.b32.xlu0 %v3069_v54, %s7924_s23 }
 0x5c5   : > { %4074 = vrot.lane.b32.xlu1 %v3071_v33, %s7924_s23 }
 0x5c8   : > { %4206 = vperm.xlu0 %5950, %v4200_v18   ;;  %v5546_v18 = vld [vmem:[%s7877_s11 + $0x50] sm:$0xff] }
 0x5c9   : > { %4211 = vperm.xlu1 %5951, %v4201_v46   ;;  %v5547_v46 = vld [vmem:[%s7877_s11 + $0x58] sm:$0xff] }
 0x5cc   : > { %4216 = vperm.xlu0 %5950, %v4202_v44  }
 0x5cd   : > { %4221 = vperm.xlu1 %5951, %v4203_v6  }
 0x61a   : > { %v3079_v26 = vpop.permute.xlu0 %3078 }
 0x61b   : > { %v3081_v43 = vpop.permute.xlu1 %3080 }
 0x61c   : > { %v3082_v24 = vsel %vm609_vm0, %v3079_v26, %v3081_v43  ;;  %v3083_v0 = vsel %vm609_vm0, %v3081_v43, %v3079_v26 }
 0x61d   : > { %v3084_v51 = vmul.f32 %v3083_v0, %v6176_v12  ;;  %v3085_v27 = vmul.f32 %v3082_v24, %v6179_v13  ;;  %v5554_v24 = vld [vmem:[%s7877_s11 + $0x60] sm:$0xff] }
 0x61e   : > { %v3305_v9 = vpop.permute.xlu0 %3304 }
 0x61f   : > { %v3307_v3 = vpop.permute.xlu1 %3306  ;;  %5522 = vmatprep.subr.msk.mxu1 %vm643_vm2, %v3085_v27  ;;  %v5555_v27 = vld [vmem:[%s7877_s11 + $0x68] sm:$0xff] }
 0x620   : > { %v3308_v53 = vsel %vm848_vm1, %v3305_v9, %v3307_v3  ;;  %5523 = vmatpush1.msk.msra.mxu1 %vm643_vm2, %v3084_v51  ;;  %v3309_v40 = vsel %vm848_vm1, %v3307_v3, %v3305_v9  ;;  %v5556_v9 = vld [vmem:[%s7877_s11 + $0x70] sm:$0xff] }
 0x621   : > { %v3311_v22 = vmul.f32 %v3308_v53, %v7932_v36  ;;  %5524 = vmatmul.mubr.msk.f32.vlgmr.msra.gmra.mrb[6].mxu1 %vm630_vm3, %v3086_v21  ;;  %5528 = vmatprep.subr.msk.mxu1 %vm643_vm2, %v3071_v33  ;;  %v3310_v49 = vmul.f32 %v3309_v40, %v7933_v62  ;;  %v5545_v33 = vld [vmem:[%s7877_s11 + $0x48] sm:$0xff]  ;;  %v5557_v21 = vld [vmem:[%s7877_s11 + $0x78] sm:$0xff]  ;;  %v5566_v40 = vld [vmem:[%s7877_s11 + $0xb0] sm:$0xff] }
 0x622   : > { %5529 = vmatpush1.msk.msra.mxu1 %vm643_vm2, %v3069_v54  ;;  %3178 = vmatprep.mubr.f32.mxu1 %v7925_v14  ;;  %v3433_v30 = vpop.permute.xlu0 %3432 }
 0x623   : > { %5538 = vmatprep.subr.msk.mxu1 %vm643_vm2, %v3311_v22  ;;  %v3435_v57 = vpop.permute.xlu1 %3434 }
 0x624   : > { %v3436_v52 = vsel %vm990_vm4, %v3433_v30, %v3435_v57  ;;  %v3437_v25 = vsel %vm990_vm4, %v3435_v57, %v3433_v30  ;;  %v5565_v57 = vld [vmem:[%s7877_s11 + $0xa8] sm:$0xff] }
 0x625   : > { %5525 = vmatmul.mubr.msk.f32.gmra.mrb[8].mxu1 %vm630_vm3, %v3087_v60  ;;  %v3439_v58 = vmul.f32 %v3436_v52, %v6227_v32  ;;  %v3438_v39 = vmul.f32 %v3437_v25, %v6272_v48  ;;  %v5567_v52 = vld [vmem:[%s7877_s11 + $0xb8] sm:$0xff]  ;;  %v5576_v25 = vld [vmem:[%s7877_s11 + $0xd0] sm:$0xff] }
 0x626   : > { %3184 = vmatprep.mubr.f32.mxu1 %v7925_v14  ;;  %v3561_v15 = vpop.permute.xlu0 %3560 }
 0x627   : > { %v3563_v16 = vpop.permute.xlu1 %3562 }
 0x628   : > { %v3564_v29 = vsel %vm1132_vm5, %v3561_v15, %v3563_v16  ;;  %v3565_v10 = vsel %vm1132_vm5, %v3563_v16, %v3561_v15  ;;  %v5575_v16 = vld [vmem:[%s7877_s11 + $0xc8] sm:$0xff] }
 0x629   : > { %5526 = vmatmul.mubr.msk.f32.gmra.mrb[10].mxu1 %vm630_vm3, %v3088_v35  ;;  %v3567_v56 = vmul.f32 %v3564_v29, %v6277_v50  ;;  %v3566_v54 = vmul.f32 %v3565_v10, %v6310_v61  ;;  %v5564_v35 = vld [vmem:[%s7877_s11 + $0xa0] sm:$0xff]  ;;  %v5577_v29 = vld [vmem:[%s7877_s11 + $0xd8] sm:$0xff]  ;;  %v5596_v10 = vld [vmem:[%s7877_s11 + $0x110] sm:$0xff] }
 0x62a   : > { %3190 = vmatprep.mubr.f32.mxu1 %v7925_v14  ;;  %v3689_v7 = vpop.permute.xlu0 %3688 }
 0x62b   : > { %v3691_v37 = vpop.permute.xlu1 %3690 }
 0x62c   : > { %v3693_v1 = vsel %vm1274_vm6, %v3691_v37, %v3689_v7  ;;  %v3692_v26 = vsel %vm1274_vm6, %v3689_v7, %v3691_v37  ;;  %v5594_v7 = vld [vmem:[%s7877_s11 + $0x100] sm:$0xff]  ;;  %v5595_v37 = vld [vmem:[%s7877_s11 + $0x108] sm:$0xff] }
 0x62d   : > { %5527 = vmatmul.mubr.msk.f32.gmra.mrb[12].mxu1 %vm630_vm3, %v3089_v42  ;;  %v3695_v55 = vmul.f32 %v3693_v1, %v6315_v63  ;;  %v3694_v0 = vmul.f32 %v3692_v26, %v6348_v17  ;;  %v5597_v1 = vld [vmem:[%s7877_s11 + $0x118] sm:$0xff] }
 0x62e   : > { %3279 = vmatprep.mubr.f32.mxu1 %v7925_v14  ;;  %v3817_v44 = vpop.permute.xlu0 %3816 }
 0x62f   : > { %v3819_v6 = vpop.permute.xlu1 %3818 }
 0x630   : > { %v3821_v43 = vsel %vm1416_vm7, %v3819_v6, %v3817_v44  ;;  %v3820_v22 = vsel %vm1416_vm7, %v3817_v44, %v3819_v6 }
 0x631   : > { %5530 = vmatmul.mubr.msk.f32.vlgmr.msra.gmra.mrb[6].mxu1 %vm630_vm3, %v5518_v2  ;;  %v3823_v51 = vmul.f32 %v3821_v43, %v6353_v19  ;;  %v3822_v42 = vmul.f32 %v3820_v22, %v6386_v31 }
 0x632   : > { %5539 = vmatpush1.msk.msra.mxu1 %vm643_vm2, %v3310_v49  ;;  %3285 = vmatprep.mubr.f32.mxu1 %v7925_v14  ;;  %v3945_v3 = vpop.permute.xlu0 %3944 }
 0x633   : > { %5548 = vmatprep.subr.msk.mxu1 %vm643_vm2, %v3439_v58  ;;  %v3947_v53 = vpop.permute.xlu1 %3946 }
 0x634   : > { %v3949_v60 = vsel %vm1558_vm8, %v3947_v53, %v3945_v3  ;;  %v3948_v58 = vsel %vm1558_vm8, %v3945_v3, %v3947_v53 }
 0x635   : > { %5531 = vmatmul.mubr.msk.f32.gmra.mrb[8].mxu1 %vm630_vm3, %v5519_v23  ;;  %v3951_v30 = vmul.f32 %v3949_v60, %v6391_v34 }
 0x636   : > { %3291 = vmatprep.mubr.f32.mxu1 %v7925_v14  ;;  %v4073_v2 = vpop.permute.xlu0 %4072 }
 0x637   : > { %v4075_v49 = vpop.permute.xlu1 %4074 }
 0x638   : > { %v4077_v23 = vsel %vm1700_vm9, %v4075_v49, %v4073_v2 }
 0x639   : > { %5532 = vmatmul.mubr.msk.f32.gmra.mrb[10].mxu1 %vm630_vm3, %v5520_v28  ;;  %v5574_v28 = vld [vmem:[%s7877_s11 + $0xc0] sm:$0xff]  ;;  %v4079_v15 = vmul.f32 %v4077_v23, %v6429_v47 }
 0x63a   : > { %3297 = vmatprep.mubr.f32.mxu1 %v7925_v14 }
 0x63d   : > { %5533 = vmatmul.mubr.msk.f32.gmra.mrb[12].mxu1 %vm630_vm3, %v5521_v59  ;;  %v3950_v59 = vmul.f32 %v3948_v58, %v6424_v45 }
 0x63e   : > { %3399 = vmatprep.mubr.f32.mxu1 %v7925_v14 }
 0x641   : > { %5540 = vmatmul.mubr.msk.f32.vlgmr.msra.gmra.mrb[6].mxu1 %vm630_vm3, %v5534_v4  ;;  %v4076_v4 = vsel %vm1700_vm9, %v4073_v2, %v4075_v49 }
 0x642   : > { %5549 = vmatpush1.msk.msra.mxu1 %vm643_vm2, %v3438_v39  ;;  %3405 = vmatprep.mubr.f32.mxu1 %v7925_v14  ;;  %v5584_v39 = vld [vmem:[%s7877_s11 + $0xe0] sm:$0xff] }
 0x643   : > { %5558 = vmatprep.subr.msk.mxu1 %vm643_vm2, %v3567_v56  ;;  %v4078_v56 = vmul.f32 %v4076_v4, %v7926_v41 }
 0x645   : > { %5541 = vmatmul.mubr.msk.f32.gmra.mrb[8].mxu1 %vm630_vm3, %v5535_v11  ;;  %v5585_v11 = vld [vmem:[%s7877_s11 + $0xe8] sm:$0xff] }
 0x646   : > { %3411 = vmatprep.mubr.f32.mxu1 %v7925_v14 }
 0x649   : > { %5542 = vmatmul.mubr.msk.f32.gmra.mrb[10].mxu1 %vm630_vm3, %v5536_v20  ;;  %v5586_v20 = vld [vmem:[%s7877_s11 + $0xf0] sm:$0xff] }
 0x64a   : > { %3417 = vmatprep.mubr.f32.mxu1 %v7925_v14 }
 0x64d   : > { %5543 = vmatmul.mubr.msk.f32.gmra.mrb[12].mxu1 %vm630_vm3, %v5537_v8  ;;  %v5587_v8 = vld [vmem:[%s7877_s11 + $0xf8] sm:$0xff] }
 0x64e   : > { %3527 = vmatprep.mubr.f32.mxu1 %v7925_v14 }
 0x651   : > { %5550 = vmatmul.mubr.msk.f32.vlgmr.msra.gmra.mrb[6].mxu1 %vm630_vm3, %v5544_v38  ;;  %v4207_v38 = vpop.permute.xlu0 %4206 }
 0x652   : > { %5559 = vmatpush1.msk.msra.mxu1 %vm643_vm2, %v3566_v54  ;;  %3533 = vmatprep.mubr.f32.mxu1 %v7925_v14 }
 0x653   : > { %5568 = vmatprep.subr.msk.mxu1 %vm643_vm2, %v3695_v55 }
 0x655   : > { %5551 = vmatmul.mubr.msk.f32.gmra.mrb[8].mxu1 %vm630_vm3, %v5545_v33  ;;  %v4217_v2 = vpop.permute.xlu0 %4216 }
 0x656   : > { %3539 = vmatprep.mubr.f32.mxu1 %v7925_v14 }
 0x659   : > { %5552 = vmatmul.mubr.msk.f32.gmra.mrb[10].mxu1 %vm630_vm3, %v5546_v18 }
 0x65a   : > { %3545 = vmatprep.mubr.f32.mxu1 %v7925_v14 }
 0x65d   : > { %5553 = vmatmul.mubr.msk.f32.gmra.mrb[12].mxu1 %vm630_vm3, %v5547_v46  ;;  %v4212_v46 = vpop.permute.xlu1 %4211 }
 0x65e   : > { %3655 = vmatprep.mubr.f32.mxu1 %v7925_v14 }
 0x661   : > { %5560 = vmatmul.mubr.msk.f32.vlgmr.msra.gmra.mrb[6].mxu1 %vm630_vm3, %v5554_v24 }
 0x662   : > { %5569 = vmatpush1.msk.msra.mxu1 %vm643_vm2, %v3694_v0  ;;  %3661 = vmatprep.mubr.f32.mxu1 %v7925_v14 }
 0x663   : > { %5578 = vmatprep.subr.msk.mxu1 %vm643_vm2, %v3823_v51 }
 0x665   : > { %5561 = vmatmul.mubr.msk.f32.gmra.mrb[8].mxu1 %vm630_vm3, %v5555_v27 }
 0x666   : > { %3667 = vmatprep.mubr.f32.mxu1 %v7925_v14 }
 0x669   : > { %5562 = vmatmul.mubr.msk.f32.gmra.mrb[10].mxu1 %vm630_vm3, %v5556_v9 }
 0x66a   : > { %3673 = vmatprep.mubr.f32.mxu1 %v7925_v14 }
 0x66d   : > { %5563 = vmatmul.mubr.msk.f32.gmra.mrb[12].mxu1 %vm630_vm3, %v5557_v21 }
 0x66e   : > { %3783 = vmatprep.mubr.f32.mxu1 %v7925_v14 }
 0x671   : > { %5570 = vmatmul.mubr.msk.f32.vlgmr.msra.gmra.mrb[6].mxu1 %vm630_vm3, %v5564_v35 }
 0x672   : > { %5579 = vmatpush1.msk.msra.mxu1 %vm643_vm2, %v3822_v42  ;;  %3789 = vmatprep.mubr.f32.mxu1 %v7925_v14 }
 0x673   : > { %5588 = vmatprep.subr.msk.mxu1 %vm643_vm2, %v3951_v30 }
 0x675   : > { %5571 = vmatmul.mubr.msk.f32.gmra.mrb[8].mxu1 %vm630_vm3, %v5565_v57 }
 0x676   : > { %3795 = vmatprep.mubr.f32.mxu1 %v7925_v14 }
 0x679   : > { %5572 = vmatmul.mubr.msk.f32.gmra.mrb[10].mxu1 %vm630_vm3, %v5566_v40 }
 0x67a   : > { %3801 = vmatprep.mubr.f32.mxu1 %v7925_v14 }
 0x67d   : > { %5573 = vmatmul.mubr.msk.f32.gmra.mrb[12].mxu1 %vm630_vm3, %v5567_v52 }
 0x67e   : > { %3911 = vmatprep.mubr.f32.mxu1 %v7925_v14 }
 0x681   : > { %5580 = vmatmul.mubr.msk.f32.vlgmr.msra.gmra.mrb[6].mxu1 %vm630_vm3, %v5574_v28 }
 0x682   : > { %5589 = vmatpush1.msk.msra.mxu1 %vm643_vm2, %v3950_v59  ;;  %3917 = vmatprep.mubr.f32.mxu1 %v7925_v14  ;;  %v4222_v59 = vpop.permute.xlu1 %4221 }
 0x683   : > { %5598 = vmatprep.subr.msk.mxu1 %vm643_vm2, %v4079_v15 }
 0x685   : > { %5581 = vmatmul.mubr.msk.f32.gmra.mrb[8].mxu1 %vm630_vm3, %v5575_v16 }
 0x686   : > { %3923 = vmatprep.mubr.f32.mxu1 %v7925_v14 }
 0x689   : > { %5582 = vmatmul.mubr.msk.f32.gmra.mrb[10].mxu1 %vm630_vm3, %v5576_v25 }
 0x68a   : > { %3929 = vmatprep.mubr.f32.mxu1 %v7925_v14 }
 0x68d   : > { %5583 = vmatmul.mubr.msk.f32.gmra.mrb[12].mxu1 %vm630_vm3, %v5577_v29 }
 0x68e   : > { %4039 = vmatprep.mubr.f32.mxu1 %v7925_v14 }
 0x691   : > { %5590 = vmatmul.mubr.msk.f32.vlgmr.msra.gmra.mrb[6].mxu1 %vm630_vm3, %v5584_v39 }
 0x692   : > { %5599 = vmatpush1.msk.msra.mxu1 %vm643_vm2, %v4078_v56  ;;  %4045 = vmatprep.mubr.f32.mxu1 %v7925_v14 }
 0x695   : > { %5591 = vmatmul.mubr.msk.f32.gmra.mrb[8].mxu1 %vm630_vm3, %v5585_v11 }
 0x696   : > { %4051 = vmatprep.mubr.f32.mxu1 %v7925_v14 }
 0x699   : > { %5592 = vmatmul.mubr.msk.f32.gmra.mrb[10].mxu1 %vm630_vm3, %v5586_v20 }
 0x69a   : > { %4057 = vmatprep.mubr.f32.mxu1 %v7925_v14 }
 0x69d   : > { %5593 = vmatmul.mubr.msk.f32.gmra.mrb[12].mxu1 %vm630_vm3, %v5587_v8 }
 0x69e   : > { %4167 = vmatprep.mubr.f32.mxu1 %v7925_v14 }
 0x6a1   : > { %5600 = vmatmul.mubr.msk.f32.vlgmr.msra.gmra.mrb[6].mxu1 %vm630_vm3, %v5594_v7 }
 0x6a2   : > { %4173 = vmatprep.mubr.f32.mxu1 %v7925_v14 }
 0x6a5   : > { %5601 = vmatmul.mubr.msk.f32.gmra.mrb[8].mxu1 %vm630_vm3, %v5595_v37 }
 0x6a6   : > { %4179 = vmatprep.mubr.f32.mxu1 %v7925_v14 }
 0x6a9   : > { %5602 = vmatmul.mubr.msk.f32.gmra.mrb[10].mxu1 %vm630_vm3, %v5596_v10 }
 0x6aa   : > { %4185 = vmatprep.mubr.f32.mxu1 %v7925_v14 }
 0x6ad   : > { %5603 = vmatmul.mubr.msk.f32.gmra.mrb[12].mxu1 %vm630_vm3, %v5597_v1 }
 0x774   : > { %v4169_v54 = vpop.f32.mrb[6].mxu1 }
 0x775   : > { %v4224_v55 = vadd.f32 %v4207_v38, %v4169_v54  ;;  %v4171_v33 = vpop.f32.mrb[7].mxu1 }
 0x776   : > { %v4225_v51 = vadd.f32 %v4207_v38, %v4171_v33 }
 0x777   : > { %v4232_v18 = vsub.f32 0.0, %v4224_v55 }
 0x778   : > { %v4175_v44 = vpop.f32.mrb[8].mxu1  ;;  %v4233_v3 = vsub.f32 0.0, %v4225_v51 }
 0x779   : > { %v4240_v6 = vmul.f32 1.442695, %v4232_v18  ;;  %v4226_v26 = vadd.f32 %v4212_v46, %v4175_v44  ;;  %v4177_v43 = vpop.f32.mrb[9].mxu1 }
 0x77a   : > { %v4227_v53 = vadd.f32 %v4212_v46, %v4177_v43  ;;  %v4242_v35 = vmul.f32 1.442695, %v4233_v3 }
 0x77b   : > { %5990 = vpow2.f32 %v4240_v6  ;;  %v4234_v24 = vsub.f32 0.0, %v4226_v26 }
 0x77c   : > { %v4181_v0 = vpop.f32.mrb[10].mxu1  ;;  %v4235_v42 = vsub.f32 0.0, %v4227_v53 }
 0x77d   : > { %v4244_v27 = vmul.f32 1.442695, %v4234_v24  ;;  %v4183_v9 = vpop.f32.mrb[11].mxu1  ;;  %v4228_v49 = vadd.f32 %v4217_v2, %v4181_v0 }
 0x77e   : > { %v4246_v40 = vmul.f32 1.442695, %v4235_v42  ;;  %v4229_v37 = vadd.f32 %v4217_v2, %v4183_v9 }
 0x77f   : > { %5992 = vpow2.f32 %v4244_v27  ;;  %v4236_v15 = vsub.f32 0.0, %v4228_v49 }
 0x780   : > { %v4187_v21 = vpop.f32.mrb[12].mxu1  ;;  %v4237_v54 = vsub.f32 0.0, %v4229_v37 }
 0x781   : > { %v4189_v22 = vpop.f32.mrb[13].mxu1  ;;  %v4230_v16 = vadd.f32 %v4222_v59, %v4187_v21  ;;  %v4248_v56 = vmul.f32 1.442695, %v4236_v15 }
 0x782   : > { %v4250_v44 = vmul.f32 1.442695, %v4237_v54 }
 0x783   : > { %v4238_v11 = vsub.f32 0.0, %v4230_v16 }
 0x785   : > { %v5991_v60 = vpop.eup %5990  ;;  %v4252_v8 = vmul.f32 1.442695, %v4238_v11 }
 0x786   : > { %v4256_v30 = vadd.f32 1.0, %v5991_v60 }
 0x788   : > { %5994 = vrcp.f32 %v4256_v30 }
 0x789   : > { %v5993_v57 = vpop.eup %5992  ;;  %5996 = vpow2.f32 %v4242_v35 }
 0x78a   : > { %v4258_v52 = vadd.f32 1.0, %v5993_v57 }
 0x78c   : > { %5998 = vrcp.f32 %v4258_v52 }
 0x78d   : > { %6000 = vpow2.f32 %v4246_v40 }
 0x792   : > { %v5995_v58 = vpop.eup %5994 }
 0x793   : > { %v5997_v23 = vpop.eup %5996  ;;  %v7344_v28 = vmul.f32 %v5995_v58, %v4224_v55  ;;  %v4231_v55 = vadd.f32 %v4222_v59, %v4189_v22 }
 0x794   : > { %v4257_v29 = vadd.f32 1.0, %v5997_v23 }
 0x795   : > { %4282 = vrot.lane.b32.xlu0 %v7344_v28, %s7923_s29  ;;  %v4239_v6 = vsub.f32 0.0, %v4231_v55 }
 0x796   : > { %v5999_v25 = vpop.eup %5998  ;;  %6002 = vrcp.f32 %v4257_v29 }
 0x797   : > { %v6001_v4 = vpop.eup %6000  ;;  %v7348_v39 = vmul.f32 %v5999_v25, %v4226_v26  ;;  %6004 = vpow2.f32 %v4248_v56  ;;  %v4254_v43 = vmul.f32 1.442695, %v4239_v6 }
 0x798   : > { %v4259_v20 = vadd.f32 1.0, %v6001_v4 }
 0x799   : > { %4284 = vrot.lane.b32.xlu1 %v7348_v39, %s7923_s29  ;;  %4463 = vrot.lane.b32.xlu0 %v7344_v28, %s7934_s18 }
 0x79a   : > { %6006 = vrcp.f32 %v4259_v20 }
 0x79b   : > { %6008 = vpow2.f32 %v4252_v8 }
 0x79d   : > { %4465 = vrot.lane.b32.xlu1 %v7348_v39, %s7934_s18  ;;  %4573 = vrot.lane.b32.xlu0 %v7344_v28, %s7935_s19 }
 0x7a0   : > { %v6003_v7 = vpop.eup %6002 }
 0x7a1   : > { %4575 = vrot.lane.b32.xlu1 %v7348_v39, %s7935_s19  ;;  %4683 = vrot.lane.b32.xlu0 %v7344_v28, %s7928_s1  ;;  %v6005_v10 = vpop.eup %6004  ;;  %v7366_v1 = vmul.f32 %v6003_v7, %v4225_v51 }
 0x7a2   : > { %v4260_v33 = vadd.f32 1.0, %v6005_v10 }
 0x7a4   : > { %v6007_v38 = vpop.eup %6006  ;;  %6010 = vrcp.f32 %v4260_v33 }
 0x7a5   : > { %4685 = vrot.lane.b32.xlu1 %v7348_v39, %s7928_s1  ;;  %4793 = vrot.lane.b32.xlu0 %v7344_v28, %s7929_s20  ;;  %v6009_v18 = vpop.eup %6008  ;;  %v7372_v46 = vmul.f32 %v6007_v38, %v4227_v53  ;;  %6012 = vpow2.f32 %v4250_v44 }
 0x7a6   : > { %v4262_v26 = vadd.f32 1.0, %v6009_v18 }
 0x7a7   : > { %v5708_v47 = vpack.c.bf16 %v7372_v46, %v7366_v1 }
 0x7a8   : > { %6014 = vrcp.f32 %v4262_v26 }
 0x7a9   : > { %4795 = vrot.lane.b32.xlu1 %v7348_v39, %s7929_s20  ;;  %4290 = vrot.lane.b32.xlu0 %v7366_v1, %s7923_s29  ;;  %6016 = vpow2.f32 %v4254_v43 }
 0x7ad   : > { %4292 = vrot.lane.b32.xlu1 %v7372_v46, %s7923_s29  ;;  %4471 = vrot.lane.b32.xlu0 %v7366_v1, %s7934_s18 }
 0x7ae   : > { %v6011_v24 = vpop.eup %6010 }
 0x7af   : > { %v6013_v0 = vpop.eup %6012  ;;  %v7390_v51 = vmul.f32 %v6011_v24, %v4228_v49  ;;  %v5233_v49 = vld [vmem:[%s7880_s14] sm:$0xf] }
 0x7b0   : > { %v4261_v9 = vadd.f32 1.0, %v6013_v0 }
 0x7b1   : > { %4473 = vrot.lane.b32.xlu1 %v7372_v46, %s7934_s18  ;;  %4581 = vrot.lane.b32.xlu0 %v7366_v1, %s7935_s19 }
 0x7b2   : > { %v6015_v27 = vpop.eup %6014  ;;  %6018 = vrcp.f32 %v4261_v9 }
 0x7b3   : > { %v6017_v21 = vpop.eup %6016  ;;  %v7396_v3 = vmul.f32 %v6015_v27, %v4230_v16 }
 0x7b4   : > { %v4263_v53 = vadd.f32 1.0, %v6017_v21 }
 0x7b5   : > { %4583 = vrot.lane.b32.xlu1 %v7372_v46, %s7935_s19  ;;  %4691 = vrot.lane.b32.xlu0 %v7366_v1, %s7928_s1 }
 0x7b6   : > { %6020 = vrcp.f32 %v4263_v53 }
 0x7b9   : > { %4693 = vrot.lane.b32.xlu1 %v7372_v46, %s7928_s1  ;;  %4801 = vrot.lane.b32.xlu0 %v7366_v1, %s7929_s20 }
 0x7bc   : > { %v6019_v22 = vpop.eup %6018 }
 0x7bd   : > { %4803 = vrot.lane.b32.xlu1 %v7372_v46, %s7929_s20  ;;  %4286 = vrot.lane.b32.xlu0 %v7390_v51, %s7923_s29  ;;  %v7414_v60 = vmul.f32 %v6019_v22, %v4229_v37 }
 0x7c0   : > { %v6021_v35 = vpop.eup %6020 }
 0x7c1   : > { %4288 = vrot.lane.b32.xlu1 %v7396_v3, %s7923_s29  ;;  %4467 = vrot.lane.b32.xlu0 %v7390_v51, %s7934_s18  ;;  %v7420_v42 = vmul.f32 %v6021_v35, %v4231_v55 }
 0x7c5   : > { %4469 = vrot.lane.b32.xlu1 %v7396_v3, %s7934_s18  ;;  %4577 = vrot.lane.b32.xlu0 %v7390_v51, %s7935_s19 }
 0x7c9   : > { %4579 = vrot.lane.b32.xlu1 %v7396_v3, %s7935_s19  ;;  %4687 = vrot.lane.b32.xlu0 %v7390_v51, %s7928_s1 }
 0x7cd   : > { %4689 = vrot.lane.b32.xlu1 %v7396_v3, %s7928_s1  ;;  %4797 = vrot.lane.b32.xlu0 %v7390_v51, %s7929_s20 }
 0x7d1   : > { %4799 = vrot.lane.b32.xlu1 %v7396_v3, %s7929_s20  ;;  %4294 = vrot.lane.b32.xlu0 %v7414_v60, %s7923_s29 }
 0x7d5   : > { %4296 = vrot.lane.b32.xlu1 %v7420_v42, %s7923_s29  ;;  %4903 = vrot.lane.b32.xlu0 %v7344_v28, %s7930_s27 }
 0x7d9   : > { %4905 = vrot.lane.b32.xlu1 %v7348_v39, %s7930_s27  ;;  %4475 = vrot.lane.b32.xlu0 %v7414_v60, %s7934_s18 }
 0x7dd   : > { %4913 = vrot.lane.b32.xlu1 %v7372_v46, %s7930_s27  ;;  %4585 = vrot.lane.b32.xlu0 %v7414_v60, %s7935_s19 }
 0x7e1   : > { %4909 = vrot.lane.b32.xlu1 %v7396_v3, %s7930_s27  ;;  %4695 = vrot.lane.b32.xlu0 %v7414_v60, %s7928_s1 }
 0x7e5   : > { %4477 = vrot.lane.b32.xlu1 %v7420_v42, %s7934_s18  ;;  %4805 = vrot.lane.b32.xlu0 %v7414_v60, %s7929_s20 }
 0x7e9   : > { %5015 = vrot.lane.b32.xlu1 %v7348_v39, %s7931_s0  ;;  %4911 = vrot.lane.b32.xlu0 %v7366_v1, %s7930_s27 }
 0x7ed   : > { %4587 = vrot.lane.b32.xlu1 %v7420_v42, %s7935_s19  ;;  %4907 = vrot.lane.b32.xlu0 %v7390_v51, %s7930_s27 }
 0x7f1   : > { %5023 = vrot.lane.b32.xlu1 %v7372_v46, %s7931_s0  ;;  %4915 = vrot.lane.b32.xlu0 %v7414_v60, %s7930_s27 }
 0x7f5   : > { %4697 = vrot.lane.b32.xlu1 %v7420_v42, %s7928_s1  ;;  %5013 = vrot.lane.b32.xlu0 %v7344_v28, %s7931_s0 }
 0x7f9   : > { %5019 = vrot.lane.b32.xlu1 %v7396_v3, %s7931_s0  ;;  %5021 = vrot.lane.b32.xlu0 %v7366_v1, %s7931_s0 }
 0x7fd   : > { %4807 = vrot.lane.b32.xlu1 %v7420_v42, %s7929_s20  ;;  %5017 = vrot.lane.b32.xlu0 %v7390_v51, %s7931_s0 }
 0x801   : > { %5125 = vrot.lane.b32.xlu1 %v7348_v39, %s7924_s23  ;;  %5025 = vrot.lane.b32.xlu0 %v7414_v60, %s7931_s0 }
 0x805   : > { %4917 = vrot.lane.b32.xlu1 %v7420_v42, %s7930_s27  ;;  %5123 = vrot.lane.b32.xlu0 %v7344_v28, %s7924_s23 }
 0x807   : > { %v4283_v30 = vpop.permute.xlu0 %4282 }
 0x809   : > { %5133 = vrot.lane.b32.xlu1 %v7372_v46, %s7924_s23  ;;  %5131 = vrot.lane.b32.xlu0 %v7366_v1, %s7924_s23 }
 0x80b   : > { %v4285_v57 = vpop.permute.xlu1 %4284  ;;  %v4464_v40 = vpop.permute.xlu0 %4463 }
 0x80d   : > { %5027 = vrot.lane.b32.xlu1 %v7420_v42, %s7931_s0  ;;  %5127 = vrot.lane.b32.xlu0 %v7390_v51, %s7924_s23 }
 0x80f   : > { %v4466_v52 = vpop.permute.xlu1 %4465  ;;  %v4574_v2 = vpop.permute.xlu0 %4573 }
 0x811   : > { %5129 = vrot.lane.b32.xlu1 %v7396_v3, %s7924_s23  ;;  %5135 = vrot.lane.b32.xlu0 %v7414_v60, %s7924_s23 }
 0x813   : > { %v4576_v58 = vpop.permute.xlu1 %4575  ;;  %v4684_v23 = vpop.permute.xlu0 %4683 }
 0x815   : > { %5137 = vrot.lane.b32.xlu1 %v7420_v42, %s7924_s23  ;;  %5236 = vperm.xlu0 %5950, %v5233_v49  }
 0x817   : > { %v4686_v59 = vpop.permute.xlu1 %4685  ;;  %v4794_v15 = vpop.permute.xlu0 %4793 }
 0x81b   : > { %v4796_v16 = vpop.permute.xlu1 %4795  ;;  %v4291_v25 = vpop.permute.xlu0 %4290 }
 0x81c   : > { %v4298_v29 = vsel %vm609_vm0, %v4283_v30, %v4291_v25  ;;  %v4302_v4 = vsel %vm609_vm0, %v4291_v25, %v4283_v30 }
 0x81d   : > { %v4306_v7 = vmul.f32 %v4302_v4, %v6176_v12  ;;  %v4307_v37 = vmul.f32 %v4298_v29, %v6179_v13 }
 0x81f   : > { %v4293_v56 = vpop.permute.xlu1 %4292  ;;  %v4472_v11 = vpop.permute.xlu0 %4471 }
 0x820   : > { %v4299_v20 = vsel %vm609_vm0, %v4285_v57, %v4293_v56  ;;  %v4303_v8 = vsel %vm609_vm0, %v4293_v56, %v4285_v57  ;;  %v4479_v54 = vsel %vm848_vm1, %v4464_v40, %v4472_v11  ;;  %v4483_v55 = vsel %vm848_vm1, %v4472_v11, %v4464_v40 }
 0x821   : > { %v4308_v10 = vmul.f32 %v4303_v8, %v6176_v12  ;;  %v4309_v38 = vmul.f32 %v4299_v20, %v6179_v13  ;;  %v7512_v24 = vmul.f32 %v4483_v55, %v7933_v62  ;;  %v7515_v0 = vmul.f32 %v4479_v54, %v7932_v36 }
 0x823   : > { %v5702_v33 = vpack.c.bf16 %v4308_v10, %v4306_v7  ;;  %v4474_v18 = vpop.permute.xlu1 %4473  ;;  %v4582_v44 = vpop.permute.xlu0 %4581  ;;  %v5700_v6 = vpack.c.bf16 %v4309_v38, %v4307_v37 }
 0x824   : > { %v4480_v26 = vsel %vm848_vm1, %v4466_v52, %v4474_v18  ;;  %v4484_v43 = vsel %vm848_vm1, %v4474_v18, %v4466_v52  ;;  %v4589_v21 = vsel %vm990_vm4, %v4574_v2, %v4582_v44  ;;  %v4593_v53 = vsel %vm990_vm4, %v4582_v44, %v4574_v2 }
 0x825   : > { %v7518_v27 = vmul.f32 %v4484_v43, %v7933_v62  ;;  %v7521_v9 = vmul.f32 %v4480_v26, %v7932_v36  ;;  %5701 = vmatprep.subr.bf16.mxu0 %v5700_v6  ;;  %v7536_v49 = vmul.f32 %v4593_v53, %v6272_v48  ;;  %v7539_v2 = vmul.f32 %v4589_v21, %v6227_v32 }
 0x826   : > { %5703 = vmatpush1.bf16.msra.mxu0 %v5702_v33 }
 0x827   : > { %v4584_v35 = vpop.permute.xlu1 %4583  ;;  %v4692_v30 = vpop.permute.xlu0 %4691 }
 0x828   : > { %v4590_v40 = vsel %vm990_vm4, %v4576_v58, %v4584_v35  ;;  %v4594_v52 = vsel %vm990_vm4, %v4584_v35, %v4576_v58  ;;  %v4699_v4 = vsel %vm1132_vm5, %v4684_v23, %v4692_v30  ;;  %v4703_v56 = vsel %vm1132_vm5, %v4692_v30, %v4684_v23 }
 0x829   : > { %v7542_v25 = vmul.f32 %v4594_v52, %v6272_v48  ;;  %v7545_v29 = vmul.f32 %v4590_v40, %v6227_v32  ;;  %v7560_v10 = vmul.f32 %v4703_v56, %v6310_v61  ;;  %v7563_v38 = vmul.f32 %v4699_v4, %v6277_v50 }
 0x82b   : > { %v4694_v11 = vpop.permute.xlu1 %4693  ;;  %v4802_v20 = vpop.permute.xlu0 %4801 }
 0x82c   : > { %v4700_v7 = vsel %vm1132_vm5, %v4686_v59, %v4694_v11  ;;  %v4704_v37 = vsel %vm1132_vm5, %v4694_v11, %v4686_v59  ;;  %v4809_v55 = vsel %vm1274_vm6, %v4794_v15, %v4802_v20  ;;  %v4813_v33 = vsel %vm1274_vm6, %v4802_v20, %v4794_v15 }
 0x82d   : > { %v7566_v23 = vmul.f32 %v4704_v37, %v6310_v61  ;;  %v7569_v54 = vmul.f32 %v4700_v7, %v6277_v50  ;;  %v7584_v21 = vmul.f32 %v4809_v55, %v6348_v17  ;;  %v7587_v53 = vmul.f32 %v4813_v33, %v6315_v63 }
 0x82f   : > { %v4804_v18 = vpop.permute.xlu1 %4803  ;;  %v4287_v44 = vpop.permute.xlu0 %4286 }
 0x830   : > { %v4810_v26 = vsel %vm1274_vm6, %v4796_v16, %v4804_v18  ;;  %v4814_v43 = vsel %vm1274_vm6, %v4804_v18, %v4796_v16 }
 0x831   : > { %v7590_v15 = vmul.f32 %v4810_v26, %v6348_v17  ;;  %v7593_v35 = vmul.f32 %v4814_v43, %v6315_v63 }
 0x833   : > { %v4289_v40 = vpop.permute.xlu1 %4288  ;;  %v4468_v52 = vpop.permute.xlu0 %4467 }
 0x837   : > { %v4470_v4 = vpop.permute.xlu1 %4469  ;;  %v4578_v56 = vpop.permute.xlu0 %4577 }
 0x83b   : > { %v7599_v11 = vpop.permute.xlu1 %4579  ;;  %v7601_v20 = vpop.permute.xlu0 %4687 }
 0x83f   : > { %v7603_v7 = vpop.permute.xlu1 %4689  ;;  %v7605_v37 = vpop.permute.xlu0 %4797 }
 0x843   : > { %v7607_v55 = vpop.permute.xlu1 %4799  ;;  %v4295_v33 = vpop.permute.xlu0 %4294 }
 0x844   : > { %v4300_v18 = vsel %vm609_vm0, %v4287_v44, %v4295_v33  ;;  %v4304_v26 = vsel %vm609_vm0, %v4295_v33, %v4287_v44 }
 0x845   : > { %v4310_v6 = vmul.f32 %v4304_v26, %v6176_v12  ;;  %v4311_v58 = vmul.f32 %v4300_v18, %v6179_v13 }
 0x847   : > { %v4297_v43 = vpop.permute.xlu1 %4296  ;;  %v7613_v30 = vpop.permute.xlu0 %4903 }
 0x848   : > { %v4301_v16 = vsel %vm609_vm0, %v4289_v40, %v4297_v43  ;;  %v4305_v59 = vsel %vm609_vm0, %v4297_v43, %v4289_v40  ;;  %v4314_v40 = vld [vmem:[%s7879_s13] sm:$0xf] }
 0x849   : > { %v4312_v8 = vmul.f32 %v4305_v59, %v6176_v12  ;;  %v4313_v22 = vmul.f32 %v4301_v16, %v6179_v13  ;;  %v5710_v13 = vpack.c.bf16 %v7348_v39, %v7344_v28  ;;  %v5604_v39 = vld [vmem:[%s7879_s13 + $0x10] sm:$0xf] }
 0x84b   : > { %v5706_v57 = vpack.c.bf16 %v4312_v8, %v4310_v6  ;;  %v7623_v41 = vpop.permute.xlu1 %4905  ;;  %v4476_v44 = vpop.permute.xlu0 %4475  ;;  %v5704_v33 = vpack.c.bf16 %v4313_v22, %v4311_v58  ;;  %v5712_v22 = vpack.c.bf16 %v7420_v42, %v7414_v60  ;;  %v7936_v42 = vpack.c.bf16 %v7521_v9, %v7515_v0 }
 0x84c   : > { %v4485_v28 = vsel %vm848_vm1, %v4476_v44, %v4468_v52  ;;  %v7937_v0 = vpack.c.bf16 %v7518_v27, %v7512_v24  ;;  %v7938_v27 = vpack.c.bf16 %v7545_v29, %v7539_v2  ;;  %v7939_v2 = vpack.c.bf16 %v7542_v25, %v7536_v49  ;;  %v5609_v49 = vld [vmem:[%s7879_s13 + $0x8] sm:$0xf] }
 0x84d   : > { %5705 = vmatprep.subr.bf16.mxu0 %v5704_v33  ;;  %v4491_v8 = vmul.f32 %v4485_v28, %v7933_v62  ;;  %v7940_v28 = vpack.c.bf16 %v7569_v54, %v7563_v38  ;;  %v7941_v38 = vpack.c.bf16 %v7566_v23, %v7560_v10  ;;  %v5611_v10 = vld [vmem:[%s7879_s13 + $0xc] sm:$0xf] }
 0x84e   : > { %5707 = vmatpush1.bf16.msra.mxu0 %v5706_v57  ;;  %v5714_v57 = vpack.c.bf16 %v7396_v3, %v7390_v51 }
 0x84f   : > { %v7630_v26 = vpop.permute.xlu1 %4913  ;;  %5709 = vmatprep.subr.bf16.mxu0 %v5708_v47  ;;  %v4586_v12 = vpop.permute.xlu0 %4585  ;;  %v4481_v47 = vsel %vm848_vm1, %v4468_v52, %v4476_v44 }
 0x850   : > { %v4492_v59 = vmul.f32 %v4481_v47, %v7932_v36  ;;  %v4591_v43 = vsel %vm990_vm4, %v4578_v56, %v4586_v12  ;;  %v4924_v23 = vsel %vm1416_vm7, %v7630_v26, %v7623_v41 }
 0x851   : > { %5605 = vmatmul.mubr.msk.f32.vlgmr.msra.gmra.mrb[10].mxu0 %vm1953_vm10, %v4314_v40 }
 0x852   : > { %5711 = vmatpush1.bf16.msra.mxu0 %v5710_v13  ;;  %4456 = vmatprep.mubr.f32.mxu0 %v7925_v14 }
 0x853   : > { %v7638_v1 = vpop.permute.xlu1 %4909  ;;  %5713 = vmatprep.subr.bf16.mxu0 %v5712_v22  ;;  %v4696_v46 = vpop.permute.xlu0 %4695 }
 0x856   : > { %5715 = vmatpush1.bf16.msra.mxu0 %v5714_v57 }
 0x857   : > { %v4478_v60 = vpop.permute.xlu1 %4477  ;;  %5717 = vmatprep.subr.bf16.mxu0 %v7936_v42  ;;  %v4806_v58 = vpop.permute.xlu0 %4805 }
 0x858   : > { %v4482_v51 = vsel %vm848_vm1, %v4470_v4, %v4478_v60  ;;  %v4486_v3 = vsel %vm848_vm1, %v4478_v60, %v4470_v4 }
 0x859   : > { %v4493_v6 = vmul.f32 %v4486_v3, %v7933_v62  ;;  %v4494_v52 = vmul.f32 %v4482_v51, %v7932_v36  ;;  %5606 = vmatmul.mubr.msk.f32.vlgmr.msra.gmra.mrb[10].mxu0 %vm1953_vm10, %v5604_v39  ;;  %v4595_v36 = vsel %vm990_vm4, %v4586_v12, %v4578_v56  ;;  %v5607_v62 = vld [vmem:[%s7879_s13 + $0x4] sm:$0xf]  ;;  %v4602_v12 = vmul.f32 %v4591_v43, %v6227_v32 }
 0x85a   : > { %5719 = vmatpush1.bf16.msra.mxu0 %v7937_v0  ;;  %4564 = vmatprep.mubr.f32.mxu0 %v7925_v14  ;;  %v4601_v40 = vmul.f32 %v4595_v36, %v6272_v48  ;;  %v7942_v0 = vpack.c.bf16 %v7593_v35, %v7587_v53 }
 0x85b   : > { %v5722_v9 = vpack.c.bf16 %v4493_v6, %v4491_v8  ;;  %v7665_v16 = vpop.permute.xlu1 %5015  ;;  %v4912_v4 = vpop.permute.xlu0 %4911  ;;  %v5720_v18 = vpack.c.bf16 %v4494_v52, %v4492_v59  ;;  %v4811_v6 = vsel %vm1274_vm6, %v7605_v37, %v4806_v58 }
 0x85d   : > { %5721 = vmatprep.subr.bf16.mxu0 %v5720_v18 }
 0x85e   : > { %5723 = vmatpush1.bf16.msra.mxu0 %v5722_v9  ;;  %v4919_v9 = vsel %vm1416_vm7, %v7613_v30, %v4912_v4 }
 0x85f   : > { %v4588_v24 = vpop.permute.xlu1 %4587  ;;  %5725 = vmatprep.subr.bf16.mxu0 %v7938_v27  ;;  %v7677_v44 = vpop.permute.xlu0 %4907 }
 0x860   : > { %v4592_v33 = vsel %vm990_vm4, %v7599_v11, %v4588_v24  ;;  %v4596_v56 = vsel %vm990_vm4, %v4588_v24, %v7599_v11  ;;  %v4927_v24 = vmul.f32 %v4919_v9, %v6386_v31 }
 0x861   : > { %v4603_v13 = vmul.f32 %v4596_v56, %v6272_v48  ;;  %v4604_v22 = vmul.f32 %v4592_v33, %v6227_v32  ;;  %5608 = vmatmul.mubr.msk.f32.vlgmr.msra.gmra.mrb[10].mxu0 %vm1953_vm10, %v5607_v62  ;;  %v4701_v48 = vsel %vm1132_vm5, %v7601_v20, %v4696_v46  ;;  %v4705_v32 = vsel %vm1132_vm5, %v4696_v46, %v7601_v20 }
 0x862   : > { %5727 = vmatpush1.bf16.msra.mxu0 %v7939_v2  ;;  %4674 = vmatprep.mubr.f32.mxu0 %v7925_v14  ;;  %v4711_v20 = vmul.f32 %v4705_v32, %v6310_v61  ;;  %v4712_v46 = vmul.f32 %v4701_v48, %v6277_v50 }
 0x863   : > { %v5730_v29 = vpack.c.bf16 %v4603_v13, %v4601_v40  ;;  %v7694_v57 = vpop.permute.xlu1 %5023  ;;  %v4916_v11 = vpop.permute.xlu0 %4915  ;;  %v5728_v47 = vpack.c.bf16 %v4604_v22, %v4602_v12  ;;  %v5613_v40 = vld [vmem:[%s7879_s13 + $0x14] sm:$0xf] }
 0x864   : > { %v5034_v13 = vsel %vm1558_vm8, %v7694_v57, %v7665_v16 }
 0x865   : > { %5729 = vmatprep.subr.bf16.mxu0 %v5728_v47 }
 0x866   : > { %5731 = vmatpush1.bf16.msra.mxu0 %v5730_v29 }
 0x867   : > { %v4698_v25 = vpop.permute.xlu1 %4697  ;;  %5733 = vmatprep.subr.bf16.mxu0 %v7940_v28  ;;  %v5014_v39 = vpop.permute.xlu0 %5013  ;;  %v5030_v28 = vsel %vm1558_vm8, %v7665_v16, %v7694_v57 }
 0x868   : > { %v4702_v60 = vsel %vm1132_vm5, %v7603_v7, %v4698_v25  ;;  %v4706_v42 = vsel %vm1132_vm5, %v4698_v25, %v7603_v7 }
 0x869   : > { %v4713_v51 = vmul.f32 %v4706_v42, %v6310_v61  ;;  %v4714_v3 = vmul.f32 %v4702_v60, %v6277_v50  ;;  %5610 = vmatmul.mubr.msk.f32.vlgmr.msra.gmra.mrb[10].mxu0 %vm1953_vm10, %v5609_v49  ;;  %v4815_v50 = vsel %vm1274_vm6, %v4806_v58, %v7605_v37  ;;  %v4923_v61 = vsel %vm1416_vm7, %v4912_v4, %v7613_v30 }
 0x86a   : > { %5735 = vmatpush1.bf16.msra.mxu0 %v7941_v38  ;;  %4784 = vmatprep.mubr.f32.mxu0 %v7925_v14  ;;  %v4821_v58 = vmul.f32 %v4811_v6, %v6348_v17  ;;  %v4822_v36 = vmul.f32 %v4815_v50, %v6315_v63  ;;  %v4928_v53 = vmul.f32 %v4923_v61, %v6353_v19  ;;  %v5615_v38 = vld [vmem:[%s7879_s13 + $0x18] sm:$0xf] }
 0x86b   : > { %v5738_v54 = vpack.c.bf16 %v4713_v51, %v4711_v20  ;;  %v7723_v8 = vpop.permute.xlu1 %5019  ;;  %v5022_v7 = vpop.permute.xlu0 %5021  ;;  %v5736_v59 = vpack.c.bf16 %v4714_v3, %v4712_v46  ;;  %v4920_v30 = vsel %vm1416_vm7, %v7623_v41, %v7630_v26  ;;  %v7943_v4 = vpack.c.bf16 %v7590_v15, %v7584_v21 }
 0x86c   : > { %v4929_v56 = vmul.f32 %v4920_v30, %v6386_v31  ;;  %v4921_v41 = vsel %vm1416_vm7, %v7677_v44, %v4916_v11  ;;  %v4925_v21 = vsel %vm1416_vm7, %v4916_v11, %v7677_v44  ;;  %v5033_v15 = vsel %vm1558_vm8, %v5022_v7, %v5014_v39 }
 0x86d   : > { %5737 = vmatprep.subr.bf16.mxu0 %v5736_v59  ;;  %v4931_v29 = vmul.f32 %v4921_v41, %v6386_v31  ;;  %v5029_v44 = vsel %vm1558_vm8, %v5014_v39, %v5022_v7  ;;  %v4932_v48 = vmul.f32 %v4925_v21, %v6353_v19  ;;  %v5038_v32 = vmul.f32 %v5033_v15, %v6391_v34 }
 0x86e   : > { %5739 = vmatpush1.bf16.msra.mxu0 %v5738_v54  ;;  %v5750_v12 = vpack.c.bf16 %v4929_v56, %v4927_v24  ;;  %v5037_v39 = vmul.f32 %v5029_v44, %v6424_v45  ;;  %v5039_v51 = vmul.f32 %v5030_v28, %v6424_v45 }
 0x86f   : > { %v4808_v52 = vpop.permute.xlu1 %4807  ;;  %5741 = vmatprep.subr.bf16.mxu0 %v7942_v0  ;;  %v5018_v37 = vpop.permute.xlu0 %5017  ;;  %v7944_v0 = vld [vmem:[#allocation4_spill] sm:$0xff] }
 0x870   : > { %v4812_v18 = vsel %vm1274_vm6, %v7607_v55, %v4808_v52  ;;  %v4816_v43 = vsel %vm1274_vm6, %v4808_v52, %v7607_v55  ;;  %v4930_v55 = vmul.f32 %v4924_v23, %v6353_v19  ;;  %v5758_v54 = vpack.c.bf16 %v5039_v51, %v5037_v39 }
 0x871   : > { %v4823_v35 = vmul.f32 %v4812_v18, %v6348_v17  ;;  %v4824_v62 = vmul.f32 %v4816_v43, %v6315_v63  ;;  %5612 = vmatmul.mubr.msk.f32.vlgmr.msra.gmra.mrb[10].mxu0 %vm1953_vm10, %v5611_v10 }
 0x872   : > { %5743 = vmatpush1.bf16.msra.mxu0 %v7943_v4  ;;  %4894 = vmatprep.mubr.f32.mxu0 %v7925_v14  ;;  %v5748_v26 = vpack.c.bf16 %v4930_v55, %v4928_v53  ;;  %v5617_v55 = vld [vmem:[%s7879_s13 + $0x1c] sm:$0xf] }
 0x873   : > { %v5746_v17 = vpack.c.bf16 %v4823_v35, %v4821_v58  ;;  %v5126_v27 = vpop.permute.xlu1 %5125  ;;  %v5026_v63 = vpop.permute.xlu0 %5025  ;;  %v5744_v33 = vpack.c.bf16 %v4824_v62, %v4822_v36  ;;  %v7945_v62 = vld [vmem:[#allocation5_spill] sm:$0xff] }
 0x874   : > { %v5035_v46 = vsel %vm1558_vm8, %v5026_v63, %v5018_v37 }
 0x875   : > { %5745 = vmatprep.subr.bf16.mxu0 %v5744_v33  ;;  %v5042_v59 = vmul.f32 %v5035_v46, %v6391_v34 }
 0x876   : > { %5747 = vmatpush1.bf16.msra.mxu0 %v5746_v17 }
 0x877   : > { %v4918_v22 = vpop.permute.xlu1 %4917  ;;  %5749 = vmatprep.subr.bf16.mxu0 %v5748_v26  ;;  %v5124_v2 = vpop.permute.xlu0 %5123 }
 0x878   : > { %v4922_v11 = vsel %vm1416_vm7, %v7638_v1, %v4918_v22  ;;  %v4926_v47 = vsel %vm1416_vm7, %v4918_v22, %v7638_v1  ;;  %v5040_v1 = vmul.f32 %v5034_v13, %v6391_v34 }
 0x879   : > { %v4933_v49 = vmul.f32 %v4922_v11, %v6386_v31  ;;  %v4934_v25 = vmul.f32 %v4926_v47, %v6353_v19  ;;  %5614 = vmatmul.mubr.msk.f32.vlgmr.msra.gmra.mrb[10].mxu0 %vm1953_vm10, %v5613_v40  ;;  %v5031_v19 = vsel %vm1558_vm8, %v5018_v37, %v5026_v63 }
 0x87a   : > { %5751 = vmatpush1.bf16.msra.mxu0 %v5750_v12  ;;  %5004 = vmatprep.mubr.f32.mxu0 %v7925_v14  ;;  %v5756_v16 = vpack.c.bf16 %v5040_v1, %v5038_v32  ;;  %v5041_v7 = vmul.f32 %v5031_v19, %v6424_v45 }
 0x87b   : > { %v5754_v60 = vpack.c.bf16 %v4933_v49, %v4931_v29  ;;  %v5134_v42 = vpop.permute.xlu1 %5133  ;;  %v5132_v20 = vpop.permute.xlu0 %5131  ;;  %v5752_v31 = vpack.c.bf16 %v4934_v25, %v4932_v48 }
 0x87c   : > { %v5144_v57 = vsel %vm1700_vm9, %v5134_v42, %v5126_v27  ;;  %v5143_v3 = vsel %vm1700_vm9, %v5132_v20, %v5124_v2  ;;  %v5140_v61 = vsel %vm1700_vm9, %v5126_v27, %v5134_v42  ;;  %v5139_v10 = vsel %vm1700_vm9, %v5124_v2, %v5132_v20 }
 0x87d   : > { %5753 = vmatprep.subr.bf16.mxu0 %v5752_v31  ;;  %v5150_v37 = vmul.f32 %v5144_v57, %v7944_v0  ;;  %v5148_v58 = vmul.f32 %v5143_v3, %v7944_v0  ;;  %v5149_v30 = vmul.f32 %v5140_v61, %v7945_v62 }
 0x87e   : > { %5755 = vmatpush1.bf16.msra.mxu0 %v5754_v60 }
 0x87f   : > { %v5028_v6 = vpop.permute.xlu1 %5027  ;;  %5757 = vmatprep.subr.bf16.mxu0 %v5756_v16  ;;  %v5128_v50 = vpop.permute.xlu0 %5127  ;;  %v5764_v4 = vpack.c.bf16 %v5150_v37, %v5148_v58 }
 0x880   : > { %v5032_v23 = vsel %vm1558_vm8, %v7723_v8, %v5028_v6  ;;  %v5036_v52 = vsel %vm1558_vm8, %v5028_v6, %v7723_v8  ;;  %v5147_v8 = vmul.f32 %v5139_v10, %v7945_v62 }
 0x881   : > { %v5043_v9 = vmul.f32 %v5032_v23, %v6424_v45  ;;  %v5044_v18 = vmul.f32 %v5036_v52, %v6391_v34  ;;  %5616 = vmatmul.mubr.msk.f32.vlgmr.msra.gmra.mrb[10].mxu0 %vm1953_vm10, %v5615_v38 }
 0x882   : > { %5759 = vmatpush1.bf16.msra.mxu0 %v5758_v54  ;;  %5114 = vmatprep.mubr.f32.mxu0 %v7925_v14  ;;  %v5766_v17 = vpack.c.bf16 %v5149_v30, %v5147_v8 }
 0x883   : > { %v5762_v43 = vpack.c.bf16 %v5043_v9, %v5041_v7  ;;  %v5130_v36 = vpop.permute.xlu1 %5129  ;;  %v5136_v53 = vpop.permute.xlu0 %5135  ;;  %v5760_v35 = vpack.c.bf16 %v5044_v18, %v5042_v59 }
 0x884   : > { %v5141_v45 = vsel %vm1700_vm9, %v5128_v50, %v5136_v53  ;;  %v5145_v34 = vsel %vm1700_vm9, %v5136_v53, %v5128_v50 }
 0x885   : > { %5761 = vmatprep.subr.bf16.mxu0 %v5760_v35  ;;  %v5151_v33 = vmul.f32 %v5141_v45, %v7945_v62  ;;  %v5152_v56 = vmul.f32 %v5145_v34, %v7944_v0 }
 0x886   : > { %5763 = vmatpush1.bf16.msra.mxu0 %v5762_v43 }
 0x887   : > { %v5138_v24 = vpop.permute.xlu1 %5137  ;;  %5765 = vmatprep.subr.bf16.mxu0 %v5764_v4 }
 0x888   : > { %v5142_v27 = vsel %vm1700_vm9, %v5130_v36, %v5138_v24  ;;  %v5146_v63 = vsel %vm1700_vm9, %v5138_v24, %v5130_v36 }
 0x889   : > { %v5153_v41 = vmul.f32 %v5142_v27, %v7945_v62  ;;  %v5154_v26 = vmul.f32 %v5146_v63, %v7944_v0  ;;  %5618 = vmatmul.mubr.msk.f32.vlgmr.msra.gmra.mrb[10].mxu0 %vm1953_vm10, %v5617_v55 }
 0x88a   : > { %5767 = vmatpush1.bf16.msra.mxu0 %v5766_v17  ;;  %5224 = vmatprep.mubr.f32.mxu0 %v7925_v14 }
 0x88b   : > { %v5770_v21 = vpack.c.bf16 %v5153_v41, %v5151_v33  ;;  %v5768_v15 = vpack.c.bf16 %v5154_v26, %v5152_v56 }
 0x88d   : > { %5769 = vmatprep.subr.bf16.mxu0 %v5768_v15 }
 0x88e   : > { %5771 = vmatpush1.bf16.msra.mxu0 %v5770_v21 }
 0x891   : > { %5620 = vmatmul.mubr.msk.f32.vlgmr.msra.gmra.mrb[10].mxu0 %vm1953_vm10, %v5619_v5 }
 0x894   : > { %v5237_v40 = vpop.permute.xlu0 %5236 }
 0x964   : > { %v5226_v12 = vpop.f32.mrb[10].mxu0 }
 0x965   : > { %v5239_v13 = vadd.f32 %v5237_v40, %v5226_v12  ;;  %v5228_v22 = vpop.f32.mrb[11].mxu0 }
 0x966   : > { %v5240_v2 = vadd.f32 %v5237_v40, %v5228_v22 }
 0x968   : > { %v5243_v14 = vcombine.low %v5239_v13, %v5240_v2 }
 0x96a   : > { %5245 = vst [vmem:[%s583_s30] sm:$0xff] %v5243_v14 }
 0x96b PF: > { %s28_s24 = sadd.s32 1, %s6028_s24  }
 0x96c   : > { %p25_p4 = scmp.ge.s32.totalorder %s28_s24, 4  }
 0x96e   :  { %27 = sbr.rel (!%p25_p4) target bundleno = 5 (0x5), region = 176 }

</bundles_post_ra>
